<compile_context>
chip_gen: v6e
topology: v6e:2x2x1
jax: 0.10.0
libtpu: 0.0.40
codegen_flags: <defaults>
</compile_context>

<pallas_src>
import functools

import jax
import jax.numpy as jnp
import numpy as np
from jax.experimental import pallas as pl
from jax.experimental.pallas import tpu as pltpu


def _round_up(n, m):
    return ((n + m - 1) // m) * m


def _tap_masks(n_img, H, W):
    """(9, n_img*H*W) f32 0/1 masks: 1 where tap (dy,dx) reads an in-image pixel."""
    N = n_img * H * W
    p = np.arange(N)
    r = p % (H * W)
    y = r // W
    x = r % W
    masks = np.zeros((9, N), np.float32)
    for dy in range(3):
        for dx in range(3):
            yy = y + dy - 1
            xx = x + dx - 1
            ok = (yy >= 0) & (yy < H) & (xx >= 0) & (xx < W)
            masks[dy * 3 + dx] = ok.astype(np.float32)
    return jnp.asarray(masks)


def _pool_matrix(H, W):
    """PER-IMAGE (H*W, Ho*Wo) matrix performing 2x2 / stride-2 average pooling."""
    Ho, Wo = H // 2, W // 2
    HW, HoWo = H * W, Ho * Wo
    p = np.arange(HW)
    y = p // W
    x = p % W
    q = (y // 2) * Wo + (x // 2)
    P = np.zeros((HW, HoWo), np.float32)
    P[p, q] = 0.25
    return jnp.asarray(P)


def _conv_weight_taps(w_hwio, cin_p, cout_p, dtype):
    """(3,3,Cin,Cout) HWIO -> (9, Cout_p, Cin_p) per-tap matmul weights."""
    kh, kw, cin, cout = w_hwio.shape
    wp = jnp.pad(w_hwio, ((0, 0), (0, 0), (0, cin_p - cin), (0, cout_p - cout)))
    return wp.transpose(0, 1, 3, 2).reshape(kh * kw, cout_p, cin_p).astype(dtype)


def _num_tensorcores():
    """Best-effort TensorCore count per device (v7x/megacore -> 2, else 1)."""
    dev = jax.devices()[0]
    n = getattr(dev, "num_cores", None) or getattr(dev, "core_count", None) or 1
    try:
        return max(1, int(n))
    except Exception:
        return 1


def disblock_forward(x_nchw, params, *, downsample=True):
    """DisBlock forward. x_nchw: (B, Cin, H, W) f32. Returns (B, Cout, Ho, Wo)."""
    x = x_nchw.astype(jnp.float32)
    B, Cin, H, W = x.shape
    w1, b1 = params["w1"], params["b1"]          # (3,3,Cin,Chid), (Chid,)
    w2, b2 = params["w2"], params["b2"]          # (3,3,Chid,Cout), (Cout,)
    wsc, bsc = params["wsc"], params["bsc"]      # (Cin,Cout), (Cout,)
    Chid, Cout = w1.shape[-1], w2.shape[-1]
    Ho, Wo = (H // 2, W // 2) if downsample else (H, W)
    HW, HoWo = H * W, Ho * Wo

    # pad channel counts to sublane multiples (8) -> aligned per-tap weight blocks
    Cin_p = _round_up(Cin, 8)
    Chid_p = _round_up(Chid, 8)
    Cout_p = _round_up(Cout, 8)

    # ---- choose images folded into the lane axis per grid step ----
    # prefer: G = B // n_img >= #TensorCores (both v7x TCs busy), then the widest
    # lane slab (amortizes per-step overhead), under a per-step VMEM working-set cap.
    num_tc = _num_tensorcores()

    def _step_bytes(n):
        Nn = n * HW
        return (2 * Cin_p * Nn * 4                       # x block, double-buffered
                + 2 * Cout_p * n * HoWo * 4              # out block, double-buffered
                + 9 * Nn * 4                             # tap masks
                + (Cin_p + 2 * Chid_p + 2 * Cout_p) * Nn * 4)   # live f32 intermediates

    divs = [d for d in range(1, B + 1) if B % d == 0]
    pref = [d for d in divs if B // d >= num_tc] or divs
    pref = sorted(pref, reverse=True)
    budget = 40 << 20                                    # headroom under v7x's 64 MiB VMEM
    n_img = next((d for d in pref if _step_bytes(d) <= budget), pref[-1])

    G = B // n_img
    N = n_img * HW               # matmul lane (N) dimension per grid step
    M = n_img * HoWo             # output lanes per grid step

    # ---- operands: channels-first, flattened spatial on the lane axis ----
    x_p = jnp.pad(x, ((0, 0), (0, Cin_p - Cin), (0, 0), (0, 0)))
    x_k = (x_p.reshape(G, n_img, Cin_p, HW)
           .transpose(0, 2, 1, 3)
           .reshape(G, Cin_p, N))

    mm_dtype = jnp.bfloat16      # matmul-operand dtype (f32 accumulation on the MXU)
    w1t = _conv_weight_taps(w1, Cin_p, Chid_p, mm_dtype)           # (9, Chid_p, Cin_p)
    w2t = _conv_weight_taps(w2, Chid_p, Cout_p, mm_dtype)          # (9, Cout_p, Chid_p)
    wsct = (jnp.pad(wsc, ((0, Cin_p - Cin), (0, Cout_p - Cout))).T
            .astype(mm_dtype))                                     # (Cout_p, Cin_p)
    b1c = jnp.pad(b1, (0, Chid_p - Chid)).reshape(Chid_p, 1).astype(jnp.float32)
    boc = (jnp.pad(b2 + bsc, (0, Cout_p - Cout))
           .reshape(Cout_p, 1).astype(jnp.float32))                # combined out bias
    masks = _tap_masks(n_img, H, W)                                # (9, N) f32
    # TODO(synk): for large images (H*W >= ~1024) replace the dense per-image pool
    # matmul with a roll+add 2x2 sum + compaction to avoid the O((H*W)^2/4) matrix.
    pool = _pool_matrix(H, W).astype(mm_dtype) if downsample else None

    def kernel(x_ref, m_ref, w1_ref, b1_ref, w2_ref, bo_ref, wsc_ref, *rest):
        if downsample:
            pool_ref, out_ref = rest
        else:
            (out_ref,) = rest

        x_raw = x_ref[0]                                   # (Cin_p, N) f32

        def conv3x3(a, w_ref, acc):
            # a: (cp, N) f32 activation.  9 per-tap matmuls accumulated in f32:
            # acc += W_tap @ (masked lane-roll of a); taps go straight from vregs
            # into the dot (no im2col scratch, no store/reload).
            for dy in range(3):
                for dx in range(3):
                    t = dy * 3 + dx
                    off = (dy - 1) * W + (dx - 1)
                    shifted = a if off == 0 else pltpu.roll(a, shift=(-off) % N, axis=1)
                    if not (dy == 1 and dx == 1):          # center-tap mask is all-ones
                        shifted = shifted * m_ref[pl.ds(t, 1), :]
                    acc = acc + jnp.dot(w_ref[t], shifted.astype(mm_dtype),
                                        preferred_element_type=jnp.float32)
            return acc

        # residual path: relu -> conv1 (+b1) -> relu -> conv2
        h1 = conv3x3(jnp.maximum(x_raw, 0.0), w1_ref, b1_ref[...])   # (Chid_p, N)
        h1 = jnp.maximum(h1, 0.0)

        # conv2 accumulator seeded with the folded 1x1 shortcut + combined bias
        acc = bo_ref[...] + jnp.dot(wsc_ref[...], x_raw.astype(mm_dtype),
                                    preferred_element_type=jnp.float32)
        y = conv3x3(h1, w2_ref, acc)                                 # (Cout_p, N)

        if downsample:
            # 2x2 avg-pool (linear) fused as one small per-image matmul; the HBM
            # writeback of out_ref remains a single dense block DMA.
            pmat = pool_ref[...]
            for im in range(n_img):
                blk = y[:, im * HW:(im + 1) * HW].astype(mm_dtype)
                pooled = jnp.dot(blk, pmat, preferred_element_type=jnp.float32)
                out_ref[0, :, pl.ds(im * HoWo, HoWo)] = pooled.astype(out_ref.dtype)
        else:
            out_ref[0] = y.astype(out_ref.dtype)

    inputs = [x_k, masks, w1t, b1c, w2t, boc, wsct]
    const_shapes = [(9, N), (9, Chid_p, Cin_p), (Chid_p, 1),
                    (9, Cout_p, Chid_p), (Cout_p, 1), (Cout_p, Cin_p)]
    if downsample:
        inputs.append(pool)
        const_shapes.append((HW, HoWo))

    # explicit VMEM budget (review: v7x = 64 MiB physical, 32 MiB default scoped limit)
    const_bytes = sum(int(np.prod(s)) for s in const_shapes) * 4   # as-if f32 (generous)
    vmem_limit = int(min(max(_step_bytes(n_img) + 4 * const_bytes + (8 << 20),
                             16 << 20), 64 << 20))

    def _build_and_run(single_buffer_constants):
        def const_spec(shape):
            idx = lambda g: (0,) * len(shape)
            if single_buffer_constants:
                return pl.BlockSpec(shape, idx, pipeline_mode=pl.Buffered(1))
            return pl.BlockSpec(shape, idx)

        in_specs = [pl.BlockSpec((1, Cin_p, N), lambda g: (g, 0, 0))]
        in_specs += [const_spec(s) for s in const_shapes]

        return pl.pallas_call(
            kernel,
            out_shape=jax.ShapeDtypeStruct((G, Cout_p, M), jnp.float32),
            grid_spec=pltpu.PrefetchScalarGridSpec(
                num_scalar_prefetch=0,
                grid=(G,),
                in_specs=in_specs,
                out_specs=pl.BlockSpec((1, Cout_p, M), lambda g: (g, 0, 0)),
            ),
            compiler_params=pltpu.CompilerParams(
                dimension_semantics=("parallel",),
                vmem_limit_bytes=vmem_limit,
            ),
        )(*inputs)

    try:
        out = _build_and_run(True)
    except Exception:
        # pipeline_mode=pl.Buffered(1) (single-buffered constants) unsupported on
        # this JAX/Mosaic version -> fall back to default double-buffered constants.
        out = _build_and_run(False)

    # un-flatten: (G, Cout_p, n_img*Ho*Wo) -> (B, Cout, Ho, Wo)
    out = (out.reshape(G, Cout_p, n_img, Ho, Wo)
           .transpose(0, 2, 1, 3, 4)
           .reshape(B, Cout_p, Ho, Wo))
    return out[:, :Cout]


def init_params(key, Cin, Chid, Cout):
    """Deterministic synthetic parameters (HWIO conv weights)."""
    k1, k2, k3, k4, k5, k6 = jax.random.split(key, 6)
    scale = 0.1
    return {
        "w1": scale * jax.random.normal(k1, (3, 3, Cin, Chid), jnp.float32),
        "b1": scale * jax.random.normal(k2, (Chid,), jnp.float32),
        "w2": scale * jax.random.normal(k3, (3, 3, Chid, Cout), jnp.float32),
        "b2": scale * jax.random.normal(k4, (Cout,), jnp.float32),
        "wsc": scale * jax.random.normal(k5, (Cin, Cout), jnp.float32),
        "bsc": scale * jax.random.normal(k6, (Cout,), jnp.float32),
    }


def reference_forward(x_nchw, params, *, downsample=True):
    """Pure-JAX reference mirroring the PyTorch module (NCHW in / NCHW out)."""
    x = jnp.transpose(x_nchw, (0, 2, 3, 1)).astype(jnp.float32)
    dn = ("NHWC", "HWIO", "NHWC")
    h = jax.nn.relu(x)
    h = jax.lax.conv_general_dilated(h, params["w1"], (1, 1), "SAME",
                                     dimension_numbers=dn)
    h = h + params["b1"].reshape(1, 1, 1, -1)
    h = jax.nn.relu(h)
    h = jax.lax.conv_general_dilated(h, params["w2"], (1, 1), "SAME",
                                     dimension_numbers=dn)
    h = h + params["b2"].reshape(1, 1, 1, -1)
    sc = jnp.einsum("bhwc,co->bhwo", x, params["wsc"])
    sc = sc + params["bsc"].reshape(1, 1, 1, -1)

    def pool(t):
        Bq, Hh, Ww, C = t.shape
        return t.reshape(Bq, Hh // 2, 2, Ww // 2, 2, C).mean(axis=(2, 4))

    y = (pool(h) + pool(sc)) if downsample else (h + sc)
    return jnp.transpose(y, (0, 3, 1, 2))


if __name__ == "__main__":
    key = jax.random.PRNGKey(0)
    kx, kp = jax.random.split(key)

    B, Cin, H, W = 2, 4, 16, 16
    Chid, Cout = 4, 8          # hidden_channels=in_channels (default); out != in -> learnable_sc
    downsample = True

    x = jax.random.normal(kx, (B, Cin, H, W), jnp.float32)
    params = init_params(kp, Cin, Chid, Cout)

    fwd = functools.partial(disblock_forward, downsample=downsample)
    y = jax.block_until_ready(fwd(x, params))

    y_ref = reference_forward(x, params, downsample=downsample)
    assert y.shape == (B, Cout, H // 2, W // 2)
    max_err = float(jnp.max(jnp.abs(y - y_ref)))
    # bf16 matmul operands with f32 accumulation -> loosened tolerance vs pure-f32 reference
    assert jnp.allclose(y, y_ref, atol=5e-2, rtol=5e-2), f"mismatch vs reference, max|err|={max_err}"

    print("KERNEL_OK")
</pallas_src>

<mosaic_0001>
module attributes {stable_mosaic.version = 11 : i64} {
  func.func @kernel(%arg0: i32, %arg1: memref<1x8x512xf32, #tpu.memory_space<vmem>>, %arg2: memref<9x512xf32, #tpu.memory_space<vmem>>, %arg3: memref<9x8x8xbf16, #tpu.memory_space<vmem>>, %arg4: memref<8x1xf32, #tpu.memory_space<vmem>>, %arg5: memref<9x8x8xbf16, #tpu.memory_space<vmem>>, %arg6: memref<8x1xf32, #tpu.memory_space<vmem>>, %arg7: memref<8x8xbf16, #tpu.memory_space<vmem>>, %arg8: memref<256x64xbf16, #tpu.memory_space<vmem>>, %arg9: memref<1x8x128xf32, #tpu.memory_space<vmem>>) attributes {dimension_semantics = [#tpu.dimension_semantics<parallel>], iteration_bounds = array<i64: 1>, scalar_prefetch = 0 : i64, scratch_operands = 0 : i64, tpu.core_type = #tpu.core_type<tc>, window_params = [{transform_indices = @transform_0, window_bounds = array<i64: 1, 8, 512>}, {pipeline_mode = #tpu.pipeline_mode<synchronous>, transform_indices = @transform_1, window_bounds = array<i64: 9, 512>}, {pipeline_mode = #tpu.pipeline_mode<synchronous>, transform_indices = @transform_2, window_bounds = array<i64: 9, 8, 8>}, {pipeline_mode = #tpu.pipeline_mode<synchronous>, transform_indices = @transform_3, window_bounds = array<i64: 8, 1>}, {pipeline_mode = #tpu.pipeline_mode<synchronous>, transform_indices = @transform_4, window_bounds = array<i64: 9, 8, 8>}, {pipeline_mode = #tpu.pipeline_mode<synchronous>, transform_indices = @transform_5, window_bounds = array<i64: 8, 1>}, {pipeline_mode = #tpu.pipeline_mode<synchronous>, transform_indices = @transform_6, window_bounds = array<i64: 8, 8>}, {pipeline_mode = #tpu.pipeline_mode<synchronous>, transform_indices = @transform_7, window_bounds = array<i64: 256, 64>}, {transform_indices = @transform_8, window_bounds = array<i64: 1, 8, 128>}]} {
    %c0 = arith.constant 0 : index
    %c0_0 = arith.constant 0 : index
    %c0_1 = arith.constant 0 : index
    %0 = vector.load %arg1[%c0, %c0_0, %c0_1] : memref<1x8x512xf32, #tpu.memory_space<vmem>>, vector<1x8x512xf32>
    %1 = vector.shape_cast %0 : vector<1x8x512xf32> to vector<8x512xf32>
    %cst = arith.constant 0.000000e+00 : f32
    %2 = vector.broadcast %cst : f32 to vector<8x512xf32>
    %3 = arith.maximumf %1, %2 : vector<8x512xf32>
    %c0_2 = arith.constant 0 : index
    %c0_3 = arith.constant 0 : index
    %4 = vector.load %arg4[%c0_2, %c0_3] : memref<8x1xf32, #tpu.memory_space<vmem>>, vector<8x1xf32>
    %c17_i32 = arith.constant 17 : i32
    %5 = tpu.dynamic_rotate %3 by %c17_i32 dim 1 : vector<8x512xf32>, i32 -> vector<8x512xf32>
    %c0_4 = arith.constant 0 : index
    %c0_5 = arith.constant 0 : index
    %6 = vector.load %arg2[%c0_4, %c0_5] : memref<9x512xf32, #tpu.memory_space<vmem>>, vector<1x512xf32>
    %7 = vector.broadcast %6 : vector<1x512xf32> to vector<8x512xf32>
    %8 = arith.mulf %5, %7 : vector<8x512xf32>
    %c0_6 = arith.constant 0 : index
    %c0_7 = arith.constant 0 : index
    %c0_8 = arith.constant 0 : index
    %9 = vector.load %arg3[%c0_6, %c0_7, %c0_8] : memref<9x8x8xbf16, #tpu.memory_space<vmem>>, vector<1x8x8xbf16>
    %10 = vector.shape_cast %9 : vector<1x8x8xbf16> to vector<8x8xbf16>
    %11 = arith.truncf %8 : vector<8x512xf32> to vector<8x512xbf16>
    %cst_9 = arith.constant dense<0.000000e+00> : vector<8x512xf32>
    %12 = tpu.matmul %10, %11, %cst_9 {dimension_numbers = #tpu.dot_dimension_numbers<[1], [0], [0], [1], [0, 0, 1, 1], [], []>} : vector<8x8xbf16>, vector<8x512xbf16>, vector<8x512xf32> -> vector<8x512xf32>
    %13 = vector.broadcast %4 : vector<8x1xf32> to vector<8x512xf32>
    %14 = arith.addf %13, %12 : vector<8x512xf32>
    %c16_i32 = arith.constant 16 : i32
    %15 = tpu.dynamic_rotate %3 by %c16_i32 dim 1 : vector<8x512xf32>, i32 -> vector<8x512xf32>
    %c1 = arith.constant 1 : index
    %c0_10 = arith.constant 0 : index
    %16 = vector.load %arg2[%c1, %c0_10] : memref<9x512xf32, #tpu.memory_space<vmem>>, vector<1x512xf32>
    %17 = vector.broadcast %16 : vector<1x512xf32> to vector<8x512xf32>
    %18 = arith.mulf %15, %17 : vector<8x512xf32>
    %c1_11 = arith.constant 1 : index
    %c0_12 = arith.constant 0 : index
    %c0_13 = arith.constant 0 : index
    %19 = vector.load %arg3[%c1_11, %c0_12, %c0_13] : memref<9x8x8xbf16, #tpu.memory_space<vmem>>, vector<1x8x8xbf16>
    %20 = vector.shape_cast %19 : vector<1x8x8xbf16> to vector<8x8xbf16>
    %21 = arith.truncf %18 : vector<8x512xf32> to vector<8x512xbf16>
    %cst_14 = arith.constant dense<0.000000e+00> : vector<8x512xf32>
    %22 = tpu.matmul %20, %21, %cst_14 {dimension_numbers = #tpu.dot_dimension_numbers<[1], [0], [0], [1], [0, 0, 1, 1], [], []>} : vector<8x8xbf16>, vector<8x512xbf16>, vector<8x512xf32> -> vector<8x512xf32>
    %23 = arith.addf %14, %22 : vector<8x512xf32>
    %c15_i32 = arith.constant 15 : i32
    %24 = tpu.dynamic_rotate %3 by %c15_i32 dim 1 : vector<8x512xf32>, i32 -> vector<8x512xf32>
    %c2 = arith.constant 2 : index
    %c0_15 = arith.constant 0 : index
    %25 = vector.load %arg2[%c2, %c0_15] : memref<9x512xf32, #tpu.memory_space<vmem>>, vector<1x512xf32>
    %26 = vector.broadcast %25 : vector<1x512xf32> to vector<8x512xf32>
    %27 = arith.mulf %24, %26 : vector<8x512xf32>
    %c2_16 = arith.constant 2 : index
    %c0_17 = arith.constant 0 : index
    %c0_18 = arith.constant 0 : index
    %28 = vector.load %arg3[%c2_16, %c0_17, %c0_18] : memref<9x8x8xbf16, #tpu.memory_space<vmem>>, vector<1x8x8xbf16>
    %29 = vector.shape_cast %28 : vector<1x8x8xbf16> to vector<8x8xbf16>
    %30 = arith.truncf %27 : vector<8x512xf32> to vector<8x512xbf16>
    %cst_19 = arith.constant dense<0.000000e+00> : vector<8x512xf32>
    %31 = tpu.matmul %29, %30, %cst_19 {dimension_numbers = #tpu.dot_dimension_numbers<[1], [0], [0], [1], [0, 0, 1, 1], [], []>} : vector<8x8xbf16>, vector<8x512xbf16>, vector<8x512xf32> -> vector<8x512xf32>
    %32 = arith.addf %23, %31 : vector<8x512xf32>
    %c1_i32 = arith.constant 1 : i32
    %33 = tpu.dynamic_rotate %3 by %c1_i32 dim 1 : vector<8x512xf32>, i32 -> vector<8x512xf32>
    %c3 = arith.constant 3 : index
    %c0_20 = arith.constant 0 : index
    %34 = vector.load %arg2[%c3, %c0_20] : memref<9x512xf32, #tpu.memory_space<vmem>>, vector<1x512xf32>
    %35 = vector.broadcast %34 : vector<1x512xf32> to vector<8x512xf32>
    %36 = arith.mulf %33, %35 : vector<8x512xf32>
    %c3_21 = arith.constant 3 : index
    %c0_22 = arith.constant 0 : index
    %c0_23 = arith.constant 0 : index
    %37 = vector.load %arg3[%c3_21, %c0_22, %c0_23] : memref<9x8x8xbf16, #tpu.memory_space<vmem>>, vector<1x8x8xbf16>
    %38 = vector.shape_cast %37 : vector<1x8x8xbf16> to vector<8x8xbf16>
    %39 = arith.truncf %36 : vector<8x512xf32> to vector<8x512xbf16>
    %cst_24 = arith.constant dense<0.000000e+00> : vector<8x512xf32>
    %40 = tpu.matmul %38, %39, %cst_24 {dimension_numbers = #tpu.dot_dimension_numbers<[1], [0], [0], [1], [0, 0, 1, 1], [], []>} : vector<8x8xbf16>, vector<8x512xbf16>, vector<8x512xf32> -> vector<8x512xf32>
    %41 = arith.addf %32, %40 : vector<8x512xf32>
    %c4 = arith.constant 4 : index
    %c0_25 = arith.constant 0 : index
    %c0_26 = arith.constant 0 : index
    %42 = vector.load %arg3[%c4, %c0_25, %c0_26] : memref<9x8x8xbf16, #tpu.memory_space<vmem>>, vector<1x8x8xbf16>
    %43 = vector.shape_cast %42 : vector<1x8x8xbf16> to vector<8x8xbf16>
    %44 = arith.truncf %3 : vector<8x512xf32> to vector<8x512xbf16>
    %cst_27 = arith.constant dense<0.000000e+00> : vector<8x512xf32>
    %45 = tpu.matmul %43, %44, %cst_27 {dimension_numbers = #tpu.dot_dimension_numbers<[1], [0], [0], [1], [0, 0, 1, 1], [], []>} : vector<8x8xbf16>, vector<8x512xbf16>, vector<8x512xf32> -> vector<8x512xf32>
    %46 = arith.addf %41, %45 : vector<8x512xf32>
    %c511_i32 = arith.constant 511 : i32
    %47 = tpu.dynamic_rotate %3 by %c511_i32 dim 1 : vector<8x512xf32>, i32 -> vector<8x512xf32>
    %c5 = arith.constant 5 : index
    %c0_28 = arith.constant 0 : index
    %48 = vector.load %arg2[%c5, %c0_28] : memref<9x512xf32, #tpu.memory_space<vmem>>, vector<1x512xf32>
    %49 = vector.broadcast %48 : vector<1x512xf32> to vector<8x512xf32>
    %50 = arith.mulf %47, %49 : vector<8x512xf32>
    %c5_29 = arith.constant 5 : index
    %c0_30 = arith.constant 0 : index
    %c0_31 = arith.constant 0 : index
    %51 = vector.load %arg3[%c5_29, %c0_30, %c0_31] : memref<9x8x8xbf16, #tpu.memory_space<vmem>>, vector<1x8x8xbf16>
    %52 = vector.shape_cast %51 : vector<1x8x8xbf16> to vector<8x8xbf16>
    %53 = arith.truncf %50 : vector<8x512xf32> to vector<8x512xbf16>
    %cst_32 = arith.constant dense<0.000000e+00> : vector<8x512xf32>
    %54 = tpu.matmul %52, %53, %cst_32 {dimension_numbers = #tpu.dot_dimension_numbers<[1], [0], [0], [1], [0, 0, 1, 1], [], []>} : vector<8x8xbf16>, vector<8x512xbf16>, vector<8x512xf32> -> vector<8x512xf32>
    %55 = arith.addf %46, %54 : vector<8x512xf32>
    %c497_i32 = arith.constant 497 : i32
    %56 = tpu.dynamic_rotate %3 by %c497_i32 dim 1 : vector<8x512xf32>, i32 -> vector<8x512xf32>
    %c6 = arith.constant 6 : index
    %c0_33 = arith.constant 0 : index
    %57 = vector.load %arg2[%c6, %c0_33] : memref<9x512xf32, #tpu.memory_space<vmem>>, vector<1x512xf32>
    %58 = vector.broadcast %57 : vector<1x512xf32> to vector<8x512xf32>
    %59 = arith.mulf %56, %58 : vector<8x512xf32>
    %c6_34 = arith.constant 6 : index
    %c0_35 = arith.constant 0 : index
    %c0_36 = arith.constant 0 : index
    %60 = vector.load %arg3[%c6_34, %c0_35, %c0_36] : memref<9x8x8xbf16, #tpu.memory_space<vmem>>, vector<1x8x8xbf16>
    %61 = vector.shape_cast %60 : vector<1x8x8xbf16> to vector<8x8xbf16>
    %62 = arith.truncf %59 : vector<8x512xf32> to vector<8x512xbf16>
    %cst_37 = arith.constant dense<0.000000e+00> : vector<8x512xf32>
    %63 = tpu.matmul %61, %62, %cst_37 {dimension_numbers = #tpu.dot_dimension_numbers<[1], [0], [0], [1], [0, 0, 1, 1], [], []>} : vector<8x8xbf16>, vector<8x512xbf16>, vector<8x512xf32> -> vector<8x512xf32>
    %64 = arith.addf %55, %63 : vector<8x512xf32>
    %c496_i32 = arith.constant 496 : i32
    %65 = tpu.dynamic_rotate %3 by %c496_i32 dim 1 : vector<8x512xf32>, i32 -> vector<8x512xf32>
    %c7 = arith.constant 7 : index
    %c0_38 = arith.constant 0 : index
    %66 = vector.load %arg2[%c7, %c0_38] : memref<9x512xf32, #tpu.memory_space<vmem>>, vector<1x512xf32>
    %67 = vector.broadcast %66 : vector<1x512xf32> to vector<8x512xf32>
    %68 = arith.mulf %65, %67 : vector<8x512xf32>
    %c7_39 = arith.constant 7 : index
    %c0_40 = arith.constant 0 : index
    %c0_41 = arith.constant 0 : index
    %69 = vector.load %arg3[%c7_39, %c0_40, %c0_41] : memref<9x8x8xbf16, #tpu.memory_space<vmem>>, vector<1x8x8xbf16>
    %70 = vector.shape_cast %69 : vector<1x8x8xbf16> to vector<8x8xbf16>
    %71 = arith.truncf %68 : vector<8x512xf32> to vector<8x512xbf16>
    %cst_42 = arith.constant dense<0.000000e+00> : vector<8x512xf32>
    %72 = tpu.matmul %70, %71, %cst_42 {dimension_numbers = #tpu.dot_dimension_numbers<[1], [0], [0], [1], [0, 0, 1, 1], [], []>} : vector<8x8xbf16>, vector<8x512xbf16>, vector<8x512xf32> -> vector<8x512xf32>
    %73 = arith.addf %64, %72 : vector<8x512xf32>
    %c495_i32 = arith.constant 495 : i32
    %74 = tpu.dynamic_rotate %3 by %c495_i32 dim 1 : vector<8x512xf32>, i32 -> vector<8x512xf32>
    %c8 = arith.constant 8 : index
    %c0_43 = arith.constant 0 : index
    %75 = vector.load %arg2[%c8, %c0_43] : memref<9x512xf32, #tpu.memory_space<vmem>>, vector<1x512xf32>
    %76 = vector.broadcast %75 : vector<1x512xf32> to vector<8x512xf32>
    %77 = arith.mulf %74, %76 : vector<8x512xf32>
    %c8_44 = arith.constant 8 : index
    %c0_45 = arith.constant 0 : index
    %c0_46 = arith.constant 0 : index
    %78 = vector.load %arg3[%c8_44, %c0_45, %c0_46] : memref<9x8x8xbf16, #tpu.memory_space<vmem>>, vector<1x8x8xbf16>
    %79 = vector.shape_cast %78 : vector<1x8x8xbf16> to vector<8x8xbf16>
    %80 = arith.truncf %77 : vector<8x512xf32> to vector<8x512xbf16>
    %cst_47 = arith.constant dense<0.000000e+00> : vector<8x512xf32>
    %81 = tpu.matmul %79, %80, %cst_47 {dimension_numbers = #tpu.dot_dimension_numbers<[1], [0], [0], [1], [0, 0, 1, 1], [], []>} : vector<8x8xbf16>, vector<8x512xbf16>, vector<8x512xf32> -> vector<8x512xf32>
    %82 = arith.addf %73, %81 : vector<8x512xf32>
    %cst_48 = arith.constant 0.000000e+00 : f32
    %83 = vector.broadcast %cst_48 : f32 to vector<8x512xf32>
    %84 = arith.maximumf %82, %83 : vector<8x512xf32>
    %c0_49 = arith.constant 0 : index
    %c0_50 = arith.constant 0 : index
    %85 = vector.load %arg6[%c0_49, %c0_50] : memref<8x1xf32, #tpu.memory_space<vmem>>, vector<8x1xf32>
    %c0_51 = arith.constant 0 : index
    %c0_52 = arith.constant 0 : index
    %86 = vector.load %arg7[%c0_51, %c0_52] : memref<8x8xbf16, #tpu.memory_space<vmem>>, vector<8x8xbf16>
    %87 = arith.truncf %1 : vector<8x512xf32> to vector<8x512xbf16>
    %cst_53 = arith.constant dense<0.000000e+00> : vector<8x512xf32>
    %88 = tpu.matmul %86, %87, %cst_53 {dimension_numbers = #tpu.dot_dimension_numbers<[1], [0], [0], [1], [0, 0, 1, 1], [], []>} : vector<8x8xbf16>, vector<8x512xbf16>, vector<8x512xf32> -> vector<8x512xf32>
    %89 = vector.broadcast %85 : vector<8x1xf32> to vector<8x512xf32>
    %90 = arith.addf %89, %88 : vector<8x512xf32>
    %c17_i32_54 = arith.constant 17 : i32
    %91 = tpu.dynamic_rotate %84 by %c17_i32_54 dim 1 : vector<8x512xf32>, i32 -> vector<8x512xf32>
    %c0_55 = arith.constant 0 : index
    %c0_56 = arith.constant 0 : index
    %92 = vector.load %arg2[%c0_55, %c0_56] : memref<9x512xf32, #tpu.memory_space<vmem>>, vector<1x512xf32>
    %93 = vector.broadcast %92 : vector<1x512xf32> to vector<8x512xf32>
    %94 = arith.mulf %91, %93 : vector<8x512xf32>
    %c0_57 = arith.constant 0 : index
    %c0_58 = arith.constant 0 : index
    %c0_59 = arith.constant 0 : index
    %95 = vector.load %arg5[%c0_57, %c0_58, %c0_59] : memref<9x8x8xbf16, #tpu.memory_space<vmem>>, vector<1x8x8xbf16>
    %96 = vector.shape_cast %95 : vector<1x8x8xbf16> to vector<8x8xbf16>
    %97 = arith.truncf %94 : vector<8x512xf32> to vector<8x512xbf16>
    %cst_60 = arith.constant dense<0.000000e+00> : vector<8x512xf32>
    %98 = tpu.matmul %96, %97, %cst_60 {dimension_numbers = #tpu.dot_dimension_numbers<[1], [0], [0], [1], [0, 0, 1, 1], [], []>} : vector<8x8xbf16>, vector<8x512xbf16>, vector<8x512xf32> -> vector<8x512xf32>
    %99 = arith.addf %90, %98 : vector<8x512xf32>
    %c16_i32_61 = arith.constant 16 : i32
    %100 = tpu.dynamic_rotate %84 by %c16_i32_61 dim 1 : vector<8x512xf32>, i32 -> vector<8x512xf32>
    %c1_62 = arith.constant 1 : index
    %c0_63 = arith.constant 0 : index
    %101 = vector.load %arg2[%c1_62, %c0_63] : memref<9x512xf32, #tpu.memory_space<vmem>>, vector<1x512xf32>
    %102 = vector.broadcast %101 : vector<1x512xf32> to vector<8x512xf32>
    %103 = arith.mulf %100, %102 : vector<8x512xf32>
    %c1_64 = arith.constant 1 : index
    %c0_65 = arith.constant 0 : index
    %c0_66 = arith.constant 0 : index
    %104 = vector.load %arg5[%c1_64, %c0_65, %c0_66] : memref<9x8x8xbf16, #tpu.memory_space<vmem>>, vector<1x8x8xbf16>
    %105 = vector.shape_cast %104 : vector<1x8x8xbf16> to vector<8x8xbf16>
    %106 = arith.truncf %103 : vector<8x512xf32> to vector<8x512xbf16>
    %cst_67 = arith.constant dense<0.000000e+00> : vector<8x512xf32>
    %107 = tpu.matmul %105, %106, %cst_67 {dimension_numbers = #tpu.dot_dimension_numbers<[1], [0], [0], [1], [0, 0, 1, 1], [], []>} : vector<8x8xbf16>, vector<8x512xbf16>, vector<8x512xf32> -> vector<8x512xf32>
    %108 = arith.addf %99, %107 : vector<8x512xf32>
    %c15_i32_68 = arith.constant 15 : i32
    %109 = tpu.dynamic_rotate %84 by %c15_i32_68 dim 1 : vector<8x512xf32>, i32 -> vector<8x512xf32>
    %c2_69 = arith.constant 2 : index
    %c0_70 = arith.constant 0 : index
    %110 = vector.load %arg2[%c2_69, %c0_70] : memref<9x512xf32, #tpu.memory_space<vmem>>, vector<1x512xf32>
    %111 = vector.broadcast %110 : vector<1x512xf32> to vector<8x512xf32>
    %112 = arith.mulf %109, %111 : vector<8x512xf32>
    %c2_71 = arith.constant 2 : index
    %c0_72 = arith.constant 0 : index
    %c0_73 = arith.constant 0 : index
    %113 = vector.load %arg5[%c2_71, %c0_72, %c0_73] : memref<9x8x8xbf16, #tpu.memory_space<vmem>>, vector<1x8x8xbf16>
    %114 = vector.shape_cast %113 : vector<1x8x8xbf16> to vector<8x8xbf16>
    %115 = arith.truncf %112 : vector<8x512xf32> to vector<8x512xbf16>
    %cst_74 = arith.constant dense<0.000000e+00> : vector<8x512xf32>
    %116 = tpu.matmul %114, %115, %cst_74 {dimension_numbers = #tpu.dot_dimension_numbers<[1], [0], [0], [1], [0, 0, 1, 1], [], []>} : vector<8x8xbf16>, vector<8x512xbf16>, vector<8x512xf32> -> vector<8x512xf32>
    %117 = arith.addf %108, %116 : vector<8x512xf32>
    %c1_i32_75 = arith.constant 1 : i32
    %118 = tpu.dynamic_rotate %84 by %c1_i32_75 dim 1 : vector<8x512xf32>, i32 -> vector<8x512xf32>
    %c3_76 = arith.constant 3 : index
    %c0_77 = arith.constant 0 : index
    %119 = vector.load %arg2[%c3_76, %c0_77] : memref<9x512xf32, #tpu.memory_space<vmem>>, vector<1x512xf32>
    %120 = vector.broadcast %119 : vector<1x512xf32> to vector<8x512xf32>
    %121 = arith.mulf %118, %120 : vector<8x512xf32>
    %c3_78 = arith.constant 3 : index
    %c0_79 = arith.constant 0 : index
    %c0_80 = arith.constant 0 : index
    %122 = vector.load %arg5[%c3_78, %c0_79, %c0_80] : memref<9x8x8xbf16, #tpu.memory_space<vmem>>, vector<1x8x8xbf16>
    %123 = vector.shape_cast %122 : vector<1x8x8xbf16> to vector<8x8xbf16>
    %124 = arith.truncf %121 : vector<8x512xf32> to vector<8x512xbf16>
    %cst_81 = arith.constant dense<0.000000e+00> : vector<8x512xf32>
    %125 = tpu.matmul %123, %124, %cst_81 {dimension_numbers = #tpu.dot_dimension_numbers<[1], [0], [0], [1], [0, 0, 1, 1], [], []>} : vector<8x8xbf16>, vector<8x512xbf16>, vector<8x512xf32> -> vector<8x512xf32>
    %126 = arith.addf %117, %125 : vector<8x512xf32>
    %c4_82 = arith.constant 4 : index
    %c0_83 = arith.constant 0 : index
    %c0_84 = arith.constant 0 : index
    %127 = vector.load %arg5[%c4_82, %c0_83, %c0_84] : memref<9x8x8xbf16, #tpu.memory_space<vmem>>, vector<1x8x8xbf16>
    %128 = vector.shape_cast %127 : vector<1x8x8xbf16> to vector<8x8xbf16>
    %129 = arith.truncf %84 : vector<8x512xf32> to vector<8x512xbf16>
    %cst_85 = arith.constant dense<0.000000e+00> : vector<8x512xf32>
    %130 = tpu.matmul %128, %129, %cst_85 {dimension_numbers = #tpu.dot_dimension_numbers<[1], [0], [0], [1], [0, 0, 1, 1], [], []>} : vector<8x8xbf16>, vector<8x512xbf16>, vector<8x512xf32> -> vector<8x512xf32>
    %131 = arith.addf %126, %130 : vector<8x512xf32>
    %c511_i32_86 = arith.constant 511 : i32
    %132 = tpu.dynamic_rotate %84 by %c511_i32_86 dim 1 : vector<8x512xf32>, i32 -> vector<8x512xf32>
    %c5_87 = arith.constant 5 : index
    %c0_88 = arith.constant 0 : index
    %133 = vector.load %arg2[%c5_87, %c0_88] : memref<9x512xf32, #tpu.memory_space<vmem>>, vector<1x512xf32>
    %134 = vector.broadcast %133 : vector<1x512xf32> to vector<8x512xf32>
    %135 = arith.mulf %132, %134 : vector<8x512xf32>
    %c5_89 = arith.constant 5 : index
    %c0_90 = arith.constant 0 : index
    %c0_91 = arith.constant 0 : index
    %136 = vector.load %arg5[%c5_89, %c0_90, %c0_91] : memref<9x8x8xbf16, #tpu.memory_space<vmem>>, vector<1x8x8xbf16>
    %137 = vector.shape_cast %136 : vector<1x8x8xbf16> to vector<8x8xbf16>
    %138 = arith.truncf %135 : vector<8x512xf32> to vector<8x512xbf16>
    %cst_92 = arith.constant dense<0.000000e+00> : vector<8x512xf32>
    %139 = tpu.matmul %137, %138, %cst_92 {dimension_numbers = #tpu.dot_dimension_numbers<[1], [0], [0], [1], [0, 0, 1, 1], [], []>} : vector<8x8xbf16>, vector<8x512xbf16>, vector<8x512xf32> -> vector<8x512xf32>
    %140 = arith.addf %131, %139 : vector<8x512xf32>
    %c497_i32_93 = arith.constant 497 : i32
    %141 = tpu.dynamic_rotate %84 by %c497_i32_93 dim 1 : vector<8x512xf32>, i32 -> vector<8x512xf32>
    %c6_94 = arith.constant 6 : index
    %c0_95 = arith.constant 0 : index
    %142 = vector.load %arg2[%c6_94, %c0_95] : memref<9x512xf32, #tpu.memory_space<vmem>>, vector<1x512xf32>
    %143 = vector.broadcast %142 : vector<1x512xf32> to vector<8x512xf32>
    %144 = arith.mulf %141, %143 : vector<8x512xf32>
    %c6_96 = arith.constant 6 : index
    %c0_97 = arith.constant 0 : index
    %c0_98 = arith.constant 0 : index
    %145 = vector.load %arg5[%c6_96, %c0_97, %c0_98] : memref<9x8x8xbf16, #tpu.memory_space<vmem>>, vector<1x8x8xbf16>
    %146 = vector.shape_cast %145 : vector<1x8x8xbf16> to vector<8x8xbf16>
    %147 = arith.truncf %144 : vector<8x512xf32> to vector<8x512xbf16>
    %cst_99 = arith.constant dense<0.000000e+00> : vector<8x512xf32>
    %148 = tpu.matmul %146, %147, %cst_99 {dimension_numbers = #tpu.dot_dimension_numbers<[1], [0], [0], [1], [0, 0, 1, 1], [], []>} : vector<8x8xbf16>, vector<8x512xbf16>, vector<8x512xf32> -> vector<8x512xf32>
    %149 = arith.addf %140, %148 : vector<8x512xf32>
    %c496_i32_100 = arith.constant 496 : i32
    %150 = tpu.dynamic_rotate %84 by %c496_i32_100 dim 1 : vector<8x512xf32>, i32 -> vector<8x512xf32>
    %c7_101 = arith.constant 7 : index
    %c0_102 = arith.constant 0 : index
    %151 = vector.load %arg2[%c7_101, %c0_102] : memref<9x512xf32, #tpu.memory_space<vmem>>, vector<1x512xf32>
    %152 = vector.broadcast %151 : vector<1x512xf32> to vector<8x512xf32>
    %153 = arith.mulf %150, %152 : vector<8x512xf32>
    %c7_103 = arith.constant 7 : index
    %c0_104 = arith.constant 0 : index
    %c0_105 = arith.constant 0 : index
    %154 = vector.load %arg5[%c7_103, %c0_104, %c0_105] : memref<9x8x8xbf16, #tpu.memory_space<vmem>>, vector<1x8x8xbf16>
    %155 = vector.shape_cast %154 : vector<1x8x8xbf16> to vector<8x8xbf16>
    %156 = arith.truncf %153 : vector<8x512xf32> to vector<8x512xbf16>
    %cst_106 = arith.constant dense<0.000000e+00> : vector<8x512xf32>
    %157 = tpu.matmul %155, %156, %cst_106 {dimension_numbers = #tpu.dot_dimension_numbers<[1], [0], [0], [1], [0, 0, 1, 1], [], []>} : vector<8x8xbf16>, vector<8x512xbf16>, vector<8x512xf32> -> vector<8x512xf32>
    %158 = arith.addf %149, %157 : vector<8x512xf32>
    %c495_i32_107 = arith.constant 495 : i32
    %159 = tpu.dynamic_rotate %84 by %c495_i32_107 dim 1 : vector<8x512xf32>, i32 -> vector<8x512xf32>
    %c8_108 = arith.constant 8 : index
    %c0_109 = arith.constant 0 : index
    %160 = vector.load %arg2[%c8_108, %c0_109] : memref<9x512xf32, #tpu.memory_space<vmem>>, vector<1x512xf32>
    %161 = vector.broadcast %160 : vector<1x512xf32> to vector<8x512xf32>
    %162 = arith.mulf %159, %161 : vector<8x512xf32>
    %c8_110 = arith.constant 8 : index
    %c0_111 = arith.constant 0 : index
    %c0_112 = arith.constant 0 : index
    %163 = vector.load %arg5[%c8_110, %c0_111, %c0_112] : memref<9x8x8xbf16, #tpu.memory_space<vmem>>, vector<1x8x8xbf16>
    %164 = vector.shape_cast %163 : vector<1x8x8xbf16> to vector<8x8xbf16>
    %165 = arith.truncf %162 : vector<8x512xf32> to vector<8x512xbf16>
    %cst_113 = arith.constant dense<0.000000e+00> : vector<8x512xf32>
    %166 = tpu.matmul %164, %165, %cst_113 {dimension_numbers = #tpu.dot_dimension_numbers<[1], [0], [0], [1], [0, 0, 1, 1], [], []>} : vector<8x8xbf16>, vector<8x512xbf16>, vector<8x512xf32> -> vector<8x512xf32>
    %167 = arith.addf %158, %166 : vector<8x512xf32>
    %c0_114 = arith.constant 0 : index
    %c0_115 = arith.constant 0 : index
    %168 = vector.load %arg8[%c0_114, %c0_115] : memref<256x64xbf16, #tpu.memory_space<vmem>>, vector<256x64xbf16>
    %169 = vector.extract_strided_slice %167 {offsets = [0, 0], sizes = [8, 256], strides = [1, 1]} : vector<8x512xf32> to vector<8x256xf32>
    %170 = arith.truncf %169 : vector<8x256xf32> to vector<8x256xbf16>
    %cst_116 = arith.constant dense<0.000000e+00> : vector<8x64xf32>
    %171 = tpu.matmul %170, %168, %cst_116 {dimension_numbers = #tpu.dot_dimension_numbers<[1], [0], [0], [1], [0, 0, 1, 1], [], []>} : vector<8x256xbf16>, vector<256x64xbf16>, vector<8x64xf32> -> vector<8x64xf32>
    %c0_117 = arith.constant 0 : index
    %c0_118 = arith.constant 0 : index
    %c0_119 = arith.constant 0 : index
    %172 = vector.load %arg9[%c0_117, %c0_118, %c0_119] : memref<1x8x128xf32, #tpu.memory_space<vmem>>, vector<1x8x64xf32>
    %173 = vector.shape_cast %172 : vector<1x8x64xf32> to vector<8x64xf32>
    %174 = vector.shape_cast %171 : vector<8x64xf32> to vector<1x8x64xf32>
    tpu.vector_store %arg9[%c0_117, %c0_118, %c0_119], %174 {strides = array<i32>} : memref<1x8x128xf32, #tpu.memory_space<vmem>>, vector<1x8x64xf32>,
    %175 = vector.extract_strided_slice %167 {offsets = [0, 256], sizes = [8, 256], strides = [1, 1]} : vector<8x512xf32> to vector<8x256xf32>
    %176 = arith.truncf %175 : vector<8x256xf32> to vector<8x256xbf16>
    %cst_120 = arith.constant dense<0.000000e+00> : vector<8x64xf32>
    %177 = tpu.matmul %176, %168, %cst_120 {dimension_numbers = #tpu.dot_dimension_numbers<[1], [0], [0], [1], [0, 0, 1, 1], [], []>} : vector<8x256xbf16>, vector<256x64xbf16>, vector<8x64xf32> -> vector<8x64xf32>
    %c0_121 = arith.constant 0 : index
    %c0_122 = arith.constant 0 : index
    %c64 = arith.constant 64 : index
    %178 = vector.load %arg9[%c0_121, %c0_122, %c64] : memref<1x8x128xf32, #tpu.memory_space<vmem>>, vector<1x8x64xf32>
    %179 = vector.shape_cast %178 : vector<1x8x64xf32> to vector<8x64xf32>
    %180 = vector.shape_cast %177 : vector<8x64xf32> to vector<1x8x64xf32>
    tpu.vector_store %arg9[%c0_121, %c0_122, %c64], %180 {strides = array<i32>} : memref<1x8x128xf32, #tpu.memory_space<vmem>>, vector<1x8x64xf32>,
    return
  }
  func.func @transform_0(%arg0: i32) -> (i32, i32, i32) {
    %c0_i32 = arith.constant 0 : i32
    %c0_i32_0 = arith.constant 0 : i32
    %c0_i32_1 = arith.constant 0 : i32
    return %arg0, %c0_i32, %c0_i32_0 : i32, i32, i32
  }
  func.func @transform_1(%arg0: i32) -> (i32, i32) {
    %c0_i32 = arith.constant 0 : i32
    %c0_i32_0 = arith.constant 0 : i32
    %c0_i32_1 = arith.constant 0 : i32
    return %c0_i32, %c0_i32_0 : i32, i32
  }
  func.func @transform_2(%arg0: i32) -> (i32, i32, i32) {
    %c0_i32 = arith.constant 0 : i32
    %c0_i32_0 = arith.constant 0 : i32
    %c0_i32_1 = arith.constant 0 : i32
    %c0_i32_2 = arith.constant 0 : i32
    return %c0_i32, %c0_i32_0, %c0_i32_1 : i32, i32, i32
  }
  func.func @transform_3(%arg0: i32) -> (i32, i32) {
    %c0_i32 = arith.constant 0 : i32
    %c0_i32_0 = arith.constant 0 : i32
    %c0_i32_1 = arith.constant 0 : i32
    return %c0_i32, %c0_i32_0 : i32, i32
  }
  func.func @transform_4(%arg0: i32) -> (i32, i32, i32) {
    %c0_i32 = arith.constant 0 : i32
    %c0_i32_0 = arith.constant 0 : i32
    %c0_i32_1 = arith.constant 0 : i32
    %c0_i32_2 = arith.constant 0 : i32
    return %c0_i32, %c0_i32_0, %c0_i32_1 : i32, i32, i32
  }
  func.func @transform_5(%arg0: i32) -> (i32, i32) {
    %c0_i32 = arith.constant 0 : i32
    %c0_i32_0 = arith.constant 0 : i32
    %c0_i32_1 = arith.constant 0 : i32
    return %c0_i32, %c0_i32_0 : i32, i32
  }
  func.func @transform_6(%arg0: i32) -> (i32, i32) {
    %c0_i32 = arith.constant 0 : i32
    %c0_i32_0 = arith.constant 0 : i32
    %c0_i32_1 = arith.constant 0 : i32
    return %c0_i32, %c0_i32_0 : i32, i32
  }
  func.func @transform_7(%arg0: i32) -> (i32, i32) {
    %c0_i32 = arith.constant 0 : i32
    %c0_i32_0 = arith.constant 0 : i32
    %c0_i32_1 = arith.constant 0 : i32
    return %c0_i32, %c0_i32_0 : i32, i32
  }
  func.func @transform_8(%arg0: i32) -> (i32, i32, i32) {
    %c0_i32 = arith.constant 0 : i32
    %c0_i32_0 = arith.constant 0 : i32
    %c0_i32_1 = arith.constant 0 : i32
    return %arg0, %c0_i32, %c0_i32_0 : i32, i32, i32
  }
}

module attributes {stable_mosaic.version = 11 : i64} {
  func.func @kernel(%arg0: i32, %arg1: memref<1x8x512xf32, #tpu.memory_space<vmem>>, %arg2: memref<9x512xf32, #tpu.memory_space<vmem>>, %arg3: memref<9x8x8xbf16, #tpu.memory_space<vmem>>, %arg4: memref<8x1xf32, #tpu.memory_space<vmem>>, %arg5: memref<9x8x8xbf16, #tpu.memory_space<vmem>>, %arg6: memref<8x1xf32, #tpu.memory_space<vmem>>, %arg7: memref<8x8xbf16, #tpu.memory_space<vmem>>, %arg8: memref<256x64xbf16, #tpu.memory_space<vmem>>, %arg9: memref<1x8x128xf32, #tpu.memory_space<vmem>>) attributes {dimension_semantics = [#tpu.dimension_semantics<parallel>], iteration_bounds = array<i64: 1>, scalar_prefetch = 0 : i64, scratch_operands = 0 : i64, tpu.core_type = #tpu.core_type<tc>, window_params = [{transform_indices = @transform_0, window_bounds = array<i64: 1, 8, 512>}, {pipeline_mode = #tpu.pipeline_mode<synchronous>, transform_indices = @transform_1, window_bounds = array<i64: 9, 512>}, {pipeline_mode = #tpu.pipeline_mode<synchronous>, transform_indices = @transform_2, window_bounds = array<i64: 9, 8, 8>}, {pipeline_mode = #tpu.pipeline_mode<synchronous>, transform_indices = @transform_3, window_bounds = array<i64: 8, 1>}, {pipeline_mode = #tpu.pipeline_mode<synchronous>, transform_indices = @transform_4, window_bounds = array<i64: 9, 8, 8>}, {pipeline_mode = #tpu.pipeline_mode<synchronous>, transform_indices = @transform_5, window_bounds = array<i64: 8, 1>}, {pipeline_mode = #tpu.pipeline_mode<synchronous>, transform_indices = @transform_6, window_bounds = array<i64: 8, 8>}, {pipeline_mode = #tpu.pipeline_mode<synchronous>, transform_indices = @transform_7, window_bounds = array<i64: 256, 64>}, {transform_indices = @transform_8, window_bounds = array<i64: 1, 8, 128>}]} {
    %c0 = arith.constant 0 : index
    %c0_0 = arith.constant 0 : index
    %c0_1 = arith.constant 0 : index
    %0 = vector.load %arg1[%c0, %c0_0, %c0_1] : memref<1x8x512xf32, #tpu.memory_space<vmem>>, vector<1x8x512xf32>
    %1 = vector.shape_cast %0 : vector<1x8x512xf32> to vector<8x512xf32>
    %cst = arith.constant 0.000000e+00 : f32
    %2 = vector.broadcast %cst : f32 to vector<8x512xf32>
    %3 = arith.maximumf %1, %2 : vector<8x512xf32>
    %c0_2 = arith.constant 0 : index
    %c0_3 = arith.constant 0 : index
    %4 = vector.load %arg4[%c0_2, %c0_3] : memref<8x1xf32, #tpu.memory_space<vmem>>, vector<8x1xf32>
    %c17_i32 = arith.constant 17 : i32
    %5 = tpu.dynamic_rotate %3 by %c17_i32 dim 1 : vector<8x512xf32>, i32 -> vector<8x512xf32>
    %c0_4 = arith.constant 0 : index
    %c0_5 = arith.constant 0 : index
    %6 = vector.load %arg2[%c0_4, %c0_5] : memref<9x512xf32, #tpu.memory_space<vmem>>, vector<1x512xf32>
    %7 = vector.broadcast %6 : vector<1x512xf32> to vector<8x512xf32>
    %8 = arith.mulf %5, %7 : vector<8x512xf32>
    %c0_6 = arith.constant 0 : index
    %c0_7 = arith.constant 0 : index
    %c0_8 = arith.constant 0 : index
    %9 = vector.load %arg3[%c0_6, %c0_7, %c0_8] : memref<9x8x8xbf16, #tpu.memory_space<vmem>>, vector<1x8x8xbf16>
    %10 = vector.shape_cast %9 : vector<1x8x8xbf16> to vector<8x8xbf16>
    %11 = arith.truncf %8 : vector<8x512xf32> to vector<8x512xbf16>
    %cst_9 = arith.constant dense<0.000000e+00> : vector<8x512xf32>
    %12 = tpu.matmul %10, %11, %cst_9 {dimension_numbers = #tpu.dot_dimension_numbers<[1], [0], [0], [1], [0, 0, 1, 1], [], []>} : vector<8x8xbf16>, vector<8x512xbf16>, vector<8x512xf32> -> vector<8x512xf32>
    %13 = vector.broadcast %4 : vector<8x1xf32> to vector<8x512xf32>
    %14 = arith.addf %13, %12 : vector<8x512xf32>
    %c16_i32 = arith.constant 16 : i32
    %15 = tpu.dynamic_rotate %3 by %c16_i32 dim 1 : vector<8x512xf32>, i32 -> vector<8x512xf32>
    %c1 = arith.constant 1 : index
    %c0_10 = arith.constant 0 : index
    %16 = vector.load %arg2[%c1, %c0_10] : memref<9x512xf32, #tpu.memory_space<vmem>>, vector<1x512xf32>
    %17 = vector.broadcast %16 : vector<1x512xf32> to vector<8x512xf32>
    %18 = arith.mulf %15, %17 : vector<8x512xf32>
    %c1_11 = arith.constant 1 : index
    %c0_12 = arith.constant 0 : index
    %c0_13 = arith.constant 0 : index
    %19 = vector.load %arg3[%c1_11, %c0_12, %c0_13] : memref<9x8x8xbf16, #tpu.memory_space<vmem>>, vector<1x8x8xbf16>
    %20 = vector.shape_cast %19 : vector<1x8x8xbf16> to vector<8x8xbf16>
    %21 = arith.truncf %18 : vector<8x512xf32> to vector<8x512xbf16>
    %cst_14 = arith.constant dense<0.000000e+00> : vector<8x512xf32>
    %22 = tpu.matmul %20, %21, %cst_14 {dimension_numbers = #tpu.dot_dimension_numbers<[1], [0], [0], [1], [0, 0, 1, 1], [], []>} : vector<8x8xbf16>, vector<8x512xbf16>, vector<8x512xf32> -> vector<8x512xf32>
    %23 = arith.addf %14, %22 : vector<8x512xf32>
    %c15_i32 = arith.constant 15 : i32
    %24 = tpu.dynamic_rotate %3 by %c15_i32 dim 1 : vector<8x512xf32>, i32 -> vector<8x512xf32>
    %c2 = arith.constant 2 : index
    %c0_15 = arith.constant 0 : index
    %25 = vector.load %arg2[%c2, %c0_15] : memref<9x512xf32, #tpu.memory_space<vmem>>, vector<1x512xf32>
    %26 = vector.broadcast %25 : vector<1x512xf32> to vector<8x512xf32>
    %27 = arith.mulf %24, %26 : vector<8x512xf32>
    %c2_16 = arith.constant 2 : index
    %c0_17 = arith.constant 0 : index
    %c0_18 = arith.constant 0 : index
    %28 = vector.load %arg3[%c2_16, %c0_17, %c0_18] : memref<9x8x8xbf16, #tpu.memory_space<vmem>>, vector<1x8x8xbf16>
    %29 = vector.shape_cast %28 : vector<1x8x8xbf16> to vector<8x8xbf16>
    %30 = arith.truncf %27 : vector<8x512xf32> to vector<8x512xbf16>
    %cst_19 = arith.constant dense<0.000000e+00> : vector<8x512xf32>
    %31 = tpu.matmul %29, %30, %cst_19 {dimension_numbers = #tpu.dot_dimension_numbers<[1], [0], [0], [1], [0, 0, 1, 1], [], []>} : vector<8x8xbf16>, vector<8x512xbf16>, vector<8x512xf32> -> vector<8x512xf32>
    %32 = arith.addf %23, %31 : vector<8x512xf32>
    %c1_i32 = arith.constant 1 : i32
    %33 = tpu.dynamic_rotate %3 by %c1_i32 dim 1 : vector<8x512xf32>, i32 -> vector<8x512xf32>
    %c3 = arith.constant 3 : index
    %c0_20 = arith.constant 0 : index
    %34 = vector.load %arg2[%c3, %c0_20] : memref<9x512xf32, #tpu.memory_space<vmem>>, vector<1x512xf32>
    %35 = vector.broadcast %34 : vector<1x512xf32> to vector<8x512xf32>
    %36 = arith.mulf %33, %35 : vector<8x512xf32>
    %c3_21 = arith.constant 3 : index
    %c0_22 = arith.constant 0 : index
    %c0_23 = arith.constant 0 : index
    %37 = vector.load %arg3[%c3_21, %c0_22, %c0_23] : memref<9x8x8xbf16, #tpu.memory_space<vmem>>, vector<1x8x8xbf16>
    %38 = vector.shape_cast %37 : vector<1x8x8xbf16> to vector<8x8xbf16>
    %39 = arith.truncf %36 : vector<8x512xf32> to vector<8x512xbf16>
    %cst_24 = arith.constant dense<0.000000e+00> : vector<8x512xf32>
    %40 = tpu.matmul %38, %39, %cst_24 {dimension_numbers = #tpu.dot_dimension_numbers<[1], [0], [0], [1], [0, 0, 1, 1], [], []>} : vector<8x8xbf16>, vector<8x512xbf16>, vector<8x512xf32> -> vector<8x512xf32>
    %41 = arith.addf %32, %40 : vector<8x512xf32>
    %c4 = arith.constant 4 : index
    %c0_25 = arith.constant 0 : index
    %c0_26 = arith.constant 0 : index
    %42 = vector.load %arg3[%c4, %c0_25, %c0_26] : memref<9x8x8xbf16, #tpu.memory_space<vmem>>, vector<1x8x8xbf16>
    %43 = vector.shape_cast %42 : vector<1x8x8xbf16> to vector<8x8xbf16>
    %44 = arith.truncf %3 : vector<8x512xf32> to vector<8x512xbf16>
    %cst_27 = arith.constant dense<0.000000e+00> : vector<8x512xf32>
    %45 = tpu.matmul %43, %44, %cst_27 {dimension_numbers = #tpu.dot_dimension_numbers<[1], [0], [0], [1], [0, 0, 1, 1], [], []>} : vector<8x8xbf16>, vector<8x512xbf16>, vector<8x512xf32> -> vector<8x512xf32>
    %46 = arith.addf %41, %45 : vector<8x512xf32>
    %c511_i32 = arith.constant 511 : i32
    %47 = tpu.dynamic_rotate %3 by %c511_i32 dim 1 : vector<8x512xf32>, i32 -> vector<8x512xf32>
    %c5 = arith.constant 5 : index
    %c0_28 = arith.constant 0 : index
    %48 = vector.load %arg2[%c5, %c0_28] : memref<9x512xf32, #tpu.memory_space<vmem>>, vector<1x512xf32>
    %49 = vector.broadcast %48 : vector<1x512xf32> to vector<8x512xf32>
    %50 = arith.mulf %47, %49 : vector<8x512xf32>
    %c5_29 = arith.constant 5 : index
    %c0_30 = arith.constant 0 : index
    %c0_31 = arith.constant 0 : index
    %51 = vector.load %arg3[%c5_29, %c0_30, %c0_31] : memref<9x8x8xbf16, #tpu.memory_space<vmem>>, vector<1x8x8xbf16>
    %52 = vector.shape_cast %51 : vector<1x8x8xbf16> to vector<8x8xbf16>
    %53 = arith.truncf %50 : vector<8x512xf32> to vector<8x512xbf16>
    %cst_32 = arith.constant dense<0.000000e+00> : vector<8x512xf32>
    %54 = tpu.matmul %52, %53, %cst_32 {dimension_numbers = #tpu.dot_dimension_numbers<[1], [0], [0], [1], [0, 0, 1, 1], [], []>} : vector<8x8xbf16>, vector<8x512xbf16>, vector<8x512xf32> -> vector<8x512xf32>
    %55 = arith.addf %46, %54 : vector<8x512xf32>
    %c497_i32 = arith.constant 497 : i32
    %56 = tpu.dynamic_rotate %3 by %c497_i32 dim 1 : vector<8x512xf32>, i32 -> vector<8x512xf32>
    %c6 = arith.constant 6 : index
    %c0_33 = arith.constant 0 : index
    %57 = vector.load %arg2[%c6, %c0_33] : memref<9x512xf32, #tpu.memory_space<vmem>>, vector<1x512xf32>
    %58 = vector.broadcast %57 : vector<1x512xf32> to vector<8x512xf32>
    %59 = arith.mulf %56, %58 : vector<8x512xf32>
    %c6_34 = arith.constant 6 : index
    %c0_35 = arith.constant 0 : index
    %c0_36 = arith.constant 0 : index
    %60 = vector.load %arg3[%c6_34, %c0_35, %c0_36] : memref<9x8x8xbf16, #tpu.memory_space<vmem>>, vector<1x8x8xbf16>
    %61 = vector.shape_cast %60 : vector<1x8x8xbf16> to vector<8x8xbf16>
    %62 = arith.truncf %59 : vector<8x512xf32> to vector<8x512xbf16>
    %cst_37 = arith.constant dense<0.000000e+00> : vector<8x512xf32>
    %63 = tpu.matmul %61, %62, %cst_37 {dimension_numbers = #tpu.dot_dimension_numbers<[1], [0], [0], [1], [0, 0, 1, 1], [], []>} : vector<8x8xbf16>, vector<8x512xbf16>, vector<8x512xf32> -> vector<8x512xf32>
    %64 = arith.addf %55, %63 : vector<8x512xf32>
    %c496_i32 = arith.constant 496 : i32
    %65 = tpu.dynamic_rotate %3 by %c496_i32 dim 1 : vector<8x512xf32>, i32 -> vector<8x512xf32>
    %c7 = arith.constant 7 : index
    %c0_38 = arith.constant 0 : index
    %66 = vector.load %arg2[%c7, %c0_38] : memref<9x512xf32, #tpu.memory_space<vmem>>, vector<1x512xf32>
    %67 = vector.broadcast %66 : vector<1x512xf32> to vector<8x512xf32>
    %68 = arith.mulf %65, %67 : vector<8x512xf32>
    %c7_39 = arith.constant 7 : index
    %c0_40 = arith.constant 0 : index
    %c0_41 = arith.constant 0 : index
    %69 = vector.load %arg3[%c7_39, %c0_40, %c0_41] : memref<9x8x8xbf16, #tpu.memory_space<vmem>>, vector<1x8x8xbf16>
    %70 = vector.shape_cast %69 : vector<1x8x8xbf16> to vector<8x8xbf16>
    %71 = arith.truncf %68 : vector<8x512xf32> to vector<8x512xbf16>
    %cst_42 = arith.constant dense<0.000000e+00> : vector<8x512xf32>
    %72 = tpu.matmul %70, %71, %cst_42 {dimension_numbers = #tpu.dot_dimension_numbers<[1], [0], [0], [1], [0, 0, 1, 1], [], []>} : vector<8x8xbf16>, vector<8x512xbf16>, vector<8x512xf32> -> vector<8x512xf32>
    %73 = arith.addf %64, %72 : vector<8x512xf32>
    %c495_i32 = arith.constant 495 : i32
    %74 = tpu.dynamic_rotate %3 by %c495_i32 dim 1 : vector<8x512xf32>, i32 -> vector<8x512xf32>
    %c8 = arith.constant 8 : index
    %c0_43 = arith.constant 0 : index
    %75 = vector.load %arg2[%c8, %c0_43] : memref<9x512xf32, #tpu.memory_space<vmem>>, vector<1x512xf32>
    %76 = vector.broadcast %75 : vector<1x512xf32> to vector<8x512xf32>
    %77 = arith.mulf %74, %76 : vector<8x512xf32>
    %c8_44 = arith.constant 8 : index
    %c0_45 = arith.constant 0 : index
    %c0_46 = arith.constant 0 : index
    %78 = vector.load %arg3[%c8_44, %c0_45, %c0_46] : memref<9x8x8xbf16, #tpu.memory_space<vmem>>, vector<1x8x8xbf16>
    %79 = vector.shape_cast %78 : vector<1x8x8xbf16> to vector<8x8xbf16>
    %80 = arith.truncf %77 : vector<8x512xf32> to vector<8x512xbf16>
    %cst_47 = arith.constant dense<0.000000e+00> : vector<8x512xf32>
    %81 = tpu.matmul %79, %80, %cst_47 {dimension_numbers = #tpu.dot_dimension_numbers<[1], [0], [0], [1], [0, 0, 1, 1], [], []>} : vector<8x8xbf16>, vector<8x512xbf16>, vector<8x512xf32> -> vector<8x512xf32>
    %82 = arith.addf %73, %81 : vector<8x512xf32>
    %cst_48 = arith.constant 0.000000e+00 : f32
    %83 = vector.broadcast %cst_48 : f32 to vector<8x512xf32>
    %84 = arith.maximumf %82, %83 : vector<8x512xf32>
    %c0_49 = arith.constant 0 : index
    %c0_50 = arith.constant 0 : index
    %85 = vector.load %arg6[%c0_49, %c0_50] : memref<8x1xf32, #tpu.memory_space<vmem>>, vector<8x1xf32>
    %c0_51 = arith.constant 0 : index
    %c0_52 = arith.constant 0 : index
    %86 = vector.load %arg7[%c0_51, %c0_52] : memref<8x8xbf16, #tpu.memory_space<vmem>>, vector<8x8xbf16>
    %87 = arith.truncf %1 : vector<8x512xf32> to vector<8x512xbf16>
    %cst_53 = arith.constant dense<0.000000e+00> : vector<8x512xf32>
    %88 = tpu.matmul %86, %87, %cst_53 {dimension_numbers = #tpu.dot_dimension_numbers<[1], [0], [0], [1], [0, 0, 1, 1], [], []>} : vector<8x8xbf16>, vector<8x512xbf16>, vector<8x512xf32> -> vector<8x512xf32>
    %89 = vector.broadcast %85 : vector<8x1xf32> to vector<8x512xf32>
    %90 = arith.addf %89, %88 : vector<8x512xf32>
    %c17_i32_54 = arith.constant 17 : i32
    %91 = tpu.dynamic_rotate %84 by %c17_i32_54 dim 1 : vector<8x512xf32>, i32 -> vector<8x512xf32>
    %c0_55 = arith.constant 0 : index
    %c0_56 = arith.constant 0 : index
    %92 = vector.load %arg2[%c0_55, %c0_56] : memref<9x512xf32, #tpu.memory_space<vmem>>, vector<1x512xf32>
    %93 = vector.broadcast %92 : vector<1x512xf32> to vector<8x512xf32>
    %94 = arith.mulf %91, %93 : vector<8x512xf32>
    %c0_57 = arith.constant 0 : index
    %c0_58 = arith.constant 0 : index
    %c0_59 = arith.constant 0 : index
    %95 = vector.load %arg5[%c0_57, %c0_58, %c0_59] : memref<9x8x8xbf16, #tpu.memory_space<vmem>>, vector<1x8x8xbf16>
    %96 = vector.shape_cast %95 : vector<1x8x8xbf16> to vector<8x8xbf16>
    %97 = arith.truncf %94 : vector<8x512xf32> to vector<8x512xbf16>
    %cst_60 = arith.constant dense<0.000000e+00> : vector<8x512xf32>
    %98 = tpu.matmul %96, %97, %cst_60 {dimension_numbers = #tpu.dot_dimension_numbers<[1], [0], [0], [1], [0, 0, 1, 1], [], []>} : vector<8x8xbf16>, vector<8x512xbf16>, vector<8x512xf32> -> vector<8x512xf32>
    %99 = arith.addf %90, %98 : vector<8x512xf32>
    %c16_i32_61 = arith.constant 16 : i32
    %100 = tpu.dynamic_rotate %84 by %c16_i32_61 dim 1 : vector<8x512xf32>, i32 -> vector<8x512xf32>
    %c1_62 = arith.constant 1 : index
    %c0_63 = arith.constant 0 : index
    %101 = vector.load %arg2[%c1_62, %c0_63] : memref<9x512xf32, #tpu.memory_space<vmem>>, vector<1x512xf32>
    %102 = vector.broadcast %101 : vector<1x512xf32> to vector<8x512xf32>
    %103 = arith.mulf %100, %102 : vector<8x512xf32>
    %c1_64 = arith.constant 1 : index
    %c0_65 = arith.constant 0 : index
    %c0_66 = arith.constant 0 : index
    %104 = vector.load %arg5[%c1_64, %c0_65, %c0_66] : memref<9x8x8xbf16, #tpu.memory_space<vmem>>, vector<1x8x8xbf16>
    %105 = vector.shape_cast %104 : vector<1x8x8xbf16> to vector<8x8xbf16>
    %106 = arith.truncf %103 : vector<8x512xf32> to vector<8x512xbf16>
    %cst_67 = arith.constant dense<0.000000e+00> : vector<8x512xf32>
    %107 = tpu.matmul %105, %106, %cst_67 {dimension_numbers = #tpu.dot_dimension_numbers<[1], [0], [0], [1], [0, 0, 1, 1], [], []>} : vector<8x8xbf16>, vector<8x512xbf16>, vector<8x512xf32> -> vector<8x512xf32>
    %108 = arith.addf %99, %107 : vector<8x512xf32>
    %c15_i32_68 = arith.constant 15 : i32
    %109 = tpu.dynamic_rotate %84 by %c15_i32_68 dim 1 : vector<8x512xf32>, i32 -> vector<8x512xf32>
    %c2_69 = arith.constant 2 : index
    %c0_70 = arith.constant 0 : index
    %110 = vector.load %arg2[%c2_69, %c0_70] : memref<9x512xf32, #tpu.memory_space<vmem>>, vector<1x512xf32>
    %111 = vector.broadcast %110 : vector<1x512xf32> to vector<8x512xf32>
    %112 = arith.mulf %109, %111 : vector<8x512xf32>
    %c2_71 = arith.constant 2 : index
    %c0_72 = arith.constant 0 : index
    %c0_73 = arith.constant 0 : index
    %113 = vector.load %arg5[%c2_71, %c0_72, %c0_73] : memref<9x8x8xbf16, #tpu.memory_space<vmem>>, vector<1x8x8xbf16>
    %114 = vector.shape_cast %113 : vector<1x8x8xbf16> to vector<8x8xbf16>
    %115 = arith.truncf %112 : vector<8x512xf32> to vector<8x512xbf16>
    %cst_74 = arith.constant dense<0.000000e+00> : vector<8x512xf32>
    %116 = tpu.matmul %114, %115, %cst_74 {dimension_numbers = #tpu.dot_dimension_numbers<[1], [0], [0], [1], [0, 0, 1, 1], [], []>} : vector<8x8xbf16>, vector<8x512xbf16>, vector<8x512xf32> -> vector<8x512xf32>
    %117 = arith.addf %108, %116 : vector<8x512xf32>
    %c1_i32_75 = arith.constant 1 : i32
    %118 = tpu.dynamic_rotate %84 by %c1_i32_75 dim 1 : vector<8x512xf32>, i32 -> vector<8x512xf32>
    %c3_76 = arith.constant 3 : index
    %c0_77 = arith.constant 0 : index
    %119 = vector.load %arg2[%c3_76, %c0_77] : memref<9x512xf32, #tpu.memory_space<vmem>>, vector<1x512xf32>
    %120 = vector.broadcast %119 : vector<1x512xf32> to vector<8x512xf32>
    %121 = arith.mulf %118, %120 : vector<8x512xf32>
    %c3_78 = arith.constant 3 : index
    %c0_79 = arith.constant 0 : index
    %c0_80 = arith.constant 0 : index
    %122 = vector.load %arg5[%c3_78, %c0_79, %c0_80] : memref<9x8x8xbf16, #tpu.memory_space<vmem>>, vector<1x8x8xbf16>
    %123 = vector.shape_cast %122 : vector<1x8x8xbf16> to vector<8x8xbf16>
    %124 = arith.truncf %121 : vector<8x512xf32> to vector<8x512xbf16>
    %cst_81 = arith.constant dense<0.000000e+00> : vector<8x512xf32>
    %125 = tpu.matmul %123, %124, %cst_81 {dimension_numbers = #tpu.dot_dimension_numbers<[1], [0], [0], [1], [0, 0, 1, 1], [], []>} : vector<8x8xbf16>, vector<8x512xbf16>, vector<8x512xf32> -> vector<8x512xf32>
    %126 = arith.addf %117, %125 : vector<8x512xf32>
    %c4_82 = arith.constant 4 : index
    %c0_83 = arith.constant 0 : index
    %c0_84 = arith.constant 0 : index
    %127 = vector.load %arg5[%c4_82, %c0_83, %c0_84] : memref<9x8x8xbf16, #tpu.memory_space<vmem>>, vector<1x8x8xbf16>
    %128 = vector.shape_cast %127 : vector<1x8x8xbf16> to vector<8x8xbf16>
    %129 = arith.truncf %84 : vector<8x512xf32> to vector<8x512xbf16>
    %cst_85 = arith.constant dense<0.000000e+00> : vector<8x512xf32>
    %130 = tpu.matmul %128, %129, %cst_85 {dimension_numbers = #tpu.dot_dimension_numbers<[1], [0], [0], [1], [0, 0, 1, 1], [], []>} : vector<8x8xbf16>, vector<8x512xbf16>, vector<8x512xf32> -> vector<8x512xf32>
    %131 = arith.addf %126, %130 : vector<8x512xf32>
    %c511_i32_86 = arith.constant 511 : i32
    %132 = tpu.dynamic_rotate %84 by %c511_i32_86 dim 1 : vector<8x512xf32>, i32 -> vector<8x512xf32>
    %c5_87 = arith.constant 5 : index
    %c0_88 = arith.constant 0 : index
    %133 = vector.load %arg2[%c5_87, %c0_88] : memref<9x512xf32, #tpu.memory_space<vmem>>, vector<1x512xf32>
    %134 = vector.broadcast %133 : vector<1x512xf32> to vector<8x512xf32>
    %135 = arith.mulf %132, %134 : vector<8x512xf32>
    %c5_89 = arith.constant 5 : index
    %c0_90 = arith.constant 0 : index
    %c0_91 = arith.constant 0 : index
    %136 = vector.load %arg5[%c5_89, %c0_90, %c0_91] : memref<9x8x8xbf16, #tpu.memory_space<vmem>>, vector<1x8x8xbf16>
    %137 = vector.shape_cast %136 : vector<1x8x8xbf16> to vector<8x8xbf16>
    %138 = arith.truncf %135 : vector<8x512xf32> to vector<8x512xbf16>
    %cst_92 = arith.constant dense<0.000000e+00> : vector<8x512xf32>
    %139 = tpu.matmul %137, %138, %cst_92 {dimension_numbers = #tpu.dot_dimension_numbers<[1], [0], [0], [1], [0, 0, 1, 1], [], []>} : vector<8x8xbf16>, vector<8x512xbf16>, vector<8x512xf32> -> vector<8x512xf32>
    %140 = arith.addf %131, %139 : vector<8x512xf32>
    %c497_i32_93 = arith.constant 497 : i32
    %141 = tpu.dynamic_rotate %84 by %c497_i32_93 dim 1 : vector<8x512xf32>, i32 -> vector<8x512xf32>
    %c6_94 = arith.constant 6 : index
    %c0_95 = arith.constant 0 : index
    %142 = vector.load %arg2[%c6_94, %c0_95] : memref<9x512xf32, #tpu.memory_space<vmem>>, vector<1x512xf32>
    %143 = vector.broadcast %142 : vector<1x512xf32> to vector<8x512xf32>
    %144 = arith.mulf %141, %143 : vector<8x512xf32>
    %c6_96 = arith.constant 6 : index
    %c0_97 = arith.constant 0 : index
    %c0_98 = arith.constant 0 : index
    %145 = vector.load %arg5[%c6_96, %c0_97, %c0_98] : memref<9x8x8xbf16, #tpu.memory_space<vmem>>, vector<1x8x8xbf16>
    %146 = vector.shape_cast %145 : vector<1x8x8xbf16> to vector<8x8xbf16>
    %147 = arith.truncf %144 : vector<8x512xf32> to vector<8x512xbf16>
    %cst_99 = arith.constant dense<0.000000e+00> : vector<8x512xf32>
    %148 = tpu.matmul %146, %147, %cst_99 {dimension_numbers = #tpu.dot_dimension_numbers<[1], [0], [0], [1], [0, 0, 1, 1], [], []>} : vector<8x8xbf16>, vector<8x512xbf16>, vector<8x512xf32> -> vector<8x512xf32>
    %149 = arith.addf %140, %148 : vector<8x512xf32>
    %c496_i32_100 = arith.constant 496 : i32
    %150 = tpu.dynamic_rotate %84 by %c496_i32_100 dim 1 : vector<8x512xf32>, i32 -> vector<8x512xf32>
    %c7_101 = arith.constant 7 : index
    %c0_102 = arith.constant 0 : index
    %151 = vector.load %arg2[%c7_101, %c0_102] : memref<9x512xf32, #tpu.memory_space<vmem>>, vector<1x512xf32>
    %152 = vector.broadcast %151 : vector<1x512xf32> to vector<8x512xf32>
    %153 = arith.mulf %150, %152 : vector<8x512xf32>
    %c7_103 = arith.constant 7 : index
    %c0_104 = arith.constant 0 : index
    %c0_105 = arith.constant 0 : index
    %154 = vector.load %arg5[%c7_103, %c0_104, %c0_105] : memref<9x8x8xbf16, #tpu.memory_space<vmem>>, vector<1x8x8xbf16>
    %155 = vector.shape_cast %154 : vector<1x8x8xbf16> to vector<8x8xbf16>
    %156 = arith.truncf %153 : vector<8x512xf32> to vector<8x512xbf16>
    %cst_106 = arith.constant dense<0.000000e+00> : vector<8x512xf32>
    %157 = tpu.matmul %155, %156, %cst_106 {dimension_numbers = #tpu.dot_dimension_numbers<[1], [0], [0], [1], [0, 0, 1, 1], [], []>} : vector<8x8xbf16>, vector<8x512xbf16>, vector<8x512xf32> -> vector<8x512xf32>
    %158 = arith.addf %149, %157 : vector<8x512xf32>
    %c495_i32_107 = arith.constant 495 : i32
    %159 = tpu.dynamic_rotate %84 by %c495_i32_107 dim 1 : vector<8x512xf32>, i32 -> vector<8x512xf32>
    %c8_108 = arith.constant 8 : index
    %c0_109 = arith.constant 0 : index
    %160 = vector.load %arg2[%c8_108, %c0_109] : memref<9x512xf32, #tpu.memory_space<vmem>>, vector<1x512xf32>
    %161 = vector.broadcast %160 : vector<1x512xf32> to vector<8x512xf32>
    %162 = arith.mulf %159, %161 : vector<8x512xf32>
    %c8_110 = arith.constant 8 : index
    %c0_111 = arith.constant 0 : index
    %c0_112 = arith.constant 0 : index
    %163 = vector.load %arg5[%c8_110, %c0_111, %c0_112] : memref<9x8x8xbf16, #tpu.memory_space<vmem>>, vector<1x8x8xbf16>
    %164 = vector.shape_cast %163 : vector<1x8x8xbf16> to vector<8x8xbf16>
    %165 = arith.truncf %162 : vector<8x512xf32> to vector<8x512xbf16>
    %cst_113 = arith.constant dense<0.000000e+00> : vector<8x512xf32>
    %166 = tpu.matmul %164, %165, %cst_113 {dimension_numbers = #tpu.dot_dimension_numbers<[1], [0], [0], [1], [0, 0, 1, 1], [], []>} : vector<8x8xbf16>, vector<8x512xbf16>, vector<8x512xf32> -> vector<8x512xf32>
    %167 = arith.addf %158, %166 : vector<8x512xf32>
    %c0_114 = arith.constant 0 : index
    %c0_115 = arith.constant 0 : index
    %168 = vector.load %arg8[%c0_114, %c0_115] : memref<256x64xbf16, #tpu.memory_space<vmem>>, vector<256x64xbf16>
    %169 = vector.extract_strided_slice %167 {offsets = [0, 0], sizes = [8, 256], strides = [1, 1]} : vector<8x512xf32> to vector<8x256xf32>
    %170 = arith.truncf %169 : vector<8x256xf32> to vector<8x256xbf16>
    %cst_116 = arith.constant dense<0.000000e+00> : vector<8x64xf32>
    %171 = tpu.matmul %170, %168, %cst_116 {dimension_numbers = #tpu.dot_dimension_numbers<[1], [0], [0], [1], [0, 0, 1, 1], [], []>} : vector<8x256xbf16>, vector<256x64xbf16>, vector<8x64xf32> -> vector<8x64xf32>
    %c0_117 = arith.constant 0 : index
    %c0_118 = arith.constant 0 : index
    %c0_119 = arith.constant 0 : index
    %172 = vector.load %arg9[%c0_117, %c0_118, %c0_119] : memref<1x8x128xf32, #tpu.memory_space<vmem>>, vector<1x8x64xf32>
    %173 = vector.shape_cast %172 : vector<1x8x64xf32> to vector<8x64xf32>
    %174 = vector.shape_cast %171 : vector<8x64xf32> to vector<1x8x64xf32>
    tpu.vector_store %arg9[%c0_117, %c0_118, %c0_119], %174 {strides = array<i32>} : memref<1x8x128xf32, #tpu.memory_space<vmem>>, vector<1x8x64xf32>,
    %175 = vector.extract_strided_slice %167 {offsets = [0, 256], sizes = [8, 256], strides = [1, 1]} : vector<8x512xf32> to vector<8x256xf32>
    %176 = arith.truncf %175 : vector<8x256xf32> to vector<8x256xbf16>
    %cst_120 = arith.constant dense<0.000000e+00> : vector<8x64xf32>
    %177 = tpu.matmul %176, %168, %cst_120 {dimension_numbers = #tpu.dot_dimension_numbers<[1], [0], [0], [1], [0, 0, 1, 1], [], []>} : vector<8x256xbf16>, vector<256x64xbf16>, vector<8x64xf32> -> vector<8x64xf32>
    %c0_121 = arith.constant 0 : index
    %c0_122 = arith.constant 0 : index
    %c64 = arith.constant 64 : index
    %178 = vector.load %arg9[%c0_121, %c0_122, %c64] : memref<1x8x128xf32, #tpu.memory_space<vmem>>, vector<1x8x64xf32>
    %179 = vector.shape_cast %178 : vector<1x8x64xf32> to vector<8x64xf32>
    %180 = vector.shape_cast %177 : vector<8x64xf32> to vector<1x8x64xf32>
    tpu.vector_store %arg9[%c0_121, %c0_122, %c64], %180 {strides = array<i32>} : memref<1x8x128xf32, #tpu.memory_space<vmem>>, vector<1x8x64xf32>,
    return
  }
  func.func @transform_0(%arg0: i32) -> (i32, i32, i32) {
    %c0_i32 = arith.constant 0 : i32
    %c0_i32_0 = arith.constant 0 : i32
    %c0_i32_1 = arith.constant 0 : i32
    return %arg0, %c0_i32, %c0_i32_0 : i32, i32, i32
  }
  func.func @transform_1(%arg0: i32) -> (i32, i32) {
    %c0_i32 = arith.constant 0 : i32
    %c0_i32_0 = arith.constant 0 : i32
    %c0_i32_1 = arith.constant 0 : i32
    return %c0_i32, %c0_i32_0 : i32, i32
  }
  func.func @transform_2(%arg0: i32) -> (i32, i32, i32) {
    %c0_i32 = arith.constant 0 : i32
    %c0_i32_0 = arith.constant 0 : i32
    %c0_i32_1 = arith.constant 0 : i32
    %c0_i32_2 = arith.constant 0 : i32
    return %c0_i32, %c0_i32_0, %c0_i32_1 : i32, i32, i32
  }
  func.func @transform_3(%arg0: i32) -> (i32, i32) {
    %c0_i32 = arith.constant 0 : i32
    %c0_i32_0 = arith.constant 0 : i32
    %c0_i32_1 = arith.constant 0 : i32
    return %c0_i32, %c0_i32_0 : i32, i32
  }
  func.func @transform_4(%arg0: i32) -> (i32, i32, i32) {
    %c0_i32 = arith.constant 0 : i32
    %c0_i32_0 = arith.constant 0 : i32
    %c0_i32_1 = arith.constant 0 : i32
    %c0_i32_2 = arith.constant 0 : i32
    return %c0_i32, %c0_i32_0, %c0_i32_1 : i32, i32, i32
  }
  func.func @transform_5(%arg0: i32) -> (i32, i32) {
    %c0_i32 = arith.constant 0 : i32
    %c0_i32_0 = arith.constant 0 : i32
    %c0_i32_1 = arith.constant 0 : i32
    return %c0_i32, %c0_i32_0 : i32, i32
  }
  func.func @transform_6(%arg0: i32) -> (i32, i32) {
    %c0_i32 = arith.constant 0 : i32
    %c0_i32_0 = arith.constant 0 : i32
    %c0_i32_1 = arith.constant 0 : i32
    return %c0_i32, %c0_i32_0 : i32, i32
  }
  func.func @transform_7(%arg0: i32) -> (i32, i32) {
    %c0_i32 = arith.constant 0 : i32
    %c0_i32_0 = arith.constant 0 : i32
    %c0_i32_1 = arith.constant 0 : i32
    return %c0_i32, %c0_i32_0 : i32, i32
  }
  func.func @transform_8(%arg0: i32) -> (i32, i32, i32) {
    %c0_i32 = arith.constant 0 : i32
    %c0_i32_0 = arith.constant 0 : i32
    %c0_i32_1 = arith.constant 0 : i32
    return %arg0, %c0_i32, %c0_i32_0 : i32, i32, i32
  }
}

</mosaic_0001>

<bundles_post_ra>
// kernel: tpu_custom_call.1
= control target key start
LH: loop header
LB: loop body
LE: loop exit
PB: predicated region body
PF: predicated region fallthrough
CT: control target
= control target key end

     0   :  { %s2979_s13 = smov 17   ;;  %v3961_v8 = vmov 0   ;;  %s2982_s14 = smov 15   ;;  %s3952_s0 = inlined_call_operand.vmem [shape: f32[1,8,512], index: 0, kind: input, shape index: {}]   ;;  %s3953_s1 = inlined_call_operand.vmem [shape: f32[9,512], index: 1, kind: input, shape index: {}]   ;;  %s3954_s2 = inlined_call_operand.vmem [shape: bf16[9,8,8], index: 2, kind: input, shape index: {}]   ;;  %s3955_s3 = inlined_call_operand.vmem [shape: f32[8,1], index: 3, kind: input, shape index: {}]   ;;  %s3956_s4 = inlined_call_operand.vmem [shape: bf16[9,8,8], index: 4, kind: input, shape index: {}]   ;;  %s3957_s5 = inlined_call_operand.vmem [shape: f32[8,1], index: 5, kind: input, shape index: {}]   ;;  %s3958_s6 = inlined_call_operand.vmem [shape: bf16[8,8], index: 6, kind: input, shape index: {}]   ;;  %s3959_s7 = inlined_call_operand.vmem [shape: bf16[256,64], index: 7, kind: input, shape index: {}]   ;;  %s3960_s8 = inlined_call_operand.hbm [shape: f32[1,8,128], index: 8, kind: output, shape index: {}]  }
   0x1   :  { %v3038_v0 = vld [vmem:[%s3952_s0 + $0x10] sm:$0xff]  ;;  %v3043_v1 = vld [vmem:[%s3952_s0] sm:$0xff]  ;;  %v3048_v2 = vld [vmem:[%s3952_s0 + $0x18] sm:$0xff]  ;;  %135 = vmatprep.mubr.bf16.mxu0 %v3961_v8  ;;  %176 = vmatprep.mubr.bf16.mxu1 %v3961_v8 }
   0x2   :  { %v3051_v3 = vmax.f32 %v3038_v0, 0.0  ;;  %v3054_v4 = vmax.f32 %v3043_v1, 0.0  ;;  %v3059_v5 = vld [vmem:[%s3952_s0 + $0x8] sm:$0xff]  ;;  %v3066_v6 = vmax.f32 %v3048_v2, 0.0  ;;  %2940 = vset.pattern.permute.xlu0 %v3961_v8  ;;  %s2981_s0 = smov 16  }
   0x3   :  { %v3069_v7 = vmax.f32 %v3059_v5, 0.0 }
   0x4   :  { %44 = vrot.lane.b32.xlu1 %v3051_v3, %s2979_s13  ;;  %40 = vrot.lane.b32.xlu0 %v3054_v4, %s2979_s13 }
   0x8   :  { %46 = vrot.lane.b32.xlu1 %v3066_v6, %s2979_s13  ;;  %42 = vrot.lane.b32.xlu0 %v3069_v7, %s2979_s13 }
   0xc   :  { %196 = vrot.lane.b32.xlu1 %v3069_v7, %s2981_s0  ;;  %194 = vrot.lane.b32.xlu0 %v3054_v4, %s2981_s0 }
  0x10   :  { %200 = vrot.lane.b32.xlu1 %v3066_v6, %s2981_s0  ;;  %198 = vrot.lane.b32.xlu0 %v3051_v3, %s2981_s0 }
  0x14   :  { %343 = vrot.lane.b32.xlu1 %v3069_v7, %s2982_s14  ;;  %341 = vrot.lane.b32.xlu0 %v3054_v4, %s2982_s14 }
  0x15   :  { %13 = vsyncpa [#allocation3], 0  ;;  %s2983_s15 = smov 1   ;;  %s2984_s16 = smov 127   ;;  %v39_v9 = vld [vmem:[%s3955_s3] sm:$0xff]  ;;  %v48_v10 = vlaneseq  ;;  %vm90_vm2 = vcmask 1043456  }
  0x16   :  { %s2985_s17 = smov 113   ;;  %s2986_s18 = smov 112   ;;  %v55_v17 = vld [vmem:[%s3953_s1] ss:$8 sm:$0xf]  ;;  %vm86_vm3 = vcmask 64512  }
  0x17   :  { %s2987_s19 = smov 111   ;;  %v58_v11 = vshrl.u32 %v48_v10, 7  ;;  %v3137_v12 = vand.u32 127, %v48_v10  ;;  %v2774_v20 = vld [vmem:[%s3953_s1 + $0x1] ss:$8 sm:$0xf] }
  0x18   :  { %347 = vrot.lane.b32.xlu1 %v3066_v6, %s2982_s14  ;;  %345 = vrot.lane.b32.xlu0 %v3051_v3, %s2982_s14  ;;  %v2780_v49 = vld [vmem:[%s3953_s1 + $0x2] ss:$8 sm:$0xf]  ;;  %vm2706_vm10 = vcmask 523264   ;;  %s2989_s12 = smov [#allocation2]   ;;  %vm2754_vm11 = vcmask 1048064  }
  0x19   :  { %v3139_v13 = vsub.s32 0, %v58_v11  ;;  %v3141_v14 = vsub.s32 2, %v58_v11  ;;  %v3143_v15 = vsub.s32 1, %v58_v11  ;;  %v3145_v16 = vsub.s32 3, %v58_v11  ;;  %v81_v50 = vld [vmem:[%s3954_s2] sm:$0xf] }
  0x1a   :  { %vm50_vm0 = vcmp.lt.s32.totalorder %v3137_v12, 17  ;;  %vm202_vm1 = vcmp.lt.s32.totalorder %v3137_v12, 16  ;;  %vm349_vm4 = vcmp.lt.s32.totalorder %v3137_v12, 15  ;;  %vm496_vm5 = vcmp.lt.s32.totalorder %v3137_v12, 1  ;;  %s2762_s20 = sshll.u32 %s2989_s12, 4  ;;  %s2763_s20 = int_to_ptr.vmem [resolvable:$true] %s2762_s20 }
  0x1b   :  { %v3155_v21 = vrot.slane %v55_v17, %v3139_v13  ;;  %v3158_v22 = vrot.slane %v55_v17, %v3141_v14  ;;  %v3161_v23 = vrot.slane %v55_v17, %v3143_v15  ;;  %v3164_v24 = vrot.slane %v55_v17, %v3145_v16  ;;  %s2957_s21 = scalar_lea.vmem %s2763_s20, 128  ;;  %p2962_p1 = scmp.lt.s32.totalorder %s2763_s20, %s2763_s20 }
  0x1c   :  { %490 = vrot.lane.b32.xlu1 %v3069_v7, %s2983_s15  ;;  %488 = vrot.lane.b32.xlu0 %v3054_v4, %s2983_s15  ;;  %v3168_v27 = vrot.slane %v2774_v20, %v3143_v15  ;;  %v3185_v43 = vrot.slane %v2774_v20, %v3139_v13  ;;  %v3188_v44 = vrot.slane %v2774_v20, %v3141_v14  ;;  %vm750_vm6 = vcmp.lt.s32.totalorder %v3137_v12, 127  ;;  %p2958_p0 = scmp.ne.s32.totalorder %s2763_s20, %s2957_s21  ;;  %p2963_p2 = scmp.lt.s32.totalorder %s2957_s21, %s2957_s21 }
  0x1d   :  { %v3196_v48 = vrot.slane %v2774_v20, %v3145_v16  ;;  %v3211_v57 = vrot.slane %v2780_v49, %v3143_v15  ;;  %v3225_v17 = vrot.slane %v2780_v49, %v3139_v13  ;;  %vm897_vm7 = vcmp.lt.s32.totalorder %v3137_v12, 113 }
  0x1e   :  { %3980 = vst [vmem:[#allocation5_spill] sm:$0xff] %v3168_v27  ;;  %3981 = vst [vmem:[#allocation6_spill] sm:$0xff] %v3185_v43  ;;  %vm1044_vm8 = vcmp.lt.s32.totalorder %v3137_v12, 112  ;;  %vm1191_vm9 = vcmp.lt.s32.totalorder %v3137_v12, 111  ;;  %v2941_v12 = vld [vmem:[%s3959_s7 + $0x78] sm:$0xff]   ;;  %p2964_p3 = por %p2963_p2, %p2962_p1 }
  0x1f   :  { %3982 = vst [vmem:[#allocation7_spill] sm:$0xff] %v3211_v57  ;;  %3983 = vst [vmem:[#allocation8_spill] sm:$0xff] %v3225_v17 }
  0x20   :  { %494 = vrot.lane.b32.xlu1 %v3066_v6, %s2983_s15  ;;  %492 = vrot.lane.b32.xlu0 %v3051_v3, %s2983_s15  ;;  %p2965_p4 = pnand %p2964_p3, %p2958_p0 }
  0x24   :  { %744 = vrot.lane.b32.xlu1 %v3069_v7, %s2984_s16  ;;  %742 = vrot.lane.b32.xlu0 %v3054_v4, %s2984_s16 }
  0x28   :  { %748 = vrot.lane.b32.xlu1 %v3066_v6, %s2984_s16  ;;  %746 = vrot.lane.b32.xlu0 %v3051_v3, %s2984_s16 }
  0x2c   :  { %891 = vrot.lane.b32.xlu1 %v3069_v7, %s2985_s17  ;;  %889 = vrot.lane.b32.xlu0 %v3054_v4, %s2985_s17 }
  0x30   :  { %895 = vrot.lane.b32.xlu1 %v3066_v6, %s2985_s17  ;;  %893 = vrot.lane.b32.xlu0 %v3051_v3, %s2985_s17 }
  0x34   :  { %1038 = vrot.lane.b32.xlu1 %v3069_v7, %s2986_s18  ;;  %1036 = vrot.lane.b32.xlu0 %v3054_v4, %s2986_s18 }
  0x38   :  { %1042 = vrot.lane.b32.xlu1 %v3066_v6, %s2986_s18  ;;  %1040 = vrot.lane.b32.xlu0 %v3051_v3, %s2986_s18 }
  0x3c   :  { %1185 = vrot.lane.b32.xlu1 %v3069_v7, %s2987_s19  ;;  %1183 = vrot.lane.b32.xlu0 %v3054_v4, %s2987_s19 }
  0x40   :  { %1189 = vrot.lane.b32.xlu1 %v3066_v6, %s2987_s19  ;;  %1187 = vrot.lane.b32.xlu0 %v3051_v3, %s2987_s19 }
  0x44   :  { %187 = vperm.xlu0 %2940, %v39_v9  }
  0x76   :  { %v45_v18 = vpop.permute.xlu1 %44  ;;  %v41_v19 = vpop.permute.xlu0 %40 }
  0x7a   :  { %v47_v25 = vpop.permute.xlu1 %46  ;;  %v43_v26 = vpop.permute.xlu0 %42 }
  0x7b   :  { %v51_v28 = vsel %vm50_vm0, %v45_v18, %v47_v25  ;;  %v54_v29 = vsel %vm50_vm0, %v47_v25, %v41_v19  ;;  %v52_v30 = vsel %vm50_vm0, %v43_v26, %v45_v18  ;;  %v53_v31 = vsel %vm50_vm0, %v41_v19, %v43_v26 }
  0x7c   :  { %v77_v32 = vmul.f32 %v3155_v21, %v54_v29  ;;  %v79_v33 = vmul.f32 %v3158_v22, %v52_v30  ;;  %v78_v34 = vmul.f32 %v3161_v23, %v53_v31  ;;  %v80_v35 = vmul.f32 %v3164_v24, %v51_v28  ;;  %v2786_v28 = vld [vmem:[%s3953_s1 + $0x3] ss:$8 sm:$0xf]  ;;  %v2775_v29 = vld [vmem:[%s3954_s2 + $0x4] sm:$0xf] }
  0x7d   :  { %v3228_v18 = vrot.slane %v2780_v49, %v3141_v14  ;;  %v3235_v26 = vrot.slane %v2780_v49, %v3145_v16  ;;  %v3264_v49 = vrot.slane %v2786_v28, %v3139_v13 }
  0x7e   :  { %v197_v36 = vpop.permute.xlu1 %196  ;;  %v195_v37 = vpop.permute.xlu0 %194  ;;  %v83_v38 = vpack.c.bf16 %v78_v34, %v78_v34  ;;  %v85_v39 = vpack.c.bf16 %v80_v35, %v80_v35  ;;  %v82_v40 = vpack.c.bf16 %v77_v32, %v77_v32  ;;  %v84_v41 = vpack.c.bf16 %v79_v33, %v79_v33 }
  0x7f   :  { %v205_v42 = vsel %vm202_vm1, %v195_v37, %v197_v36  ;;  %3985 = vst [vmem:[#allocation10_spill] sm:$0xff] %v3264_v49 }
  0x80   :  { %v231_v45 = vmul.f32 %v3168_v27, %v205_v42  ;;  %2770 = vmatprep.subr.msk.bf16.mxu0 %vm90_vm2, %v83_v38  ;;  %2772 = vmatprep.subr.msk.bf16.mxu1 %vm90_vm2, %v85_v39  ;;  %v92_v46 = vsel %vm90_vm2, %v82_v40, 0  ;;  %v98_v47 = vsel %vm90_vm2, %v84_v41, 0 }
  0x81   :  { %118 = vmatpush1.bf16.msra.mxu0 %v92_v46  ;;  %159 = vmatpush1.bf16.msra.mxu1 %v98_v47 }
  0x82   :  { %v237_v51 = vpack.c.bf16 %v231_v45, %v231_v45  ;;  %v201_v52 = vpop.permute.xlu1 %200  ;;  %v199_v53 = vpop.permute.xlu0 %198 }
  0x83   :  { %v206_v54 = vsel %vm202_vm1, %v201_v52, %v195_v37  ;;  %v203_v55 = vsel %vm202_vm1, %v199_v53, %v201_v52  ;;  %v204_v56 = vsel %vm202_vm1, %v197_v36, %v199_v53  ;;  %v3250_v36 = vrot.slane %v2786_v28, %v3143_v15 }
  0x84   :  { %v230_v58 = vmul.f32 %v3185_v43, %v206_v54  ;;  %v232_v59 = vmul.f32 %v3188_v44, %v204_v56  ;;  %v233_v60 = vmul.f32 %v3196_v48, %v203_v55  ;;  %2771 = vmatmul.mubr.msk.bf16.vlgmr.msra.gmra.mxu0 %vm86_vm3, %v81_v50  ;;  %2773 = vmatmul.mubr.msk.bf16.vlgmr.msra.gmra.mxu1 %vm86_vm3, %v81_v50  ;;  %v2797_v55 = vld [vmem:[%s3953_s1 + $0x5] ss:$8 sm:$0xf]  ;;  %v2781_v56 = vld [vmem:[%s3954_s2 + $0x8] sm:$0xf] }
  0x85   :  { %2776 = vmatprep.subr.msk.bf16.mxu0 %vm90_vm2, %v237_v51  ;;  %287 = vmatprep.mubr.bf16.mxu0 %v3961_v8  ;;  %3984 = vst [vmem:[#allocation9_spill] sm:$0xff] %v3250_v36  ;;  %v3267_v50 = vrot.slane %v2786_v28, %v3141_v14  ;;  %v3274_v54 = vrot.slane %v2786_v28, %v3145_v16 }
  0x86   :  { %v236_v61 = vpack.c.bf16 %v230_v58, %v230_v58  ;;  %v238_v62 = vpack.c.bf16 %v232_v59, %v232_v59  ;;  %v239_v63 = vpack.c.bf16 %v233_v60, %v233_v60  ;;  %v344_v9 = vpop.permute.xlu1 %343  ;;  %v342_v10 = vpop.permute.xlu0 %341  ;;  %328 = vmatprep.mubr.bf16.mxu1 %v3961_v8  ;;  %v637_v28 = vpack.c.bf16 %v3054_v4, %v3054_v4 }
  0x87   :  { %v352_v11 = vsel %vm349_vm4, %v342_v10, %v344_v9 }
  0x88   :  { %v378_v19 = vmul.f32 %v3211_v57, %v352_v11  ;;  %2778 = vmatprep.subr.msk.bf16.mxu1 %vm90_vm2, %v239_v63  ;;  %v244_v20 = vsel %vm90_vm2, %v236_v61, 0  ;;  %v250_v25 = vsel %vm90_vm2, %v238_v62, 0 }
  0x89   :  { %270 = vmatpush1.bf16.msra.mxu0 %v244_v20  ;;  %311 = vmatpush1.bf16.msra.mxu1 %v250_v25  ;;  %v638_v20 = vpack.c.bf16 %v3069_v7, %v3069_v7  ;;  %v640_v25 = vpack.c.bf16 %v3066_v6, %v3066_v6  ;;  %v3311_v7 = vrot.slane %v2797_v55, %v3145_v16 }
  0x8a   :  { %v384_v30 = vpack.c.bf16 %v378_v19, %v378_v19  ;;  %v348_v31 = vpop.permute.xlu1 %347  ;;  %v346_v32 = vpop.permute.xlu0 %345 }
  0x8b   :  { %v353_v33 = vsel %vm349_vm4, %v348_v31, %v342_v10  ;;  %v350_v34 = vsel %vm349_vm4, %v346_v32, %v348_v31  ;;  %v351_v35 = vsel %vm349_vm4, %v344_v9, %v346_v32  ;;  %v3289_v9 = vrot.slane %v2797_v55, %v3139_v13 }
  0x8c   :  { %v377_v37 = vmul.f32 %v3225_v17, %v353_v33  ;;  %v379_v38 = vmul.f32 %v3228_v18, %v351_v35  ;;  %v380_v39 = vmul.f32 %v3235_v26, %v350_v34  ;;  %2777 = vmatmul.mubr.msk.bf16.vlgmr.msra.gmra.mxu0 %vm86_vm3, %v2775_v29  ;;  %2779 = vmatmul.mubr.msk.bf16.vlgmr.msra.gmra.mxu1 %vm86_vm3, %v2775_v29 }
  0x8d   :  { %2782 = vmatprep.subr.msk.bf16.mxu0 %vm90_vm2, %v384_v30  ;;  %434 = vmatprep.mubr.bf16.mxu0 %v3961_v8  ;;  %3986 = vst [vmem:[#allocation11_spill] sm:$0xff] %v3289_v9  ;;  %v639_v34 = vpack.c.bf16 %v3051_v3, %v3051_v3 }
  0x8e   :  { %v383_v40 = vpack.c.bf16 %v377_v37, %v377_v37  ;;  %v385_v41 = vpack.c.bf16 %v379_v38, %v379_v38  ;;  %v386_v42 = vpack.c.bf16 %v380_v39, %v380_v39  ;;  %v491_v45 = vpop.permute.xlu1 %490  ;;  %v489_v46 = vpop.permute.xlu0 %488  ;;  %475 = vmatprep.mubr.bf16.mxu1 %v3961_v8  ;;  %v3317_v37 = vrot.slane %v2797_v55, %v3143_v15  ;;  %v2787_v39 = vld [vmem:[%s3954_s2 + $0xc] sm:$0xf] }
  0x8f   :  { %v499_v47 = vsel %vm496_vm5, %v489_v46, %v491_v45  ;;  %v3320_v38 = vrot.slane %v2797_v55, %v3141_v14 }
  0x90   :  { %v525_v51 = vmul.f32 %v3250_v36, %v499_v47  ;;  %2784 = vmatprep.subr.msk.bf16.mxu1 %vm90_vm2, %v386_v42  ;;  %v391_v52 = vsel %vm90_vm2, %v383_v40, 0  ;;  %v397_v53 = vsel %vm90_vm2, %v385_v41, 0  ;;  %3987 = vst [vmem:[#allocation12_spill] sm:$0xff] %v3317_v37  ;;  %v645_v42 = vsel %vm90_vm2, %v637_v28, 0 }
  0x91   :  { %417 = vmatpush1.bf16.msra.mxu0 %v391_v52  ;;  %458 = vmatpush1.bf16.msra.mxu1 %v397_v53 }
  0x92   :  { %v531_v58 = vpack.c.bf16 %v525_v51, %v525_v51  ;;  %v495_v59 = vpop.permute.xlu1 %494  ;;  %v493_v60 = vpop.permute.xlu0 %492 }
  0x93   :  { %v500_v61 = vsel %vm496_vm5, %v495_v59, %v489_v46  ;;  %v497_v62 = vsel %vm496_vm5, %v493_v60, %v495_v59  ;;  %v498_v63 = vsel %vm496_vm5, %v491_v45, %v493_v60  ;;  %v651_v45 = vsel %vm90_vm2, %v639_v34, 0  ;;  %v2803_v46 = vld [vmem:[%s3953_s1 + $0x6] ss:$8 sm:$0xf] }
  0x94   :  { %v524_v10 = vmul.f32 %v3264_v49, %v500_v61  ;;  %v526_v11 = vmul.f32 %v3267_v50, %v498_v63  ;;  %v527_v19 = vmul.f32 %v3274_v54, %v497_v62  ;;  %2783 = vmatmul.mubr.msk.bf16.vlgmr.msra.gmra.mxu0 %vm86_vm3, %v2781_v56  ;;  %2785 = vmatmul.mubr.msk.bf16.vlgmr.msra.gmra.mxu1 %vm86_vm3, %v2781_v56  ;;  %v2809_v34 = vld [vmem:[%s3953_s1 + $0x7] ss:$8 sm:$0xf] }
  0x95   :  { %2788 = vmatprep.subr.msk.bf16.mxu0 %vm90_vm2, %v531_v58  ;;  %581 = vmatprep.mubr.bf16.mxu0 %v3961_v8  ;;  %v3346_v59 = vrot.slane %v2803_v46, %v3139_v13 }
  0x96   :  { %v530_v29 = vpack.c.bf16 %v524_v10, %v524_v10  ;;  %v532_v30 = vpack.c.bf16 %v526_v11, %v526_v11  ;;  %v533_v31 = vpack.c.bf16 %v527_v19, %v527_v19  ;;  %v745_v32 = vpop.permute.xlu1 %744  ;;  %v743_v33 = vpop.permute.xlu0 %742  ;;  %622 = vmatprep.mubr.bf16.mxu1 %v3961_v8  ;;  %v3355_v19 = vrot.slane %v2803_v46, %v3145_v16 }
  0x97   :  { %v753_v35 = vsel %vm750_vm6, %v743_v33, %v745_v32  ;;  %3988 = vst [vmem:[#allocation13_spill] sm:$0xff] %v3346_v59 }
  0x98   :  { %2790 = vmatprep.subr.msk.bf16.mxu1 %vm90_vm2, %v533_v31  ;;  %v538_v4 = vsel %vm90_vm2, %v530_v29, 0  ;;  %v544_v6 = vsel %vm90_vm2, %v532_v30, 0  ;;  %v778_v3 = vmul.f32 %v3289_v9, %v753_v35  ;;  %v2792_v29 = vld [vmem:[%s3954_s2 + $0x10] sm:$0xf] }
  0x99   :  { %564 = vmatpush1.bf16.msra.mxu0 %v538_v4  ;;  %605 = vmatpush1.bf16.msra.mxu1 %v544_v6 }
  0x9a   :  { %v749_v40 = vpop.permute.xlu1 %748  ;;  %v747_v41 = vpop.permute.xlu0 %746  ;;  %2793 = vmatprep.subr.msk.bf16.mxu0 %vm90_vm2, %v638_v20  ;;  %2795 = vmatprep.subr.msk.bf16.mxu1 %vm90_vm2, %v640_v25  ;;  %v784_v58 = vpack.c.bf16 %v778_v3, %v778_v3  ;;  %v3358_v20 = vrot.slane %v2803_v46, %v3143_v15  ;;  %v3361_v25 = vrot.slane %v2803_v46, %v3141_v14 }
  0x9b   :  { %v754_v47 = vsel %vm750_vm6, %v749_v40, %v743_v33  ;;  %v751_v51 = vsel %vm750_vm6, %v747_v41, %v749_v40  ;;  %v752_v52 = vsel %vm750_vm6, %v745_v32, %v747_v41 }
  0x9c   :  { %2789 = vmatmul.mubr.msk.bf16.vlgmr.msra.gmra.mxu0 %vm86_vm3, %v2787_v39  ;;  %2791 = vmatmul.mubr.msk.bf16.vlgmr.msra.gmra.mxu1 %vm86_vm3, %v2787_v39  ;;  %v781_v53 = vmul.f32 %v3311_v7, %v754_v47  ;;  %v779_v55 = vmul.f32 %v3317_v37, %v752_v52  ;;  %v780_v56 = vmul.f32 %v3320_v38, %v751_v51  ;;  %v792_v30 = vsel %vm90_vm2, %v784_v58, 0 }
  0x9d   :  { %671 = vmatpush1.bf16.msra.mxu0 %v645_v42  ;;  %712 = vmatpush1.bf16.msra.mxu1 %v651_v45  ;;  %3989 = vst [vmem:[#allocation14_spill] sm:$0xff] %v3358_v20  ;;  %v3385_v42 = vrot.slane %v2809_v34, %v3139_v13  ;;  %v3400_v58 = vrot.slane %v2809_v34, %v3141_v14 }
  0x9e   :  { %v787_v60 = vpack.c.bf16 %v781_v53, %v781_v53  ;;  %v785_v61 = vpack.c.bf16 %v779_v55, %v779_v55  ;;  %v786_v62 = vpack.c.bf16 %v780_v56, %v780_v56  ;;  %v892_v63 = vpop.permute.xlu1 %891  ;;  %v890_v10 = vpop.permute.xlu0 %889  ;;  %688 = vmatprep.mubr.bf16.mxu0 %v3961_v8  ;;  %729 = vmatprep.mubr.bf16.mxu1 %v3961_v8 }
  0x9f   :  { %v900_v11 = vsel %vm897_vm7, %v890_v10, %v892_v63  ;;  %3990 = vst [vmem:[#allocation15_spill] sm:$0xff] %v3385_v42  ;;  %v3394_v55 = vrot.slane %v2809_v34, %v3145_v16  ;;  %v3397_v56 = vrot.slane %v2809_v34, %v3143_v15  ;;  %3992 = vst [vmem:[#allocation17_spill] sm:$0xff] %v3400_v58 }
  0xa0   :  { %2799 = vmatprep.subr.msk.bf16.mxu0 %vm90_vm2, %v785_v61  ;;  %2801 = vmatprep.subr.msk.bf16.mxu1 %vm90_vm2, %v787_v60  ;;  %v925_v28 = vmul.f32 %v3346_v59, %v900_v11  ;;  %v798_v33 = vsel %vm90_vm2, %v786_v62, 0  ;;  %v2798_v61 = vld [vmem:[%s3954_s2 + $0x14] sm:$0xf] }
  0xa1   :  { %3991 = vst [vmem:[#allocation16_spill] sm:$0xff] %v3397_v56 }
  0xa2   :  { %v896_v31 = vpop.permute.xlu1 %895  ;;  %v894_v32 = vpop.permute.xlu0 %893  ;;  %v931_v41 = vpack.c.bf16 %v925_v28, %v925_v28  ;;  %v2815_v28 = vld [vmem:[%s3953_s1 + $0x20] ss:$8 sm:$0xf] }
  0xa3   :  { %v901_v35 = vsel %vm897_vm7, %v896_v31, %v890_v10  ;;  %v898_v4 = vsel %vm897_vm7, %v894_v32, %v896_v31  ;;  %v899_v6 = vsel %vm897_vm7, %v892_v63, %v894_v32 }
  0xa4   :  { %2794 = vmatmul.mubr.msk.bf16.vlgmr.msra.gmra.mxu0 %vm86_vm3, %v2792_v29  ;;  %2796 = vmatmul.mubr.msk.bf16.vlgmr.msra.gmra.mxu1 %vm86_vm3, %v2792_v29  ;;  %v928_v3 = vmul.f32 %v3355_v19, %v901_v35  ;;  %v926_v39 = vmul.f32 %v3358_v20, %v899_v6  ;;  %v927_v40 = vmul.f32 %v3361_v25, %v898_v4  ;;  %v939_v62 = vsel %vm90_vm2, %v931_v41, 0 }
  0xa5   :  { %818 = vmatpush1.bf16.msra.mxu0 %v792_v30  ;;  %859 = vmatpush1.bf16.msra.mxu1 %v798_v33  ;;  %v3424_v4 = vrot.slane %v2815_v28, %v3139_v13  ;;  %v3436_v13 = vrot.slane %v2815_v28, %v3143_v15 }
  0xa6   :  { %v934_v45 = vpack.c.bf16 %v928_v3, %v928_v3  ;;  %v932_v46 = vpack.c.bf16 %v926_v39, %v926_v39  ;;  %v933_v47 = vpack.c.bf16 %v927_v40, %v927_v40  ;;  %v1039_v51 = vpop.permute.xlu1 %1038  ;;  %v1037_v52 = vpop.permute.xlu0 %1036  ;;  %835 = vmatprep.mubr.bf16.mxu0 %v3961_v8  ;;  %876 = vmatprep.mubr.bf16.mxu1 %v3961_v8 }
  0xa7   :  { %v1047_v53 = vsel %vm1044_vm8, %v1037_v52, %v1039_v51  ;;  %3993 = vst [vmem:[#allocation18_spill] sm:$0xff] %v3424_v4  ;;  %3995 = vst [vmem:[#allocation20_spill] sm:$0xff] %v3436_v13 }
  0xa8   :  { %2805 = vmatprep.subr.msk.bf16.mxu0 %vm90_vm2, %v932_v46  ;;  %2807 = vmatprep.subr.msk.bf16.mxu1 %vm90_vm2, %v934_v45  ;;  %v1072_v60 = vmul.f32 %v3385_v42, %v1047_v53  ;;  %v945_v11 = vsel %vm90_vm2, %v933_v47, 0  ;;  %v3433_v46 = vrot.slane %v2815_v28, %v3145_v16  ;;  %v3439_v47 = vrot.slane %v2815_v28, %v3141_v14 }
  0xaa   :  { %v1043_v63 = vpop.permute.xlu1 %1042  ;;  %v1041_v10 = vpop.permute.xlu0 %1040  ;;  %v1078_v35 = vpack.c.bf16 %v1072_v60, %v1072_v60  ;;  %3994 = vst [vmem:[#allocation19_spill] sm:$0xff] %v3433_v46  ;;  %3996 = vst [vmem:[#allocation21_spill] sm:$0xff] %v3439_v47 }
  0xab   :  { %v1048_v29 = vsel %vm1044_vm8, %v1043_v63, %v1037_v52  ;;  %v1045_v30 = vsel %vm1044_vm8, %v1041_v10, %v1043_v63  ;;  %v1046_v31 = vsel %vm1044_vm8, %v1039_v51, %v1041_v10  ;;  %v2804_v52 = vld [vmem:[%s3954_s2 + $0x18] sm:$0xf] }
  0xac   :  { %2800 = vmatmul.mubr.msk.bf16.vlgmr.msra.gmra.mxu0 %vm86_vm3, %v2798_v61  ;;  %2802 = vmatmul.mubr.msk.bf16.vlgmr.msra.gmra.mxu1 %vm86_vm3, %v2798_v61  ;;  %v1075_v32 = vmul.f32 %v3394_v55, %v1048_v29  ;;  %v1073_v33 = vmul.f32 %v3397_v56, %v1046_v31  ;;  %v1074_v34 = vmul.f32 %v3400_v58, %v1045_v30  ;;  %v1086_v53 = vsel %vm90_vm2, %v1078_v35, 0  ;;  %v2816_v35 = vld [vmem:[%s3954_s2 + $0x20] sm:$0xf] }
  0xad   :  { %965 = vmatpush1.bf16.msra.mxu0 %v939_v62  ;;  %1006 = vmatpush1.bf16.msra.mxu1 %v945_v11 }
  0xae   :  { %v1081_v6 = vpack.c.bf16 %v1075_v32, %v1075_v32  ;;  %v1079_v3 = vpack.c.bf16 %v1073_v33, %v1073_v33  ;;  %v1080_v39 = vpack.c.bf16 %v1074_v34, %v1074_v34  ;;  %v1186_v40 = vpop.permute.xlu1 %1185  ;;  %v1184_v41 = vpop.permute.xlu0 %1183  ;;  %982 = vmatprep.mubr.bf16.mxu0 %v3961_v8  ;;  %1023 = vmatprep.mubr.bf16.mxu1 %v3961_v8  ;;  %v2810_v32 = vld [vmem:[%s3954_s2 + $0x1c] sm:$0xf] }
  0xaf   :  { %v1194_v45 = vsel %vm1191_vm9, %v1184_v41, %v1186_v40 }
  0xb0   :  { %2811 = vmatprep.subr.msk.bf16.mxu0 %vm90_vm2, %v1079_v3  ;;  %2813 = vmatprep.subr.msk.bf16.mxu1 %vm90_vm2, %v1081_v6  ;;  %v1219_v51 = vmul.f32 %v3424_v4, %v1194_v45  ;;  %v1092_v62 = vsel %vm90_vm2, %v1080_v39, 0  ;;  %v1337_v6 = vpack.c.bf16 %v3059_v5, %v3059_v5  ;;  %v1339_v3 = vpack.c.bf16 %v3048_v2, %v3048_v2  ;;  %v1335_v2 = vld [vmem:[%s3958_s6] sm:$0xf] }
  0xb1   :  { %v1336_v39 = vpack.c.bf16 %v3043_v1, %v3043_v1 }
  0xb2   :  { %v1190_v60 = vpop.permute.xlu1 %1189  ;;  %v1188_v61 = vpop.permute.xlu0 %1187  ;;  %v1225_v28 = vpack.c.bf16 %v1219_v51, %v1219_v51 }
  0xb3   :  { %v1195_v16 = vsel %vm1191_vm9, %v1190_v60, %v1184_v41  ;;  %v1192_v15 = vsel %vm1191_vm9, %v1188_v61, %v1190_v60  ;;  %v1193_v14 = vsel %vm1191_vm9, %v1186_v40, %v1188_v61  ;;  %v1338_v40 = vpack.c.bf16 %v3038_v0, %v3038_v0 }
  0xb4   :  { %2806 = vmatmul.mubr.msk.bf16.vlgmr.msra.gmra.mxu0 %vm86_vm3, %v2804_v52  ;;  %2808 = vmatmul.mubr.msk.bf16.vlgmr.msra.gmra.mxu1 %vm86_vm3, %v2804_v52  ;;  %v1222_v63 = vmul.f32 %v3433_v46, %v1195_v16  ;;  %v1220_v10 = vmul.f32 %v3436_v13, %v1193_v14  ;;  %v1221_v11 = vmul.f32 %v3439_v47, %v1192_v15  ;;  %v1233_v33 = vsel %vm90_vm2, %v1225_v28, 0 }
  0xb5   :  { %1112 = vmatpush1.bf16.msra.mxu0 %v1086_v53  ;;  %1153 = vmatpush1.bf16.msra.mxu1 %v1092_v62  ;;  %v1344_v41 = vsel %vm90_vm2, %v1336_v39, 0  ;;  %v1350_v45 = vsel %vm90_vm2, %v1338_v40, 0 }
  0xb6   :  { %v1228_v29 = vpack.c.bf16 %v1222_v63, %v1222_v63  ;;  %v1226_v30 = vpack.c.bf16 %v1220_v10, %v1220_v10  ;;  %v1227_v31 = vpack.c.bf16 %v1221_v11, %v1221_v11  ;;  %1129 = vmatprep.mubr.bf16.mxu0 %v3961_v8  ;;  %1170 = vmatprep.mubr.bf16.mxu1 %v3961_v8 }
  0xb8   :  { %2817 = vmatprep.subr.msk.bf16.mxu0 %vm90_vm2, %v1226_v30  ;;  %2819 = vmatprep.subr.msk.bf16.mxu1 %vm90_vm2, %v1228_v29  ;;  %v1239_v34 = vsel %vm90_vm2, %v1227_v31, 0 }
  0xbc   :  { %2812 = vmatmul.mubr.msk.bf16.vlgmr.msra.gmra.mxu0 %vm86_vm3, %v2810_v32  ;;  %2814 = vmatmul.mubr.msk.bf16.vlgmr.msra.gmra.mxu1 %vm86_vm3, %v2810_v32 }
  0xbd   :  { %1259 = vmatpush1.bf16.msra.mxu0 %v1233_v33  ;;  %1300 = vmatpush1.bf16.msra.mxu1 %v1239_v34 }
  0xbe   :  { %1276 = vmatprep.mubr.bf16.mxu0 %v3961_v8  ;;  %1317 = vmatprep.mubr.bf16.mxu1 %v3961_v8 }
  0xbf   :  { %2821 = vmatprep.subr.msk.bf16.mxu0 %vm90_vm2, %v1337_v6  ;;  %2823 = vmatprep.subr.msk.bf16.mxu1 %vm90_vm2, %v1339_v3  ;;  %v188_v60 = vpop.permute.xlu0 %187 }
  0xc4   :  { %2818 = vmatmul.mubr.msk.bf16.vlgmr.msra.gmra.mxu0 %vm86_vm3, %v2816_v35  ;;  %2820 = vmatmul.mubr.msk.bf16.vlgmr.msra.gmra.mxu1 %vm86_vm3, %v2816_v35 }
  0xc5   :  { %1387 = vmatprep.mubr.bf16.mxu0 %v3961_v8  ;;  %1428 = vmatprep.mubr.bf16.mxu1 %v3961_v8 }
  0xc6   :  { %1370 = vmatpush1.bf16.msra.mxu0 %v1344_v41  ;;  %1411 = vmatpush1.bf16.msra.mxu1 %v1350_v45 }
  0xcc   :  { %2822 = vmatmul.mubr.msk.bf16.vlgmr.msra.gmra.mxu0 %vm86_vm3, %v1335_v2  ;;  %2824 = vmatmul.mubr.msk.bf16.vlgmr.msra.gmra.mxu1 %vm86_vm3, %v1335_v2 }
  0xcd   :  { %1555 = vmatprep.mubr.bf16.mxu1 %v3961_v8  ;;  %1514 = vmatprep.mubr.bf16.mxu0 %v3961_v8 }
 0x144   :  { %v137_v0 = vpop.f32.mrf.mxu0  ;;  %v178_v1 = vpop.f32.mrf.mxu1 }
 0x145   :  { %v190_v16 = vadd.f32 %v188_v60, %v137_v0  ;;  %v192_v56 = vadd.f32 %v188_v60, %v178_v1 }
 0x146   :  { %v139_v5 = vpop.f32.mrf.mxu0  ;;  %v180_v51 = vpop.f32.mrf.mxu1 }
 0x147   :  { %v191_v9 = vadd.f32 %v188_v60, %v139_v5 }
 0x148   :  { %v141_v52 = vpop.f32.mrf.mxu0  ;;  %v182_v53 = vpop.f32.mrf.mxu1 }
 0x14a   :  { %v142_v61 = vpop.f32.mrf.mxu0  ;;  %v183_v62 = vpop.f32.mrf.mxu1 }
 0x14c   :  { %v289_v15 = vpop.f32.mrf.mxu0  ;;  %v330_v14 = vpop.f32.mrf.mxu1 }
 0x14d   :  { %v3497_v63 = vadd.f32 %v289_v15, %v190_v16 }
 0x14e   :  { %v291_v10 = vpop.f32.mrf.mxu0  ;;  %v332_v11 = vpop.f32.mrf.mxu1 }
 0x14f   :  { %v338_v37 = vadd.f32 %v291_v10, %v191_v9 }
 0x150   :  { %v293_v28 = vpop.f32.mrf.mxu0  ;;  %v334_v29 = vpop.f32.mrf.mxu1 }
 0x152   :  { %v294_v30 = vpop.f32.mrf.mxu0  ;;  %v335_v31 = vpop.f32.mrf.mxu1 }
 0x154   :  { %v3499_v32 = vpop.f32.mrf.mxu0  ;;  %v477_v33 = vpop.f32.mrf.mxu1 }
 0x156   :  { %v438_v34 = vpop.f32.mrf.mxu0  ;;  %v479_v35 = vpop.f32.mrf.mxu1 }
 0x158   :  { %v440_v6 = vpop.f32.mrf.mxu0  ;;  %v481_v3 = vpop.f32.mrf.mxu1 }
 0x15a   :  { %v441_v39 = vpop.f32.mrf.mxu0  ;;  %v482_v40 = vpop.f32.mrf.mxu1 }
 0x15c   :  { %v3501_v41 = vpop.f32.mrf.mxu0  ;;  %v624_v45 = vpop.f32.mrf.mxu1 }
 0x15e   :  { %v585_v2 = vpop.f32.mrf.mxu0  ;;  %v626_v0 = vpop.f32.mrf.mxu1 }
 0x160   :  { %v587_v52 = vpop.f32.mrf.mxu0  ;;  %v628_v53 = vpop.f32.mrf.mxu1 }
 0x162   :  { %v588_v61 = vpop.f32.mrf.mxu0  ;;  %v629_v62 = vpop.f32.mrf.mxu1 }
 0x164   :  { %v3503_v16 = vpop.f32.mrf.mxu0  ;;  %v731_v15 = vpop.f32.mrf.mxu1 }
 0x166   :  { %v692_v28 = vpop.f32.mrf.mxu0  ;;  %v733_v29 = vpop.f32.mrf.mxu1 }
 0x168   :  { %v694_v30 = vpop.f32.mrf.mxu0  ;;  %v735_v31 = vpop.f32.mrf.mxu1 }
 0x169   :  { %v193_v30 = vadd.f32 %v188_v60, %v180_v51  ;;  %v339_v31 = vadd.f32 %v330_v14, %v192_v56 }
 0x16a   :  { %v695_v6 = vpop.f32.mrf.mxu0  ;;  %v736_v3 = vpop.f32.mrf.mxu1 }
 0x16b   :  { %v340_v49 = vadd.f32 %v332_v11, %v193_v30  ;;  %v486_v47 = vadd.f32 %v477_v33, %v339_v31 }
 0x16c   :  { %v3505_v39 = vpop.f32.mrf.mxu0  ;;  %v878_v40 = vpop.f32.mrf.mxu1 }
 0x16e   :  { %v839_v8 = vpop.f32.mrf.mxu0  ;;  %v880_v4 = vpop.f32.mrf.mxu1 }
 0x170   :  { %v841_v13 = vpop.f32.mrf.mxu0  ;;  %v882_v42 = vpop.f32.mrf.mxu1 }
 0x171   :  { %v485_v13 = vadd.f32 %v438_v34, %v338_v37  ;;  %v487_v42 = vadd.f32 %v479_v35, %v340_v49 }
 0x172   :  { %v842_v52 = vpop.f32.mrf.mxu0  ;;  %v883_v53 = vpop.f32.mrf.mxu1 }
 0x173   :  { %v633_v52 = vadd.f32 %v624_v45, %v486_v47  ;;  %v632_v17 = vadd.f32 %v585_v2, %v485_v13  ;;  %v634_v27 = vadd.f32 %v626_v0, %v487_v42 }
 0x174   :  { %v3507_v61 = vpop.f32.mrf.mxu0  ;;  %v1025_v62 = vpop.f32.mrf.mxu1 }
 0x175   :  { %v740_v1 = vadd.f32 %v731_v15, %v633_v52  ;;  %v739_v5 = vadd.f32 %v692_v28, %v632_v17  ;;  %v741_v51 = vadd.f32 %v733_v29, %v634_v27 }
 0x176   :  { %v986_v59 = vpop.f32.mrf.mxu0  ;;  %v1027_v20 = vpop.f32.mrf.mxu1 }
 0x177   :  { %v887_v56 = vadd.f32 %v878_v40, %v740_v1  ;;  %v886_v9 = vadd.f32 %v839_v8, %v739_v5  ;;  %v888_v10 = vadd.f32 %v880_v4, %v741_v51 }
 0x178   :  { %v988_v6 = vpop.f32.mrf.mxu0  ;;  %v1029_v3 = vpop.f32.mrf.mxu1 }
 0x179   :  { %v1034_v11 = vadd.f32 %v1025_v62, %v887_v56  ;;  %v1033_v37 = vadd.f32 %v986_v59, %v886_v9  ;;  %v1035_v49 = vadd.f32 %v1027_v20, %v888_v10  ;;  %v1334_v6 = vld [vmem:[%s3957_s5] sm:$0xff] }
 0x17a   :  { %v989_v36 = vpop.f32.mrf.mxu0  ;;  %v1030_v46 = vpop.f32.mrf.mxu1 }
 0x17c   :  { %v1131_v53 = vpop.f32.mrf.mxu0  ;;  %v1172_v57 = vpop.f32.mrf.mxu1 }
 0x17d   :  { %v1181_v47 = vadd.f32 %v1172_v57, %v1034_v11 }
 0x17e   :  { %v1133_v43 = vpop.f32.mrf.mxu0  ;;  %v1174_v58 = vpop.f32.mrf.mxu1 }
 0x17f   :  { %v1180_v35 = vadd.f32 %v1133_v43, %v1033_v37  ;;  %v1182_v45 = vadd.f32 %v1174_v58, %v1035_v49  ;;  %v484_v43 = vadd.f32 %v3499_v32, %v3497_v63 }
 0x180   :  { %v1135_v60 = vpop.f32.mrf.mxu0  ;;  %v1176_v14 = vpop.f32.mrf.mxu1 }
 0x181   :  { %v631_v58 = vadd.f32 %v3501_v41, %v484_v43 }
 0x182   :  { %v1136_v36 = vpop.f32.mrf.mxu0  ;;  %v1177_v46 = vpop.f32.mrf.mxu1 }
 0x183   :  { %v738_v40 = vadd.f32 %v3503_v16, %v631_v58 }
 0x184   :  { %v1278_v33 = vpop.f32.mrf.mxu0  ;;  %v1319_v34 = vpop.f32.mrf.mxu1 }
 0x185   :  { %v1328_v2 = vadd.f32 %v1319_v34, %v1181_v47  ;;  %v885_v62 = vadd.f32 %v3505_v39, %v738_v40 }
 0x186   :  { %v1280_v0 = vpop.f32.mrf.mxu0  ;;  %v1321_v15 = vpop.f32.mrf.mxu1 }
 0x187   :  { %v3509_v17 = vmax.f32 %v1328_v2, 0.0  ;;  %v1327_v27 = vadd.f32 %v1280_v0, %v1180_v35  ;;  %v1329_v28 = vadd.f32 %v1321_v15, %v1182_v45  ;;  %v1032_v63 = vadd.f32 %v3507_v61, %v885_v62 }
 0x188   :  { %v1282_v29 = vpop.f32.mrf.mxu0  ;;  %v1323_v8 = vpop.f32.mrf.mxu1  ;;  %v3997_v45 = vmov 0  }
 0x189   :  { %v3511_v4 = vmax.f32 %v1329_v28, 0.0  ;;  %1450 = vrot.lane.b32.xlu1 %v3509_v17, %s2979_s13  ;;  %v3515_v20 = vmax.f32 %v1327_v27, 0.0  ;;  %v1179_v32 = vadd.f32 %v1131_v53, %v1032_v63 }
 0x18a   :  { %v1283_v59 = vpop.f32.mrf.mxu0  ;;  %v1324_v57 = vpop.f32.mrf.mxu1 }
 0x18b   :  { %1452 = vrot.lane.b32.xlu0 %v3511_v4, %s2979_s13  ;;  %v1326_v41 = vadd.f32 %v1278_v33, %v1179_v32  ;;  %v3649_v59 = vld [vmem:[%s3956_s4 + $0x4] sm:$0xf] }
 0x18c   :  { %v3581_v39 = vpop.f32.mrf.mxu0  ;;  %v3583_v61 = vpop.f32.mrf.mxu1 }
 0x18d   :  { %1448 = vrot.lane.b32.xlu1 %v3515_v20, %s2979_s13  ;;  %v3541_v16 = vmax.f32 %v1326_v41, 0.0 }
 0x18e   :  { %v3587_v30 = vpop.f32.mrf.mxu1  ;;  %v3589_v31 = vpop.f32.mrf.mxu0 }
 0x18f   :  { %1572 = vrot.lane.b32.xlu0 %v3509_v17, %s2981_s0 }
 0x190   :  { %v1434_v3 = vpop.f32.mrf.mxu1  ;;  %v1393_v13 = vpop.f32.mrf.mxu0 }
 0x191   :  { %1570 = vrot.lane.b32.xlu1 %v3515_v20, %s2981_s0  ;;  %v3673_v3 = vld [vmem:[%s3956_s4 + $0x8] sm:$0xf] }
 0x192   :  { %v1435_v42 = vpop.f32.mrf.mxu1  ;;  %v1394_v52 = vpop.f32.mrf.mxu0 }
 0x193   :  { %1693 = vrot.lane.b32.xlu0 %v3515_v20, %s2982_s14 }
 0x195   :  { %1574 = vrot.lane.b32.xlu1 %v3511_v4, %s2981_s0 }
 0x197   :  { %1697 = vrot.lane.b32.xlu0 %v3511_v4, %s2982_s14 }
 0x199   :  { %1695 = vrot.lane.b32.xlu1 %v3509_v17, %s2982_s14 }
 0x19b   :  { %1818 = vrot.lane.b32.xlu0 %v3509_v17, %s2983_s15 }
 0x19d   :  { %1816 = vrot.lane.b32.xlu1 %v3515_v20, %s2983_s15 }
 0x19f   :  { %2044 = vrot.lane.b32.xlu0 %v3541_v16, %s2984_s16 }
 0x1a1   :  { %1820 = vrot.lane.b32.xlu1 %v3511_v4, %s2983_s15 }
 0x1a3   :  { %2050 = vrot.lane.b32.xlu0 %v3511_v4, %s2984_s16 }
 0x1a5   :  { %2048 = vrot.lane.b32.xlu1 %v3509_v17, %s2984_s16 }
 0x1a7   :  { %2171 = vrot.lane.b32.xlu0 %v3509_v17, %s2985_s17 }
 0x1a9   :  { %2167 = vrot.lane.b32.xlu1 %v3541_v16, %s2985_s17 }
 0x1ab   :  { %2290 = vrot.lane.b32.xlu0 %v3541_v16, %s2986_s18 }
 0x1ad   :  { %2173 = vrot.lane.b32.xlu1 %v3511_v4, %s2985_s17 }
 0x1af   :  { %2296 = vrot.lane.b32.xlu0 %v3511_v4, %s2986_s18 }
 0x1b1   :  { %2294 = vrot.lane.b32.xlu1 %v3509_v17, %s2986_s18 }
 0x1b3   :  { %2413 = vrot.lane.b32.xlu0 %v3541_v16, %s2987_s19 }
 0x1b5   :  { %1446 = vrot.lane.b32.xlu1 %v3541_v16, %s2979_s13 }
 0x1b7   :  { %2419 = vrot.lane.b32.xlu0 %v3511_v4, %s2987_s19 }
 0x1b9   :  { %2417 = vrot.lane.b32.xlu1 %v3509_v17, %s2987_s19 }
 0x1bb   :  { %1691 = vrot.lane.b32.xlu0 %v3541_v16, %s2982_s14 }
 0x1bd   :  { %1568 = vrot.lane.b32.xlu1 %v3541_v16, %s2981_s0 }
 0x1bf   :  { %2046 = vrot.lane.b32.xlu0 %v3515_v20, %s2984_s16 }
 0x1c1   :  { %1814 = vrot.lane.b32.xlu1 %v3541_v16, %s2983_s15 }
 0x1c3   :  { %2292 = vrot.lane.b32.xlu0 %v3515_v20, %s2986_s18 }
 0x1c5   :  { %2169 = vrot.lane.b32.xlu1 %v3515_v20, %s2985_s17 }
 0x1c7   :  { %1439 = vperm.xlu0 %2940, %v1334_v6  }
 0x1c9   :  { %2415 = vrot.lane.b32.xlu1 %v3515_v20, %s2987_s19 }
 0x1fb   :  { %v1451_v53 = vpop.permute.xlu1 %1450 }
 0x1fd   :  { %v3598_v1 = vpop.permute.xlu0 %1452 }
 0x1fe   :  { %v1454_v5 = vsel %vm50_vm0, %v1451_v53, %v3598_v1 }
 0x1ff   :  { %v1461_v51 = vmul.f32 %v1454_v5, %v3164_v24  ;;  %v3604_v56 = vpop.permute.xlu1 %1448 }
 0x200   :  { %v1455_v60 = vsel %vm50_vm0, %v3604_v56, %v1451_v53 }
 0x201   :  { %v1466_v14 = vpack.c.bf16 %v1461_v51, %v1461_v51  ;;  %v1460_v9 = vmul.f32 %v1455_v60, %v3158_v22  ;;  %v1573_v10 = vpop.permute.xlu0 %1572  ;;  %v3623_v22 = vld [vmem:[%s3956_s4] sm:$0xf] }
 0x203   :  { %v1465_v11 = vpack.c.bf16 %v1460_v9, %v1460_v9  ;;  %2827 = vmatprep.subr.msk.bf16.mxu1 %vm90_vm2, %v1466_v14  ;;  %v3611_v36 = vpop.permute.xlu1 %1570  ;;  %v1941_v9 = vpack.c.bf16 %v3509_v17, %v3509_v17 }
 0x204   :  { %v1577_v46 = vsel %vm202_vm1, %v3611_v36, %v1573_v10 }
 0x205   :  { %v1582_v24 = vmul.f32 %v1577_v46, %v3188_v44  ;;  %v3617_v37 = vpop.permute.xlu0 %1693  ;;  %v1477_v49 = vsel %vm90_vm2, %v1465_v11, 0 }
 0x206   :  { %1538 = vmatpush1.bf16.msra.mxu1 %v1477_v49 }
 0x207   :  { %v3625_v47 = vpop.permute.xlu1 %1574  ;;  %v1588_v34 = vpack.c.bf16 %v1582_v24, %v1582_v24 }
 0x208   :  { %v1576_v33 = vsel %vm202_vm1, %v1573_v10, %v3625_v47  ;;  %v3703_v10 = vld [vmem:[%s3956_s4 + $0xc] sm:$0xf] }
 0x209   :  { %v1583_v35 = vmul.f32 %v1576_v33, %v3196_v48  ;;  %v3631_v44 = vpop.permute.xlu0 %1697  ;;  %2828 = vmatmul.mubr.msk.bf16.vlgmr.msra.gmra.mxu1 %vm86_vm3, %v3623_v22  ;;  %v1600_v8 = vsel %vm90_vm2, %v1588_v34, 0 }
 0x20a   :  { %1678 = vmatprep.mubr.bf16.mxu1 %v3997_v45 }
 0x20b   :  { %v1589_v2 = vpack.c.bf16 %v1583_v35, %v1583_v35  ;;  %v1696_v0 = vpop.permute.xlu1 %1695 }
 0x20c   :  { %v1699_v15 = vsel %vm349_vm4, %v1696_v0, %v3631_v44  ;;  %v1700_v27 = vsel %vm349_vm4, %v3617_v37, %v1696_v0 }
 0x20d   :  { %v1705_v28 = vmul.f32 %v1700_v27, %v3228_v18  ;;  %v1706_v48 = vmul.f32 %v1699_v15, %v3235_v26  ;;  %v1819_v29 = vpop.permute.xlu0 %1818  ;;  %2832 = vmatprep.subr.msk.bf16.mxu1 %vm90_vm2, %v1589_v2  ;;  %v3722_v2 = vld [vmem:[%s3956_s4 + $0x10] sm:$0xf] }
 0x20e   :  { %1661 = vmatpush1.bf16.msra.mxu1 %v1600_v8 }
 0x20f   :  { %v1711_v57 = vpack.c.bf16 %v1705_v28, %v1705_v28  ;;  %v1712_v43 = vpack.c.bf16 %v1706_v48, %v1706_v48  ;;  %v3651_v58 = vpop.permute.xlu1 %1816 }
 0x210   :  { %v1823_v18 = vsel %vm496_vm5, %v3651_v58, %v1819_v29 }
 0x211   :  { %v1828_v26 = vmul.f32 %v1823_v18, %v3267_v50  ;;  %v3657_v40 = vpop.permute.xlu0 %2044  ;;  %2833 = vmatmul.mubr.msk.bf16.vlgmr.msra.gmra.mxu1 %vm86_vm3, %v3649_v59  ;;  %2837 = vmatprep.subr.msk.bf16.mxu1 %vm90_vm2, %v1712_v43  ;;  %v1723_v62 = vsel %vm90_vm2, %v1711_v57, 0 }
 0x212   :  { %1784 = vmatpush1.bf16.msra.mxu1 %v1723_v62  ;;  %1801 = vmatprep.mubr.bf16.mxu1 %v3997_v45 }
 0x213   :  { %v3664_v63 = vpop.permute.xlu1 %1820  ;;  %v1834_v41 = vpack.c.bf16 %v1828_v26, %v1828_v26 }
 0x214   :  { %v1822_v32 = vsel %vm496_vm5, %v1819_v29, %v3664_v63 }
 0x215   :  { %v1829_v50 = vmul.f32 %v1822_v32, %v3274_v54  ;;  %v2051_v6 = vpop.permute.xlu0 %2050  ;;  %v1846_v53 = vsel %vm90_vm2, %v1834_v41, 0  ;;  %v1942_v54 = vpack.c.bf16 %v3511_v4, %v3511_v4 }
 0x216   :  { %v2055_v5 = vsel %vm750_vm6, %v2051_v6, %v3657_v40 }
 0x217   :  { %v1835_v13 = vpack.c.bf16 %v1829_v50, %v1829_v50  ;;  %v3675_v42 = vpop.permute.xlu1 %2048  ;;  %v2059_v60 = vmul.f32 %v2055_v5, %v3311_v7  ;;  %v1953_v7 = vsel %vm90_vm2, %v1941_v9, 0 }
 0x218   :  { %v2052_v4 = vsel %vm750_vm6, %v3675_v42, %v2051_v6  ;;  %v3761_v6 = vld [vmem:[%s3956_s4 + $0x14] sm:$0xf] }
 0x219   :  { %v3677_v52 = vpop.permute.xlu0 %2171  ;;  %2838 = vmatmul.mubr.msk.bf16.vlgmr.msra.gmra.mxu1 %vm86_vm3, %v3673_v3  ;;  %2842 = vmatprep.subr.msk.bf16.mxu1 %vm90_vm2, %v1835_v13  ;;  %v2065_v46 = vpack.c.bf16 %v2059_v60, %v2059_v60  ;;  %v2058_v24 = vmul.f32 %v2052_v4, %v3320_v38  ;;  %v3999_v60 = vld [vmem:[#allocation6_spill] sm:$0xff] }
 0x21a   :  { %1907 = vmatpush1.bf16.msra.mxu1 %v1846_v53  ;;  %1924 = vmatprep.mubr.bf16.mxu1 %v3997_v45 }
 0x21b   :  { %2847 = vmatprep.subr.msk.bf16.mxu1 %vm90_vm2, %v1942_v54  ;;  %v3690_v51 = vpop.permute.xlu1 %2167  ;;  %v2064_v34 = vpack.c.bf16 %v2058_v24, %v2058_v24  ;;  %v4002_v24 = vld [vmem:[#allocation7_spill] sm:$0xff] }
 0x21d   :  { %v3693_v14 = vpop.permute.xlu0 %2290  ;;  %v2076_v57 = vsel %vm90_vm2, %v2064_v34, 0 }
 0x21f   :  { %v2174_v11 = vpop.permute.xlu1 %2173 }
 0x220   :  { %v2178_v17 = vsel %vm897_vm7, %v2174_v11, %v3690_v51  ;;  %v2175_v0 = vsel %vm897_vm7, %v3677_v52, %v2174_v11 }
 0x221   :  { %v2297_v49 = vpop.permute.xlu0 %2296  ;;  %2843 = vmatmul.mubr.msk.bf16.vlgmr.msra.gmra.mxu1 %vm86_vm3, %v3703_v10  ;;  %v2182_v38 = vmul.f32 %v2178_v17, %v3355_v19  ;;  %v2181_v43 = vmul.f32 %v2175_v0, %v3361_v25  ;;  %v4003_v0 = vld [vmem:[#allocation19_spill] sm:$0xff] }
 0x222   :  { %2014 = vmatpush1.bf16.msra.mxu1 %v1953_v7  ;;  %2031 = vmatprep.mubr.bf16.mxu1 %v3997_v45 }
 0x223   :  { %2852 = vmatprep.subr.msk.bf16.mxu1 %vm90_vm2, %v2065_v46  ;;  %v3714_v33 = vpop.permute.xlu1 %2294  ;;  %v2188_v28 = vpack.c.bf16 %v2182_v38, %v2182_v38  ;;  %v2187_v62 = vpack.c.bf16 %v2181_v43, %v2181_v43  ;;  %v4001_v46 = vld [vmem:[#allocation8_spill] sm:$0xff]  ;;  %v3801_v43 = vld [vmem:[%s3956_s4 + $0x18] sm:$0xf] }
 0x224   :  { %v2298_v32 = vsel %vm1044_vm8, %v3714_v33, %v2297_v49 }
 0x225   :  { %v3717_v35 = vpop.permute.xlu0 %2413 }
 0x227   :  { %v1447_v15 = vpop.permute.xlu1 %1446 }
 0x228   :  { %v1456_v27 = vsel %vm50_vm0, %v1447_v15, %v3604_v56  ;;  %v1457_v19 = vsel %vm50_vm0, %v3598_v1, %v1447_v15  ;;  %v2301_v56 = vsel %vm1044_vm8, %v2297_v49, %v3693_v14 }
 0x229   :  { %v1458_v48 = vmul.f32 %v1457_v19, %v3155_v21  ;;  %v1459_v29 = vmul.f32 %v1456_v27, %v3161_v23  ;;  %v2420_v8 = vpop.permute.xlu0 %2419  ;;  %2848 = vmatmul.mubr.msk.bf16.vlgmr.msra.gmra.mxu1 %vm86_vm3, %v3722_v2  ;;  %v2305_v23 = vmul.f32 %v2301_v56, %v3394_v55 }
 0x22a   :  { %2137 = vmatpush1.bf16.msra.mxu1 %v2076_v57  ;;  %2154 = vmatprep.mubr.bf16.mxu1 %v3997_v45  ;;  %v2424_v11 = vsel %vm1191_vm9, %v2420_v8, %v3717_v35 }
 0x22b   :  { %v1463_v1 = vpack.c.bf16 %v1458_v48, %v1458_v48  ;;  %v1464_v18 = vpack.c.bf16 %v1459_v29, %v1459_v29  ;;  %2857 = vmatprep.subr.msk.bf16.mxu1 %vm90_vm2, %v2188_v28  ;;  %v3744_v21 = vpop.permute.xlu1 %2417  ;;  %v2311_v54 = vpack.c.bf16 %v2305_v23, %v2305_v23  ;;  %v2428_v15 = vmul.f32 %v2424_v11, %v4003_v0  ;;  %v4004_v28 = vld [vmem:[#allocation9_spill] sm:$0xff]  ;;  %v4009_v11 = vld [vmem:[#allocation14_spill] sm:$0xff] }
 0x22c   :  { %v2421_v57 = vsel %vm1191_vm9, %v3744_v21, %v2420_v8 }
 0x22d   :  { %v1692_v26 = vpop.permute.xlu0 %1691  ;;  %2825 = vmatprep.subr.msk.bf16.mxu0 %vm90_vm2, %v1464_v18  ;;  %v1471_v25 = vsel %vm90_vm2, %v1463_v1, 0  ;;  %v2434_v56 = vpack.c.bf16 %v2428_v15, %v2428_v15  ;;  %v4005_v18 = vld [vmem:[#allocation21_spill] sm:$0xff] }
 0x22e   :  { %1497 = vmatpush1.bf16.msra.mxu0 %v1471_v25  ;;  %v1701_v41 = vsel %vm349_vm4, %v1692_v26, %v3617_v37  ;;  %v1702_v50 = vsel %vm349_vm4, %v3631_v44, %v1692_v26  ;;  %v3998_v37 = vld [vmem:[#allocation17_spill] sm:$0xff]  ;;  %v2427_v23 = vmul.f32 %v2421_v57, %v4005_v18  ;;  %v4006_v26 = vld [vmem:[#allocation10_spill] sm:$0xff] }
 0x22f   :  { %v1569_v55 = vpop.permute.xlu1 %1568  ;;  %v2304_v5 = vmul.f32 %v2298_v32, %v3998_v37  ;;  %v4000_v44 = vld [vmem:[#allocation5_spill] sm:$0xff]  ;;  %v1704_v49 = vmul.f32 %v1701_v41, %v4002_v24  ;;  %v1939_v37 = vpack.c.bf16 %v3541_v16, %v3541_v16 }
 0x230   :  { %v1578_v13 = vsel %vm202_vm1, %v1569_v55, %v3611_v36  ;;  %v1579_v53 = vsel %vm202_vm1, %v3625_v47, %v1569_v55  ;;  %v1703_v36 = vmul.f32 %v1702_v50, %v4001_v46  ;;  %v2199_v47 = vsel %vm90_vm2, %v2187_v62, 0  ;;  %v4010_v24 = vld [vmem:[#allocation13_spill] sm:$0xff] }
 0x231   :  { %v1580_v9 = vmul.f32 %v1579_v53, %v3999_v60  ;;  %v1581_v4 = vmul.f32 %v1578_v13, %v4000_v44  ;;  %2826 = vmatmul.mubr.msk.bf16.vlgmr.msra.gmra.mxu0 %vm86_vm3, %v3623_v22  ;;  %2853 = vmatmul.mubr.msk.bf16.vlgmr.msra.gmra.mxu1 %vm86_vm3, %v3761_v6  ;;  %v2310_v38 = vpack.c.bf16 %v2304_v5, %v2304_v5  ;;  %v2047_v41 = vpop.permute.xlu0 %2046  ;;  %v4008_v60 = vld [vmem:[#allocation11_spill] sm:$0xff]  ;;  %v2946_v18 = vld [vmem:[%s3959_s7 + $0x28] sm:$0xff]  }
 0x232   :  { %1637 = vmatprep.mubr.bf16.mxu0 %v3997_v45  ;;  %2260 = vmatpush1.bf16.msra.mxu1 %v2199_v47  ;;  %v1709_v27 = vpack.c.bf16 %v1703_v36, %v1703_v36  ;;  %v1710_v19 = vpack.c.bf16 %v1704_v49, %v1704_v49  ;;  %v2433_v62 = vpack.c.bf16 %v2427_v23, %v2427_v23  ;;  %v2947_v23 = vld [vmem:[%s3959_s7 + $0x60] sm:$0xff]  }
 0x233   :  { %v1586_v7 = vpack.c.bf16 %v1580_v9, %v1580_v9  ;;  %v1587_v17 = vpack.c.bf16 %v1581_v4, %v1581_v4  ;;  %v1815_v34 = vpop.permute.xlu1 %1814  ;;  %2862 = vmatprep.subr.msk.bf16.mxu1 %vm90_vm2, %v2311_v54  ;;  %2277 = vmatprep.mubr.bf16.mxu1 %v3997_v45  ;;  %v2322_v1 = vsel %vm90_vm2, %v2310_v38, 0  ;;  %v1940_v13 = vpack.c.bf16 %v3515_v20, %v3515_v20 }
 0x234   :  { %v1824_v22 = vsel %vm496_vm5, %v1815_v34, %v3651_v58  ;;  %v1825_v58 = vsel %vm496_vm5, %v3664_v63, %v1815_v34  ;;  %v1717_v63 = vsel %vm90_vm2, %v1709_v27, 0  ;;  %v2445_v55 = vsel %vm90_vm2, %v2433_v62, 0  ;;  %v2952_v62 = vld [vmem:[%s3959_s7 + $0x10] sm:$0xff]  }
 0x235   :  { %2830 = vmatprep.subr.msk.bf16.mxu0 %vm90_vm2, %v1587_v17  ;;  %v1827_v48 = vmul.f32 %v1824_v22, %v4004_v28  ;;  %v1594_v29 = vsel %vm90_vm2, %v1586_v7, 0  ;;  %v1826_v25 = vmul.f32 %v1825_v58, %v4006_v26  ;;  %v2053_v53 = vsel %vm750_vm6, %v2047_v41, %v3675_v42  ;;  %v2864_v42 = vld [vmem:[%s3956_s4 + $0x20] sm:$0xf]  ;;  %v2293_v36 = vpop.permute.xlu0 %2292 }
 0x236   :  { %1620 = vmatpush1.bf16.msra.mxu0 %v1594_v29  ;;  %v2054_v20 = vsel %vm750_vm6, %v3657_v40, %v2047_v41  ;;  %v1947_v4 = vsel %vm90_vm2, %v1939_v37, 0  ;;  %v2299_v7 = vsel %vm1044_vm8, %v2293_v36, %v3714_v33  ;;  %v4011_v17 = vld [vmem:[#allocation16_spill] sm:$0xff]  ;;  %v2300_v22 = vsel %vm1044_vm8, %v3693_v14, %v2293_v36  ;;  %v4014_v29 = vld [vmem:[#allocation18_spill] sm:$0xff] }
 0x237   :  { %2835 = vmatprep.subr.msk.bf16.mxu0 %vm90_vm2, %v1710_v19  ;;  %v1833_v8 = vpack.c.bf16 %v1827_v48, %v1827_v48  ;;  %v1832_v32 = vpack.c.bf16 %v1826_v25, %v1826_v25  ;;  %v2170_v5 = vpop.permute.xlu1 %2169  ;;  %v2056_v9 = vmul.f32 %v2054_v20, %v4008_v60  ;;  %v4013_v14 = vld [vmem:[#allocation20_spill] sm:$0xff]  ;;  %v2949_v25 = vld [vmem:[%s3959_s7 + $0x58] sm:$0xff]  }
 0x238   :  { %v2176_v16 = vsel %vm897_vm7, %v2170_v5, %v3677_v52  ;;  %v2948_v26 = vld [vmem:[%s3959_s7 + $0x20] sm:$0xff]  }
 0x239   :  { %2831 = vmatmul.mubr.msk.bf16.vlgmr.msra.gmra.mxu0 %vm86_vm3, %v3649_v59  ;;  %2858 = vmatmul.mubr.msk.bf16.vlgmr.msra.gmra.mxu1 %vm86_vm3, %v3801_v43  ;;  %v2859_v59 = vld [vmem:[%s3956_s4 + $0x1c] sm:$0xf]  ;;  %v1840_v50 = vsel %vm90_vm2, %v1832_v32, 0  ;;  %v2062_v40 = vpack.c.bf16 %v2056_v9, %v2056_v9  ;;  %v2180_v46 = vmul.f32 %v2176_v16, %v4009_v11  ;;  %v2953_v32 = vld [vmem:[%s3959_s7 + $0x48] sm:$0xff]   ;;  %v2955_v41 = vld [vmem:[%s3959_s7 + $0x40] sm:$0xff]  }
 0x23a   :  { %2383 = vmatpush1.bf16.msra.mxu1 %v2322_v1  ;;  %1743 = vmatpush1.bf16.msra.mxu0 %v1717_v63  ;;  %v2945_v1 = vld [vmem:[%s3959_s7 + $0x68] sm:$0xff]   ;;  %v2951_v63 = vld [vmem:[%s3959_s7 + $0x50] sm:$0xff]  }
 0x23b   :  { %2867 = vmatprep.subr.msk.bf16.mxu1 %vm90_vm2, %v2434_v56  ;;  %2840 = vmatprep.subr.msk.bf16.mxu0 %vm90_vm2, %v1833_v8  ;;  %v2186_v47 = vpack.c.bf16 %v2180_v46, %v2180_v46  ;;  %v2070_v52 = vsel %vm90_vm2, %v2062_v40, 0  ;;  %v2416_v38 = vpop.permute.xlu1 %2415  ;;  %v2950_v8 = vld [vmem:[%s3959_s7 + $0x18] sm:$0xff]  }
 0x23c   :  { %1760 = vmatprep.mubr.bf16.mxu0 %v3997_v45  ;;  %2400 = vmatprep.mubr.bf16.mxu1 %v3997_v45  ;;  %v2422_v27 = vsel %vm1191_vm9, %v2416_v38, %v3744_v21  ;;  %v2423_v48 = vsel %vm1191_vm9, %v3717_v35, %v2416_v38  ;;  %v2942_v35 = vld [vmem:[%s3959_s7 + $0x38] sm:$0xff]  }
 0x23d   :  { %v2426_v28 = vmul.f32 %v2422_v27, %v4013_v14 }
 0x23f   :  { %v2432_v57 = vpack.c.bf16 %v2426_v28, %v2426_v28 }
 0x241   :  { %2836 = vmatmul.mubr.msk.bf16.vlgmr.msra.gmra.mxu0 %vm86_vm3, %v3673_v3  ;;  %2863 = vmatmul.mubr.msk.bf16.vlgmr.msra.gmra.mxu1 %vm86_vm3, %v2859_v59  ;;  %v4007_v3 = vld [vmem:[#allocation12_spill] sm:$0xff] }
 0x242   :  { %1866 = vmatpush1.bf16.msra.mxu0 %v1840_v50  ;;  %2506 = vmatpush1.bf16.msra.mxu1 %v2445_v55  ;;  %v2057_v54 = vmul.f32 %v2053_v53, %v4007_v3  ;;  %v2956_v50 = vld [vmem:[%s3959_s7] sm:$0xff]  }
 0x243   :  { %2845 = vmatprep.subr.msk.bf16.mxu0 %vm90_vm2, %v1940_v13  ;;  %1883 = vmatprep.mubr.bf16.mxu0 %v3997_v45 }
 0x244   :  { %2523 = vmatprep.mubr.bf16.mxu1 %v3997_v45  ;;  %v2063_v44 = vpack.c.bf16 %v2057_v54, %v2057_v54  ;;  %2907 = vmatprep.subr.bf16.mxu1 %v2941_v12 }
 0x249   :  { %2841 = vmatmul.mubr.msk.bf16.vlgmr.msra.gmra.mxu0 %vm86_vm3, %v3703_v10  ;;  %2868 = vmatmul.mubr.msk.bf16.vlgmr.msra.gmra.mxu1 %vm86_vm3, %v2864_v42  ;;  %v2177_v10 = vsel %vm897_vm7, %v3690_v51, %v2170_v5  ;;  %v2303_v51 = vmul.f32 %v2299_v7, %v4011_v17 }
 0x24a   :  { %1973 = vmatpush1.bf16.msra.mxu0 %v1947_v4  ;;  %1990 = vmatprep.mubr.bf16.mxu0 %v3997_v45  ;;  %v2179_v49 = vmul.f32 %v2177_v10, %v4010_v24 }
 0x24b   :  { %2850 = vmatprep.subr.msk.bf16.mxu0 %vm90_vm2, %v2063_v44  ;;  %v2309_v15 = vpack.c.bf16 %v2303_v51, %v2303_v51  ;;  %2908 = vmatpush3.bf16.msra.mxu1 %v2942_v35 }
 0x24c   :  { %v2185_v34 = vpack.c.bf16 %v2179_v49, %v2179_v49 }
 0x24e   :  { %v2193_v33 = vsel %vm90_vm2, %v2185_v34, 0  ;;  %v1440_v34 = vpop.permute.xlu0 %1439 }
 0x251   :  { %2846 = vmatmul.mubr.msk.bf16.vlgmr.msra.gmra.mxu0 %vm86_vm3, %v3722_v2  ;;  %v4012_v2 = vld [vmem:[#allocation15_spill] sm:$0xff] }
 0x252   :  { %2096 = vmatpush1.bf16.msra.mxu0 %v2070_v52  ;;  %2113 = vmatprep.mubr.bf16.mxu0 %v3997_v45  ;;  %v2302_v0 = vmul.f32 %v2300_v22, %v4012_v2  ;;  %v1444_v2 = vadd.f32 %v1440_v34, %v3583_v61 }
 0x253   :  { %2855 = vmatprep.subr.msk.bf16.mxu0 %vm90_vm2, %v2186_v47 }
 0x254   :  { %v2308_v19 = vpack.c.bf16 %v2302_v0, %v2302_v0 }
 0x256   :  { %v2316_v21 = vsel %vm90_vm2, %v2308_v19, 0 }
 0x259   :  { %2851 = vmatmul.mubr.msk.bf16.vlgmr.msra.gmra.mxu0 %vm86_vm3, %v3761_v6  ;;  %v2425_v6 = vmul.f32 %v2423_v48, %v4014_v29 }
 0x25a   :  { %2219 = vmatpush1.bf16.msra.mxu0 %v2193_v33  ;;  %2236 = vmatprep.mubr.bf16.mxu0 %v3997_v45  ;;  %v1445_v33 = vadd.f32 %v1440_v34, %v3587_v30 }
 0x25b   :  { %2860 = vmatprep.subr.msk.bf16.mxu0 %vm90_vm2, %v2309_v15  ;;  %v2431_v58 = vpack.c.bf16 %v2425_v6, %v2425_v6 }
 0x25d   :  { %v2439_v56 = vsel %vm90_vm2, %v2431_v58, 0 }
 0x261   :  { %2856 = vmatmul.mubr.msk.bf16.vlgmr.msra.gmra.mxu0 %vm86_vm3, %v3801_v43  ;;  %v2943_v43 = vld [vmem:[%s3959_s7 + $0x70] sm:$0xff]  }
 0x262   :  { %2342 = vmatpush1.bf16.msra.mxu0 %v2316_v21  ;;  %2359 = vmatprep.mubr.bf16.mxu0 %v3997_v45 }
 0x263   :  { %2865 = vmatprep.subr.msk.bf16.mxu0 %vm90_vm2, %v2432_v57  ;;  %2909 = vmatprep.subr.bf16.mxu1 %v2943_v43 }
 0x269   :  { %2861 = vmatmul.mubr.msk.bf16.vlgmr.msra.gmra.mxu0 %vm86_vm3, %v2859_v59  ;;  %v2954_v59 = vld [vmem:[%s3959_s7 + $0x8] sm:$0xff]  }
 0x26a   :  { %2465 = vmatpush1.bf16.msra.mxu0 %v2439_v56  ;;  %2482 = vmatprep.mubr.bf16.mxu0 %v3997_v45  ;;  %v2944_v45 = vld [vmem:[%s3959_s7 + $0x30] sm:$0xff]   ;;  %s2988_s7 = smov 64  }
 0x26b   :  { %2885 = vmatprep.subr.bf16.mxu0 %v2941_v12  ;;  %2910 = vmatpush3.bf16.msra.mxu1 %v2944_v45 }
 0x26c   :  { %2911 = vmatprep.subr.bf16.mxu1 %v2945_v1 }
 0x26f   :  { %2912 = vmatpush3.bf16.msra.mxu1 %v2946_v18 }
 0x270   :  { %2913 = vmatprep.subr.bf16.mxu1 %v2947_v23 }
 0x271   :  { %2866 = vmatmul.mubr.msk.bf16.vlgmr.msra.gmra.mxu0 %vm86_vm3, %v2864_v42 }
 0x272   :  { %2886 = vmatpush3.bf16.msra.mxu0 %v2942_v35 }
 0x273   :  { %2887 = vmatprep.subr.bf16.mxu0 %v2943_v43  ;;  %2914 = vmatpush3.bf16.msra.mxu1 %v2948_v26 }
 0x274   :  { %2915 = vmatprep.subr.bf16.mxu1 %v2949_v25 }
 0x276   :  { %2888 = vmatpush3.bf16.msra.mxu0 %v2944_v45 }
 0x277   :  { %2889 = vmatprep.subr.bf16.mxu0 %v2945_v1  ;;  %2916 = vmatpush3.bf16.msra.mxu1 %v2950_v8 }
 0x278   :  { %2917 = vmatprep.subr.bf16.mxu1 %v2951_v63 }
 0x27a   :  { %2890 = vmatpush3.bf16.msra.mxu0 %v2946_v18 }
 0x27b   :  { %2891 = vmatprep.subr.bf16.mxu0 %v2947_v23  ;;  %2918 = vmatpush3.bf16.msra.mxu1 %v2952_v62 }
 0x27c   :  { %2919 = vmatprep.subr.bf16.mxu1 %v2953_v32 }
 0x27e   :  { %2892 = vmatpush3.bf16.msra.mxu0 %v2948_v26 }
 0x27f   :  { %2893 = vmatprep.subr.bf16.mxu0 %v2949_v25  ;;  %2920 = vmatpush3.bf16.msra.mxu1 %v2954_v59 }
 0x280   :  { %2921 = vmatprep.subr.bf16.mxu1 %v2955_v41 }
 0x282   :  { %2894 = vmatpush3.bf16.msra.mxu0 %v2950_v8 }
 0x283   :  { %2895 = vmatprep.subr.bf16.mxu0 %v2951_v63  ;;  %2922 = vmatpush3.bf16.msra.mxu1 %v2956_v50 }
 0x286   :  { %2896 = vmatpush3.bf16.msra.mxu0 %v2952_v62 }
 0x287   :  { %2897 = vmatprep.subr.bf16.mxu0 %v2953_v32 }
 0x28a   :  { %2898 = vmatpush3.bf16.msra.mxu0 %v2954_v59 }
 0x28b   :  { %2899 = vmatprep.subr.bf16.mxu0 %v2955_v41 }
 0x28e   :  { %2900 = vmatpush3.bf16.msra.mxu0 %v2956_v50 }
 0x2c9   :  { %v1557_v55 = vpop.f32.mrf.mxu1 }
 0x2ca   :  { %v1566_v27 = vadd.f32 %v1557_v55, %v1444_v2 }
 0x2cb   :  { %v1559_v13 = vpop.f32.mrf.mxu1 }
 0x2cc   :  { %v1567_v28 = vadd.f32 %v1559_v13, %v1445_v33 }
 0x2cd   :  { %v1561_v53 = vpop.f32.mrf.mxu1 }
 0x2cf   :  { %v1562_v3 = vpop.f32.mrf.mxu1 }
 0x2d1   :  { %v1680_v54 = vpop.f32.mrf.mxu1 }
 0x2d2   :  { %v1689_v48 = vadd.f32 %v1680_v54, %v1566_v27 }
 0x2d3   :  { %v1682_v37 = vpop.f32.mrf.mxu1 }
 0x2d4   :  { %v1690_v57 = vadd.f32 %v1682_v37, %v1567_v28 }
 0x2d5   :  { %v1684_v20 = vpop.f32.mrf.mxu1 }
 0x2d7   :  { %v1685_v42 = vpop.f32.mrf.mxu1 }
 0x2d9   :  { %v1803_v5 = vpop.f32.mrf.mxu1 }
 0x2da   :  { %v1812_v21 = vadd.f32 %v1803_v5, %v1689_v48 }
 0x2db   :  { %v1805_v60 = vpop.f32.mrf.mxu1 }
 0x2dc   :  { %v1813_v12 = vadd.f32 %v1805_v60, %v1690_v57 }
 0x2dd   :  { %v1807_v9 = vpop.f32.mrf.mxu1 }
 0x2df   :  { %v1808_v44 = vpop.f32.mrf.mxu1 }
 0x2e1   :  { %v1926_v4 = vpop.f32.mrf.mxu1 }
 0x2e2   :  { %v1935_v35 = vadd.f32 %v1926_v4, %v1812_v21 }
 0x2e3   :  { %v1928_v16 = vpop.f32.mrf.mxu1 }
 0x2e4   :  { %v1936_v61 = vadd.f32 %v1928_v16, %v1813_v12 }
 0x2e5   :  { %v1930_v40 = vpop.f32.mrf.mxu1 }
 0x2e7   :  { %v1931_v11 = vpop.f32.mrf.mxu1 }
 0x2e9   :  { %v2033_v46 = vpop.f32.mrf.mxu1 }
 0x2ea   :  { %v2042_v1 = vadd.f32 %v2033_v46, %v1935_v35 }
 0x2eb   :  { %v2035_v10 = vpop.f32.mrf.mxu1 }
 0x2ec   :  { %v2043_v30 = vadd.f32 %v2035_v10, %v1936_v61 }
 0x2ed   :  { %v2037_v36 = vpop.f32.mrf.mxu1 }
 0x2ef   :  { %v2038_v24 = vpop.f32.mrf.mxu1 }
 0x2f1   :  { %v3939_v49 = vpop.f32.mrf.mxu0  ;;  %v2156_v47 = vpop.f32.mrf.mxu1 }
 0x2f2   :  { %v2165_v26 = vadd.f32 %v2156_v47, %v2042_v1 }
 0x2f3   :  { %v3941_v52 = vpop.f32.mrf.mxu0  ;;  %v2158_v7 = vpop.f32.mrf.mxu1 }
 0x2f4   :  { %v2166_v63 = vadd.f32 %v2158_v7, %v2043_v30  ;;  %v1442_v7 = vadd.f32 %v1440_v34, %v3581_v39 }
 0x2f5   :  { %v1520_v17 = vpop.f32.mrf.mxu0  ;;  %v2160_v51 = vpop.f32.mrf.mxu1 }
 0x2f6   :  { %v1443_v51 = vadd.f32 %v1440_v34, %v3589_v31 }
 0x2f7   :  { %v1521_v22 = vpop.f32.mrf.mxu0  ;;  %v2161_v38 = vpop.f32.mrf.mxu1 }
 0x2f8   :  { %v1564_v22 = vadd.f32 %v3939_v49, %v1442_v7  ;;  %v1565_v2 = vadd.f32 %v3941_v52, %v1443_v51 }
 0x2f9   :  { %v1639_v0 = vpop.f32.mrf.mxu0  ;;  %v2279_v15 = vpop.f32.mrf.mxu1 }
 0x2fa   :  { %v2288_v62 = vadd.f32 %v2279_v15, %v2165_v26  ;;  %v1687_v15 = vadd.f32 %v1639_v0, %v1564_v22 }
 0x2fb   :  { %v1641_v19 = vpop.f32.mrf.mxu0  ;;  %v2281_v14 = vpop.f32.mrf.mxu1 }
 0x2fc   :  { %v2289_v41 = vadd.f32 %v2281_v14, %v2166_v63  ;;  %v1688_v27 = vadd.f32 %v1641_v19, %v1565_v2 }
 0x2fd   :  { %v1643_v29 = vpop.f32.mrf.mxu0  ;;  %v2283_v6 = vpop.f32.mrf.mxu1 }
 0x2ff   :  { %v1644_v58 = vpop.f32.mrf.mxu0  ;;  %v2284_v56 = vpop.f32.mrf.mxu1 }
 0x301   :  { %v1762_v43 = vpop.f32.mrf.mxu0  ;;  %v2402_v45 = vpop.f32.mrf.mxu1 }
 0x302   :  { %v2411_v50 = vadd.f32 %v2402_v45, %v2288_v62  ;;  %v1810_v14 = vadd.f32 %v1762_v43, %v1687_v15 }
 0x303   :  { %v1764_v18 = vpop.f32.mrf.mxu0  ;;  %v2404_v23 = vpop.f32.mrf.mxu1 }
 0x304   :  { %v2412_v53 = vadd.f32 %v2404_v23, %v2289_v41  ;;  %v1811_v48 = vadd.f32 %v1764_v18, %v1688_v27 }
 0x305   :  { %v1766_v25 = vpop.f32.mrf.mxu0  ;;  %v2406_v8 = vpop.f32.mrf.mxu1 }
 0x307   :  { %v1767_v32 = vpop.f32.mrf.mxu0  ;;  %v2407_v59 = vpop.f32.mrf.mxu1 }
 0x309   :  { %v1885_v55 = vpop.f32.mrf.mxu0  ;;  %v2525_v13 = vpop.f32.mrf.mxu1 }
 0x30a   :  { %v2534_v3 = vadd.f32 %v2525_v13, %v2411_v50  ;;  %v1933_v29 = vadd.f32 %v1885_v55, %v1810_v14 }
 0x30b   :  { %v1887_v54 = vpop.f32.mrf.mxu0  ;;  %v2527_v37 = vpop.f32.mrf.mxu1 }
 0x30c   :  { %v2535_v20 = vadd.f32 %v2527_v37, %v2412_v53  ;;  %v2708_v9 = vpack.c.bf16 %v2534_v3, %v2534_v3  ;;  %v1934_v57 = vadd.f32 %v1887_v54, %v1811_v48 }
 0x30d   :  { %v1889_v42 = vpop.f32.mrf.mxu0  ;;  %v2529_v5 = vpop.f32.mrf.mxu1 }
 0x30e   :  { %v2709_v60 = vpack.c.bf16 %v2535_v20, %v2535_v20 }
 0x30f   :  { %v1890_v44 = vpop.f32.mrf.mxu0  ;;  %v2530_v4 = vpop.f32.mrf.mxu1 }
 0x310   :  { %2742 = vmatprep.mubr.bf16.mxu1 %v2709_v60 }
 0x311   :  { %v1992_v16 = vpop.f32.mrf.mxu0  ;;  %2743 = vmatmul.mubr.bf16.vlgmr.msra.gmra.mxu1 %v2708_v9 }
 0x312   :  { %v2040_v21 = vadd.f32 %v1992_v16, %v1933_v29 }
 0x313   :  { %v1994_v40 = vpop.f32.mrf.mxu0 }
 0x314   :  { %v2041_v39 = vadd.f32 %v1994_v40, %v1934_v57 }
 0x315   :  { %v1996_v11 = vpop.f32.mrf.mxu0 }
 0x317   :  { %v1997_v46 = vpop.f32.mrf.mxu0 }
 0x319   :  { %v2115_v10 = vpop.f32.mrf.mxu0 }
 0x31a   :  { %v2163_v56 = vadd.f32 %v2115_v10, %v2040_v21 }
 0x31b   :  { %v2117_v36 = vpop.f32.mrf.mxu0 }
 0x31c   :  { %v2164_v31 = vadd.f32 %v2117_v36, %v2041_v39 }
 0x31d   :  { %v2119_v24 = vpop.f32.mrf.mxu0 }
 0x31f   :  { %v2120_v47 = vpop.f32.mrf.mxu0 }
 0x321   :  { %v2238_v17 = vpop.f32.mrf.mxu0 }
 0x322   :  { %v2286_v34 = vadd.f32 %v2238_v17, %v2163_v56 }
 0x323   :  { %v2240_v38 = vpop.f32.mrf.mxu0 }
 0x324   :  { %v2287_v35 = vadd.f32 %v2240_v38, %v2164_v31 }
 0x325   :  { %v2242_v33 = vpop.f32.mrf.mxu0 }
 0x327   :  { %v2243_v28 = vpop.f32.mrf.mxu0 }
 0x329   :  { %v2361_v6 = vpop.f32.mrf.mxu0 }
 0x32a   :  { %v2409_v45 = vadd.f32 %v2361_v6, %v2286_v34 }
 0x32b   :  { %v2363_v58 = vpop.f32.mrf.mxu0 }
 0x32c   :  { %v2410_v0 = vadd.f32 %v2363_v58, %v2287_v35 }
 0x32d   :  { %v2365_v12 = vpop.f32.mrf.mxu0 }
 0x32f   :  { %v2366_v49 = vpop.f32.mrf.mxu0 }
 0x331   :  { %v2484_v52 = vpop.f32.mrf.mxu0 }
 0x332   :  { %v2532_v61 = vadd.f32 %v2484_v52, %v2409_v45 }
 0x333   :  { %v2486_v19 = vpop.f32.mrf.mxu0 }
 0x334   :  { %v2533_v43 = vadd.f32 %v2486_v19, %v2410_v0  ;;  %v2568_v23 = vpack.c.bf16 %v2532_v61, %v2532_v61 }
 0x335   :  { %v2488_v1 = vpop.f32.mrf.mxu0 }
 0x336   :  { %v2569_v18 = vpack.c.bf16 %v2533_v43, %v2533_v43 }
 0x337   :  { %v2489_v30 = vpop.f32.mrf.mxu0 }
 0x338   :  { %2698 = vmatprep.mubr.bf16.mxu0 %v2569_v18 }
 0x339   :  { %2699 = vmatmul.mubr.bf16.vlgmr.msra.gmra.mxu0 %v2568_v23 }
 0x3d1   :  { %v2923_v26 = vpop.f32.mrf.mxu1 }
 0x3d3   :  { %v2924_v25 = vpop.f32.mrf.mxu1 }
 0x3d4   :  { %v2925_v8 = vadd.f32 %v2924_v25, %v2923_v26 }
 0x3d5   :  { %v2926_v63 = vpop.f32.mrf.mxu1 }
 0x3d6   :  { %2751 = vrot.lane.b32.xlu1 %v2925_v8, %s2988_s7 }
 0x3d7   :  { %v2927_v62 = vpop.f32.mrf.mxu1 }
 0x3f9   :  { %v2901_v32 = vpop.f32.mrf.mxu0 }
 0x3fb   :  { %v2902_v59 = vpop.f32.mrf.mxu0 }
 0x3fc   :  { %v2903_v41 = vadd.f32 %v2902_v59, %v2901_v32 }
 0x3fd   :  { %v2904_v50 = vpop.f32.mrf.mxu0 }
 0x3fe   :  { %2707 = vst.msk [vmem:[#allocation2] sm:$0xff] %vm2706_vm10, %v2903_v41 }
 0x3ff   :  { %v2905_v55 = vpop.f32.mrf.mxu0 }
 0x448   :  { %v2752_v13 = vpop.permute.xlu1 %2751 }
 0x449   :  { %2755 = vst.msk [vmem:[#allocation2] sm:$0xff] %vm2754_vm11, %v2752_v13 }
 0x44a   :  { %2968 = shalt.err (!%p2965_p4)
}
 0x44b   :  { %2765 = dma.vmem_to_hbm [thread:$0]  %s2763_s20, 128, %s3960_s8, [#allocation3]  }
 0x44c   :  { %2977 = dma.done.wait [#allocation3], 128  }
 0x44d   :  { %2978 = vsyncadd [#allocation3], 4294967168 }
 0x44e   :  { %2769 = vsyncpa [#allocation3], 1 }

// kernel: tpu_custom_call.1
= control target key start
LH: loop header
LB: loop body
LE: loop exit
PB: predicated region body
PF: predicated region fallthrough
CT: control target
= control target key end

     0   :  { %s2979_s13 = smov 17   ;;  %v3961_v8 = vmov 0   ;;  %s2982_s14 = smov 15   ;;  %s3952_s0 = inlined_call_operand.vmem [shape: f32[1,8,512], index: 0, kind: input, shape index: {}]   ;;  %s3953_s1 = inlined_call_operand.vmem [shape: f32[9,512], index: 1, kind: input, shape index: {}]   ;;  %s3954_s2 = inlined_call_operand.vmem [shape: bf16[9,8,8], index: 2, kind: input, shape index: {}]   ;;  %s3955_s3 = inlined_call_operand.vmem [shape: f32[8,1], index: 3, kind: input, shape index: {}]   ;;  %s3956_s4 = inlined_call_operand.vmem [shape: bf16[9,8,8], index: 4, kind: input, shape index: {}]   ;;  %s3957_s5 = inlined_call_operand.vmem [shape: f32[8,1], index: 5, kind: input, shape index: {}]   ;;  %s3958_s6 = inlined_call_operand.vmem [shape: bf16[8,8], index: 6, kind: input, shape index: {}]   ;;  %s3959_s7 = inlined_call_operand.vmem [shape: bf16[256,64], index: 7, kind: input, shape index: {}]   ;;  %s3960_s8 = inlined_call_operand.hbm [shape: f32[1,8,128], index: 8, kind: output, shape index: {}]  }
   0x1   :  { %v3038_v0 = vld [vmem:[%s3952_s0 + $0x10] sm:$0xff]  ;;  %v3043_v1 = vld [vmem:[%s3952_s0] sm:$0xff]  ;;  %v3048_v2 = vld [vmem:[%s3952_s0 + $0x18] sm:$0xff]  ;;  %135 = vmatprep.mubr.bf16.mxu0 %v3961_v8  ;;  %176 = vmatprep.mubr.bf16.mxu1 %v3961_v8 }
   0x2   :  { %v3051_v3 = vmax.f32 %v3038_v0, 0.0  ;;  %v3054_v4 = vmax.f32 %v3043_v1, 0.0  ;;  %v3059_v5 = vld [vmem:[%s3952_s0 + $0x8] sm:$0xff]  ;;  %v3066_v6 = vmax.f32 %v3048_v2, 0.0  ;;  %2940 = vset.pattern.permute.xlu0 %v3961_v8  ;;  %s2981_s0 = smov 16  }
   0x3   :  { %v3069_v7 = vmax.f32 %v3059_v5, 0.0 }
   0x4   :  { %44 = vrot.lane.b32.xlu1 %v3051_v3, %s2979_s13  ;;  %40 = vrot.lane.b32.xlu0 %v3054_v4, %s2979_s13 }
   0x8   :  { %46 = vrot.lane.b32.xlu1 %v3066_v6, %s2979_s13  ;;  %42 = vrot.lane.b32.xlu0 %v3069_v7, %s2979_s13 }
   0xc   :  { %196 = vrot.lane.b32.xlu1 %v3069_v7, %s2981_s0  ;;  %194 = vrot.lane.b32.xlu0 %v3054_v4, %s2981_s0 }
  0x10   :  { %200 = vrot.lane.b32.xlu1 %v3066_v6, %s2981_s0  ;;  %198 = vrot.lane.b32.xlu0 %v3051_v3, %s2981_s0 }
  0x14   :  { %343 = vrot.lane.b32.xlu1 %v3069_v7, %s2982_s14  ;;  %341 = vrot.lane.b32.xlu0 %v3054_v4, %s2982_s14 }
  0x15   :  { %13 = vsyncpa [#allocation3], 0  ;;  %s2983_s15 = smov 1   ;;  %s2984_s16 = smov 127   ;;  %v39_v9 = vld [vmem:[%s3955_s3] sm:$0xff]  ;;  %v48_v10 = vlaneseq  ;;  %vm90_vm2 = vcmask 1043456  }
  0x16   :  { %s2985_s17 = smov 113   ;;  %s2986_s18 = smov 112   ;;  %v55_v17 = vld [vmem:[%s3953_s1] ss:$8 sm:$0xf]  ;;  %vm86_vm3 = vcmask 64512  }
  0x17   :  { %s2987_s19 = smov 111   ;;  %v58_v11 = vshrl.u32 %v48_v10, 7  ;;  %v3137_v12 = vand.u32 127, %v48_v10  ;;  %v2774_v20 = vld [vmem:[%s3953_s1 + $0x1] ss:$8 sm:$0xf] }
  0x18   :  { %347 = vrot.lane.b32.xlu1 %v3066_v6, %s2982_s14  ;;  %345 = vrot.lane.b32.xlu0 %v3051_v3, %s2982_s14  ;;  %v2780_v49 = vld [vmem:[%s3953_s1 + $0x2] ss:$8 sm:$0xf]  ;;  %vm2706_vm10 = vcmask 523264   ;;  %s2989_s12 = smov [#allocation2]   ;;  %vm2754_vm11 = vcmask 1048064  }
  0x19   :  { %v3139_v13 = vsub.s32 0, %v58_v11  ;;  %v3141_v14 = vsub.s32 2, %v58_v11  ;;  %v3143_v15 = vsub.s32 1, %v58_v11  ;;  %v3145_v16 = vsub.s32 3, %v58_v11  ;;  %v81_v50 = vld [vmem:[%s3954_s2] sm:$0xf] }
  0x1a   :  { %vm50_vm0 = vcmp.lt.s32.totalorder %v3137_v12, 17  ;;  %vm202_vm1 = vcmp.lt.s32.totalorder %v3137_v12, 16  ;;  %vm349_vm4 = vcmp.lt.s32.totalorder %v3137_v12, 15  ;;  %vm496_vm5 = vcmp.lt.s32.totalorder %v3137_v12, 1  ;;  %s2762_s20 = sshll.u32 %s2989_s12, 4  ;;  %s2763_s20 = int_to_ptr.vmem [resolvable:$true] %s2762_s20 }
  0x1b   :  { %v3155_v21 = vrot.slane %v55_v17, %v3139_v13  ;;  %v3158_v22 = vrot.slane %v55_v17, %v3141_v14  ;;  %v3161_v23 = vrot.slane %v55_v17, %v3143_v15  ;;  %v3164_v24 = vrot.slane %v55_v17, %v3145_v16  ;;  %s2957_s21 = scalar_lea.vmem %s2763_s20, 128  ;;  %p2962_p1 = scmp.lt.s32.totalorder %s2763_s20, %s2763_s20 }
  0x1c   :  { %490 = vrot.lane.b32.xlu1 %v3069_v7, %s2983_s15  ;;  %488 = vrot.lane.b32.xlu0 %v3054_v4, %s2983_s15  ;;  %v3168_v27 = vrot.slane %v2774_v20, %v3143_v15  ;;  %v3185_v43 = vrot.slane %v2774_v20, %v3139_v13  ;;  %v3188_v44 = vrot.slane %v2774_v20, %v3141_v14  ;;  %vm750_vm6 = vcmp.lt.s32.totalorder %v3137_v12, 127  ;;  %p2958_p0 = scmp.ne.s32.totalorder %s2763_s20, %s2957_s21  ;;  %p2963_p2 = scmp.lt.s32.totalorder %s2957_s21, %s2957_s21 }
  0x1d   :  { %v3196_v48 = vrot.slane %v2774_v20, %v3145_v16  ;;  %v3211_v57 = vrot.slane %v2780_v49, %v3143_v15  ;;  %v3225_v17 = vrot.slane %v2780_v49, %v3139_v13  ;;  %vm897_vm7 = vcmp.lt.s32.totalorder %v3137_v12, 113 }
  0x1e   :  { %3980 = vst [vmem:[#allocation5_spill] sm:$0xff] %v3168_v27  ;;  %3981 = vst [vmem:[#allocation6_spill] sm:$0xff] %v3185_v43  ;;  %vm1044_vm8 = vcmp.lt.s32.totalorder %v3137_v12, 112  ;;  %vm1191_vm9 = vcmp.lt.s32.totalorder %v3137_v12, 111  ;;  %v2941_v12 = vld [vmem:[%s3959_s7 + $0x78] sm:$0xff]   ;;  %p2964_p3 = por %p2963_p2, %p2962_p1 }
  0x1f   :  { %3982 = vst [vmem:[#allocation7_spill] sm:$0xff] %v3211_v57  ;;  %3983 = vst [vmem:[#allocation8_spill] sm:$0xff] %v3225_v17 }
  0x20   :  { %494 = vrot.lane.b32.xlu1 %v3066_v6, %s2983_s15  ;;  %492 = vrot.lane.b32.xlu0 %v3051_v3, %s2983_s15  ;;  %p2965_p4 = pnand %p2964_p3, %p2958_p0 }
  0x24   :  { %744 = vrot.lane.b32.xlu1 %v3069_v7, %s2984_s16  ;;  %742 = vrot.lane.b32.xlu0 %v3054_v4, %s2984_s16 }
  0x28   :  { %748 = vrot.lane.b32.xlu1 %v3066_v6, %s2984_s16  ;;  %746 = vrot.lane.b32.xlu0 %v3051_v3, %s2984_s16 }
  0x2c   :  { %891 = vrot.lane.b32.xlu1 %v3069_v7, %s2985_s17  ;;  %889 = vrot.lane.b32.xlu0 %v3054_v4, %s2985_s17 }
  0x30   :  { %895 = vrot.lane.b32.xlu1 %v3066_v6, %s2985_s17  ;;  %893 = vrot.lane.b32.xlu0 %v3051_v3, %s2985_s17 }
  0x34   :  { %1038 = vrot.lane.b32.xlu1 %v3069_v7, %s2986_s18  ;;  %1036 = vrot.lane.b32.xlu0 %v3054_v4, %s2986_s18 }
  0x38   :  { %1042 = vrot.lane.b32.xlu1 %v3066_v6, %s2986_s18  ;;  %1040 = vrot.lane.b32.xlu0 %v3051_v3, %s2986_s18 }
  0x3c   :  { %1185 = vrot.lane.b32.xlu1 %v3069_v7, %s2987_s19  ;;  %1183 = vrot.lane.b32.xlu0 %v3054_v4, %s2987_s19 }
  0x40   :  { %1189 = vrot.lane.b32.xlu1 %v3066_v6, %s2987_s19  ;;  %1187 = vrot.lane.b32.xlu0 %v3051_v3, %s2987_s19 }
  0x44   :  { %187 = vperm.xlu0 %2940, %v39_v9  }
  0x76   :  { %v45_v18 = vpop.permute.xlu1 %44  ;;  %v41_v19 = vpop.permute.xlu0 %40 }
  0x7a   :  { %v47_v25 = vpop.permute.xlu1 %46  ;;  %v43_v26 = vpop.permute.xlu0 %42 }
  0x7b   :  { %v51_v28 = vsel %vm50_vm0, %v45_v18, %v47_v25  ;;  %v54_v29 = vsel %vm50_vm0, %v47_v25, %v41_v19  ;;  %v52_v30 = vsel %vm50_vm0, %v43_v26, %v45_v18  ;;  %v53_v31 = vsel %vm50_vm0, %v41_v19, %v43_v26 }
  0x7c   :  { %v77_v32 = vmul.f32 %v3155_v21, %v54_v29  ;;  %v79_v33 = vmul.f32 %v3158_v22, %v52_v30  ;;  %v78_v34 = vmul.f32 %v3161_v23, %v53_v31  ;;  %v80_v35 = vmul.f32 %v3164_v24, %v51_v28  ;;  %v2786_v28 = vld [vmem:[%s3953_s1 + $0x3] ss:$8 sm:$0xf]  ;;  %v2775_v29 = vld [vmem:[%s3954_s2 + $0x4] sm:$0xf] }
  0x7d   :  { %v3228_v18 = vrot.slane %v2780_v49, %v3141_v14  ;;  %v3235_v26 = vrot.slane %v2780_v49, %v3145_v16  ;;  %v3264_v49 = vrot.slane %v2786_v28, %v3139_v13 }
  0x7e   :  { %v197_v36 = vpop.permute.xlu1 %196  ;;  %v195_v37 = vpop.permute.xlu0 %194  ;;  %v83_v38 = vpack.c.bf16 %v78_v34, %v78_v34  ;;  %v85_v39 = vpack.c.bf16 %v80_v35, %v80_v35  ;;  %v82_v40 = vpack.c.bf16 %v77_v32, %v77_v32  ;;  %v84_v41 = vpack.c.bf16 %v79_v33, %v79_v33 }
  0x7f   :  { %v205_v42 = vsel %vm202_vm1, %v195_v37, %v197_v36  ;;  %3985 = vst [vmem:[#allocation10_spill] sm:$0xff] %v3264_v49 }
  0x80   :  { %v231_v45 = vmul.f32 %v3168_v27, %v205_v42  ;;  %2770 = vmatprep.subr.msk.bf16.mxu0 %vm90_vm2, %v83_v38  ;;  %2772 = vmatprep.subr.msk.bf16.mxu1 %vm90_vm2, %v85_v39  ;;  %v92_v46 = vsel %vm90_vm2, %v82_v40, 0  ;;  %v98_v47 = vsel %vm90_vm2, %v84_v41, 0 }
  0x81   :  { %118 = vmatpush1.bf16.msra.mxu0 %v92_v46  ;;  %159 = vmatpush1.bf16.msra.mxu1 %v98_v47 }
  0x82   :  { %v237_v51 = vpack.c.bf16 %v231_v45, %v231_v45  ;;  %v201_v52 = vpop.permute.xlu1 %200  ;;  %v199_v53 = vpop.permute.xlu0 %198 }
  0x83   :  { %v206_v54 = vsel %vm202_vm1, %v201_v52, %v195_v37  ;;  %v203_v55 = vsel %vm202_vm1, %v199_v53, %v201_v52  ;;  %v204_v56 = vsel %vm202_vm1, %v197_v36, %v199_v53  ;;  %v3250_v36 = vrot.slane %v2786_v28, %v3143_v15 }
  0x84   :  { %v230_v58 = vmul.f32 %v3185_v43, %v206_v54  ;;  %v232_v59 = vmul.f32 %v3188_v44, %v204_v56  ;;  %v233_v60 = vmul.f32 %v3196_v48, %v203_v55  ;;  %2771 = vmatmul.mubr.msk.bf16.vlgmr.msra.gmra.mxu0 %vm86_vm3, %v81_v50  ;;  %2773 = vmatmul.mubr.msk.bf16.vlgmr.msra.gmra.mxu1 %vm86_vm3, %v81_v50  ;;  %v2797_v55 = vld [vmem:[%s3953_s1 + $0x5] ss:$8 sm:$0xf]  ;;  %v2781_v56 = vld [vmem:[%s3954_s2 + $0x8] sm:$0xf] }
  0x85   :  { %2776 = vmatprep.subr.msk.bf16.mxu0 %vm90_vm2, %v237_v51  ;;  %287 = vmatprep.mubr.bf16.mxu0 %v3961_v8  ;;  %3984 = vst [vmem:[#allocation9_spill] sm:$0xff] %v3250_v36  ;;  %v3267_v50 = vrot.slane %v2786_v28, %v3141_v14  ;;  %v3274_v54 = vrot.slane %v2786_v28, %v3145_v16 }
  0x86   :  { %v236_v61 = vpack.c.bf16 %v230_v58, %v230_v58  ;;  %v238_v62 = vpack.c.bf16 %v232_v59, %v232_v59  ;;  %v239_v63 = vpack.c.bf16 %v233_v60, %v233_v60  ;;  %v344_v9 = vpop.permute.xlu1 %343  ;;  %v342_v10 = vpop.permute.xlu0 %341  ;;  %328 = vmatprep.mubr.bf16.mxu1 %v3961_v8  ;;  %v637_v28 = vpack.c.bf16 %v3054_v4, %v3054_v4 }
  0x87   :  { %v352_v11 = vsel %vm349_vm4, %v342_v10, %v344_v9 }
  0x88   :  { %v378_v19 = vmul.f32 %v3211_v57, %v352_v11  ;;  %2778 = vmatprep.subr.msk.bf16.mxu1 %vm90_vm2, %v239_v63  ;;  %v244_v20 = vsel %vm90_vm2, %v236_v61, 0  ;;  %v250_v25 = vsel %vm90_vm2, %v238_v62, 0 }
  0x89   :  { %270 = vmatpush1.bf16.msra.mxu0 %v244_v20  ;;  %311 = vmatpush1.bf16.msra.mxu1 %v250_v25  ;;  %v638_v20 = vpack.c.bf16 %v3069_v7, %v3069_v7  ;;  %v640_v25 = vpack.c.bf16 %v3066_v6, %v3066_v6  ;;  %v3311_v7 = vrot.slane %v2797_v55, %v3145_v16 }
  0x8a   :  { %v384_v30 = vpack.c.bf16 %v378_v19, %v378_v19  ;;  %v348_v31 = vpop.permute.xlu1 %347  ;;  %v346_v32 = vpop.permute.xlu0 %345 }
  0x8b   :  { %v353_v33 = vsel %vm349_vm4, %v348_v31, %v342_v10  ;;  %v350_v34 = vsel %vm349_vm4, %v346_v32, %v348_v31  ;;  %v351_v35 = vsel %vm349_vm4, %v344_v9, %v346_v32  ;;  %v3289_v9 = vrot.slane %v2797_v55, %v3139_v13 }
  0x8c   :  { %v377_v37 = vmul.f32 %v3225_v17, %v353_v33  ;;  %v379_v38 = vmul.f32 %v3228_v18, %v351_v35  ;;  %v380_v39 = vmul.f32 %v3235_v26, %v350_v34  ;;  %2777 = vmatmul.mubr.msk.bf16.vlgmr.msra.gmra.mxu0 %vm86_vm3, %v2775_v29  ;;  %2779 = vmatmul.mubr.msk.bf16.vlgmr.msra.gmra.mxu1 %vm86_vm3, %v2775_v29 }
  0x8d   :  { %2782 = vmatprep.subr.msk.bf16.mxu0 %vm90_vm2, %v384_v30  ;;  %434 = vmatprep.mubr.bf16.mxu0 %v3961_v8  ;;  %3986 = vst [vmem:[#allocation11_spill] sm:$0xff] %v3289_v9  ;;  %v639_v34 = vpack.c.bf16 %v3051_v3, %v3051_v3 }
  0x8e   :  { %v383_v40 = vpack.c.bf16 %v377_v37, %v377_v37  ;;  %v385_v41 = vpack.c.bf16 %v379_v38, %v379_v38  ;;  %v386_v42 = vpack.c.bf16 %v380_v39, %v380_v39  ;;  %v491_v45 = vpop.permute.xlu1 %490  ;;  %v489_v46 = vpop.permute.xlu0 %488  ;;  %475 = vmatprep.mubr.bf16.mxu1 %v3961_v8  ;;  %v3317_v37 = vrot.slane %v2797_v55, %v3143_v15  ;;  %v2787_v39 = vld [vmem:[%s3954_s2 + $0xc] sm:$0xf] }
  0x8f   :  { %v499_v47 = vsel %vm496_vm5, %v489_v46, %v491_v45  ;;  %v3320_v38 = vrot.slane %v2797_v55, %v3141_v14 }
  0x90   :  { %v525_v51 = vmul.f32 %v3250_v36, %v499_v47  ;;  %2784 = vmatprep.subr.msk.bf16.mxu1 %vm90_vm2, %v386_v42  ;;  %v391_v52 = vsel %vm90_vm2, %v383_v40, 0  ;;  %v397_v53 = vsel %vm90_vm2, %v385_v41, 0  ;;  %3987 = vst [vmem:[#allocation12_spill] sm:$0xff] %v3317_v37  ;;  %v645_v42 = vsel %vm90_vm2, %v637_v28, 0 }
  0x91   :  { %417 = vmatpush1.bf16.msra.mxu0 %v391_v52  ;;  %458 = vmatpush1.bf16.msra.mxu1 %v397_v53 }
  0x92   :  { %v531_v58 = vpack.c.bf16 %v525_v51, %v525_v51  ;;  %v495_v59 = vpop.permute.xlu1 %494  ;;  %v493_v60 = vpop.permute.xlu0 %492 }
  0x93   :  { %v500_v61 = vsel %vm496_vm5, %v495_v59, %v489_v46  ;;  %v497_v62 = vsel %vm496_vm5, %v493_v60, %v495_v59  ;;  %v498_v63 = vsel %vm496_vm5, %v491_v45, %v493_v60  ;;  %v651_v45 = vsel %vm90_vm2, %v639_v34, 0  ;;  %v2803_v46 = vld [vmem:[%s3953_s1 + $0x6] ss:$8 sm:$0xf] }
  0x94   :  { %v524_v10 = vmul.f32 %v3264_v49, %v500_v61  ;;  %v526_v11 = vmul.f32 %v3267_v50, %v498_v63  ;;  %v527_v19 = vmul.f32 %v3274_v54, %v497_v62  ;;  %2783 = vmatmul.mubr.msk.bf16.vlgmr.msra.gmra.mxu0 %vm86_vm3, %v2781_v56  ;;  %2785 = vmatmul.mubr.msk.bf16.vlgmr.msra.gmra.mxu1 %vm86_vm3, %v2781_v56  ;;  %v2809_v34 = vld [vmem:[%s3953_s1 + $0x7] ss:$8 sm:$0xf] }
  0x95   :  { %2788 = vmatprep.subr.msk.bf16.mxu0 %vm90_vm2, %v531_v58  ;;  %581 = vmatprep.mubr.bf16.mxu0 %v3961_v8  ;;  %v3346_v59 = vrot.slane %v2803_v46, %v3139_v13 }
  0x96   :  { %v530_v29 = vpack.c.bf16 %v524_v10, %v524_v10  ;;  %v532_v30 = vpack.c.bf16 %v526_v11, %v526_v11  ;;  %v533_v31 = vpack.c.bf16 %v527_v19, %v527_v19  ;;  %v745_v32 = vpop.permute.xlu1 %744  ;;  %v743_v33 = vpop.permute.xlu0 %742  ;;  %622 = vmatprep.mubr.bf16.mxu1 %v3961_v8  ;;  %v3355_v19 = vrot.slane %v2803_v46, %v3145_v16 }
  0x97   :  { %v753_v35 = vsel %vm750_vm6, %v743_v33, %v745_v32  ;;  %3988 = vst [vmem:[#allocation13_spill] sm:$0xff] %v3346_v59 }
  0x98   :  { %2790 = vmatprep.subr.msk.bf16.mxu1 %vm90_vm2, %v533_v31  ;;  %v538_v4 = vsel %vm90_vm2, %v530_v29, 0  ;;  %v544_v6 = vsel %vm90_vm2, %v532_v30, 0  ;;  %v778_v3 = vmul.f32 %v3289_v9, %v753_v35  ;;  %v2792_v29 = vld [vmem:[%s3954_s2 + $0x10] sm:$0xf] }
  0x99   :  { %564 = vmatpush1.bf16.msra.mxu0 %v538_v4  ;;  %605 = vmatpush1.bf16.msra.mxu1 %v544_v6 }
  0x9a   :  { %v749_v40 = vpop.permute.xlu1 %748  ;;  %v747_v41 = vpop.permute.xlu0 %746  ;;  %2793 = vmatprep.subr.msk.bf16.mxu0 %vm90_vm2, %v638_v20  ;;  %2795 = vmatprep.subr.msk.bf16.mxu1 %vm90_vm2, %v640_v25  ;;  %v784_v58 = vpack.c.bf16 %v778_v3, %v778_v3  ;;  %v3358_v20 = vrot.slane %v2803_v46, %v3143_v15  ;;  %v3361_v25 = vrot.slane %v2803_v46, %v3141_v14 }
  0x9b   :  { %v754_v47 = vsel %vm750_vm6, %v749_v40, %v743_v33  ;;  %v751_v51 = vsel %vm750_vm6, %v747_v41, %v749_v40  ;;  %v752_v52 = vsel %vm750_vm6, %v745_v32, %v747_v41 }
  0x9c   :  { %2789 = vmatmul.mubr.msk.bf16.vlgmr.msra.gmra.mxu0 %vm86_vm3, %v2787_v39  ;;  %2791 = vmatmul.mubr.msk.bf16.vlgmr.msra.gmra.mxu1 %vm86_vm3, %v2787_v39  ;;  %v781_v53 = vmul.f32 %v3311_v7, %v754_v47  ;;  %v779_v55 = vmul.f32 %v3317_v37, %v752_v52  ;;  %v780_v56 = vmul.f32 %v3320_v38, %v751_v51  ;;  %v792_v30 = vsel %vm90_vm2, %v784_v58, 0 }
  0x9d   :  { %671 = vmatpush1.bf16.msra.mxu0 %v645_v42  ;;  %712 = vmatpush1.bf16.msra.mxu1 %v651_v45  ;;  %3989 = vst [vmem:[#allocation14_spill] sm:$0xff] %v3358_v20  ;;  %v3385_v42 = vrot.slane %v2809_v34, %v3139_v13  ;;  %v3400_v58 = vrot.slane %v2809_v34, %v3141_v14 }
  0x9e   :  { %v787_v60 = vpack.c.bf16 %v781_v53, %v781_v53  ;;  %v785_v61 = vpack.c.bf16 %v779_v55, %v779_v55  ;;  %v786_v62 = vpack.c.bf16 %v780_v56, %v780_v56  ;;  %v892_v63 = vpop.permute.xlu1 %891  ;;  %v890_v10 = vpop.permute.xlu0 %889  ;;  %688 = vmatprep.mubr.bf16.mxu0 %v3961_v8  ;;  %729 = vmatprep.mubr.bf16.mxu1 %v3961_v8 }
  0x9f   :  { %v900_v11 = vsel %vm897_vm7, %v890_v10, %v892_v63  ;;  %3990 = vst [vmem:[#allocation15_spill] sm:$0xff] %v3385_v42  ;;  %v3394_v55 = vrot.slane %v2809_v34, %v3145_v16  ;;  %v3397_v56 = vrot.slane %v2809_v34, %v3143_v15  ;;  %3992 = vst [vmem:[#allocation17_spill] sm:$0xff] %v3400_v58 }
  0xa0   :  { %2799 = vmatprep.subr.msk.bf16.mxu0 %vm90_vm2, %v785_v61  ;;  %2801 = vmatprep.subr.msk.bf16.mxu1 %vm90_vm2, %v787_v60  ;;  %v925_v28 = vmul.f32 %v3346_v59, %v900_v11  ;;  %v798_v33 = vsel %vm90_vm2, %v786_v62, 0  ;;  %v2798_v61 = vld [vmem:[%s3954_s2 + $0x14] sm:$0xf] }
  0xa1   :  { %3991 = vst [vmem:[#allocation16_spill] sm:$0xff] %v3397_v56 }
  0xa2   :  { %v896_v31 = vpop.permute.xlu1 %895  ;;  %v894_v32 = vpop.permute.xlu0 %893  ;;  %v931_v41 = vpack.c.bf16 %v925_v28, %v925_v28  ;;  %v2815_v28 = vld [vmem:[%s3953_s1 + $0x20] ss:$8 sm:$0xf] }
  0xa3   :  { %v901_v35 = vsel %vm897_vm7, %v896_v31, %v890_v10  ;;  %v898_v4 = vsel %vm897_vm7, %v894_v32, %v896_v31  ;;  %v899_v6 = vsel %vm897_vm7, %v892_v63, %v894_v32 }
  0xa4   :  { %2794 = vmatmul.mubr.msk.bf16.vlgmr.msra.gmra.mxu0 %vm86_vm3, %v2792_v29  ;;  %2796 = vmatmul.mubr.msk.bf16.vlgmr.msra.gmra.mxu1 %vm86_vm3, %v2792_v29  ;;  %v928_v3 = vmul.f32 %v3355_v19, %v901_v35  ;;  %v926_v39 = vmul.f32 %v3358_v20, %v899_v6  ;;  %v927_v40 = vmul.f32 %v3361_v25, %v898_v4  ;;  %v939_v62 = vsel %vm90_vm2, %v931_v41, 0 }
  0xa5   :  { %818 = vmatpush1.bf16.msra.mxu0 %v792_v30  ;;  %859 = vmatpush1.bf16.msra.mxu1 %v798_v33  ;;  %v3424_v4 = vrot.slane %v2815_v28, %v3139_v13  ;;  %v3436_v13 = vrot.slane %v2815_v28, %v3143_v15 }
  0xa6   :  { %v934_v45 = vpack.c.bf16 %v928_v3, %v928_v3  ;;  %v932_v46 = vpack.c.bf16 %v926_v39, %v926_v39  ;;  %v933_v47 = vpack.c.bf16 %v927_v40, %v927_v40  ;;  %v1039_v51 = vpop.permute.xlu1 %1038  ;;  %v1037_v52 = vpop.permute.xlu0 %1036  ;;  %835 = vmatprep.mubr.bf16.mxu0 %v3961_v8  ;;  %876 = vmatprep.mubr.bf16.mxu1 %v3961_v8 }
  0xa7   :  { %v1047_v53 = vsel %vm1044_vm8, %v1037_v52, %v1039_v51  ;;  %3993 = vst [vmem:[#allocation18_spill] sm:$0xff] %v3424_v4  ;;  %3995 = vst [vmem:[#allocation20_spill] sm:$0xff] %v3436_v13 }
  0xa8   :  { %2805 = vmatprep.subr.msk.bf16.mxu0 %vm90_vm2, %v932_v46  ;;  %2807 = vmatprep.subr.msk.bf16.mxu1 %vm90_vm2, %v934_v45  ;;  %v1072_v60 = vmul.f32 %v3385_v42, %v1047_v53  ;;  %v945_v11 = vsel %vm90_vm2, %v933_v47, 0  ;;  %v3433_v46 = vrot.slane %v2815_v28, %v3145_v16  ;;  %v3439_v47 = vrot.slane %v2815_v28, %v3141_v14 }
  0xaa   :  { %v1043_v63 = vpop.permute.xlu1 %1042  ;;  %v1041_v10 = vpop.permute.xlu0 %1040  ;;  %v1078_v35 = vpack.c.bf16 %v1072_v60, %v1072_v60  ;;  %3994 = vst [vmem:[#allocation19_spill] sm:$0xff] %v3433_v46  ;;  %3996 = vst [vmem:[#allocation21_spill] sm:$0xff] %v3439_v47 }
  0xab   :  { %v1048_v29 = vsel %vm1044_vm8, %v1043_v63, %v1037_v52  ;;  %v1045_v30 = vsel %vm1044_vm8, %v1041_v10, %v1043_v63  ;;  %v1046_v31 = vsel %vm1044_vm8, %v1039_v51, %v1041_v10  ;;  %v2804_v52 = vld [vmem:[%s3954_s2 + $0x18] sm:$0xf] }
  0xac   :  { %2800 = vmatmul.mubr.msk.bf16.vlgmr.msra.gmra.mxu0 %vm86_vm3, %v2798_v61  ;;  %2802 = vmatmul.mubr.msk.bf16.vlgmr.msra.gmra.mxu1 %vm86_vm3, %v2798_v61  ;;  %v1075_v32 = vmul.f32 %v3394_v55, %v1048_v29  ;;  %v1073_v33 = vmul.f32 %v3397_v56, %v1046_v31  ;;  %v1074_v34 = vmul.f32 %v3400_v58, %v1045_v30  ;;  %v1086_v53 = vsel %vm90_vm2, %v1078_v35, 0  ;;  %v2816_v35 = vld [vmem:[%s3954_s2 + $0x20] sm:$0xf] }
  0xad   :  { %965 = vmatpush1.bf16.msra.mxu0 %v939_v62  ;;  %1006 = vmatpush1.bf16.msra.mxu1 %v945_v11 }
  0xae   :  { %v1081_v6 = vpack.c.bf16 %v1075_v32, %v1075_v32  ;;  %v1079_v3 = vpack.c.bf16 %v1073_v33, %v1073_v33  ;;  %v1080_v39 = vpack.c.bf16 %v1074_v34, %v1074_v34  ;;  %v1186_v40 = vpop.permute.xlu1 %1185  ;;  %v1184_v41 = vpop.permute.xlu0 %1183  ;;  %982 = vmatprep.mubr.bf16.mxu0 %v3961_v8  ;;  %1023 = vmatprep.mubr.bf16.mxu1 %v3961_v8  ;;  %v2810_v32 = vld [vmem:[%s3954_s2 + $0x1c] sm:$0xf] }
  0xaf   :  { %v1194_v45 = vsel %vm1191_vm9, %v1184_v41, %v1186_v40 }
  0xb0   :  { %2811 = vmatprep.subr.msk.bf16.mxu0 %vm90_vm2, %v1079_v3  ;;  %2813 = vmatprep.subr.msk.bf16.mxu1 %vm90_vm2, %v1081_v6  ;;  %v1219_v51 = vmul.f32 %v3424_v4, %v1194_v45  ;;  %v1092_v62 = vsel %vm90_vm2, %v1080_v39, 0  ;;  %v1337_v6 = vpack.c.bf16 %v3059_v5, %v3059_v5  ;;  %v1339_v3 = vpack.c.bf16 %v3048_v2, %v3048_v2  ;;  %v1335_v2 = vld [vmem:[%s3958_s6] sm:$0xf] }
  0xb1   :  { %v1336_v39 = vpack.c.bf16 %v3043_v1, %v3043_v1 }
  0xb2   :  { %v1190_v60 = vpop.permute.xlu1 %1189  ;;  %v1188_v61 = vpop.permute.xlu0 %1187  ;;  %v1225_v28 = vpack.c.bf16 %v1219_v51, %v1219_v51 }
  0xb3   :  { %v1195_v16 = vsel %vm1191_vm9, %v1190_v60, %v1184_v41  ;;  %v1192_v15 = vsel %vm1191_vm9, %v1188_v61, %v1190_v60  ;;  %v1193_v14 = vsel %vm1191_vm9, %v1186_v40, %v1188_v61  ;;  %v1338_v40 = vpack.c.bf16 %v3038_v0, %v3038_v0 }
  0xb4   :  { %2806 = vmatmul.mubr.msk.bf16.vlgmr.msra.gmra.mxu0 %vm86_vm3, %v2804_v52  ;;  %2808 = vmatmul.mubr.msk.bf16.vlgmr.msra.gmra.mxu1 %vm86_vm3, %v2804_v52  ;;  %v1222_v63 = vmul.f32 %v3433_v46, %v1195_v16  ;;  %v1220_v10 = vmul.f32 %v3436_v13, %v1193_v14  ;;  %v1221_v11 = vmul.f32 %v3439_v47, %v1192_v15  ;;  %v1233_v33 = vsel %vm90_vm2, %v1225_v28, 0 }
  0xb5   :  { %1112 = vmatpush1.bf16.msra.mxu0 %v1086_v53  ;;  %1153 = vmatpush1.bf16.msra.mxu1 %v1092_v62  ;;  %v1344_v41 = vsel %vm90_vm2, %v1336_v39, 0  ;;  %v1350_v45 = vsel %vm90_vm2, %v1338_v40, 0 }
  0xb6   :  { %v1228_v29 = vpack.c.bf16 %v1222_v63, %v1222_v63  ;;  %v1226_v30 = vpack.c.bf16 %v1220_v10, %v1220_v10  ;;  %v1227_v31 = vpack.c.bf16 %v1221_v11, %v1221_v11  ;;  %1129 = vmatprep.mubr.bf16.mxu0 %v3961_v8  ;;  %1170 = vmatprep.mubr.bf16.mxu1 %v3961_v8 }
  0xb8   :  { %2817 = vmatprep.subr.msk.bf16.mxu0 %vm90_vm2, %v1226_v30  ;;  %2819 = vmatprep.subr.msk.bf16.mxu1 %vm90_vm2, %v1228_v29  ;;  %v1239_v34 = vsel %vm90_vm2, %v1227_v31, 0 }
  0xbc   :  { %2812 = vmatmul.mubr.msk.bf16.vlgmr.msra.gmra.mxu0 %vm86_vm3, %v2810_v32  ;;  %2814 = vmatmul.mubr.msk.bf16.vlgmr.msra.gmra.mxu1 %vm86_vm3, %v2810_v32 }
  0xbd   :  { %1259 = vmatpush1.bf16.msra.mxu0 %v1233_v33  ;;  %1300 = vmatpush1.bf16.msra.mxu1 %v1239_v34 }
  0xbe   :  { %1276 = vmatprep.mubr.bf16.mxu0 %v3961_v8  ;;  %1317 = vmatprep.mubr.bf16.mxu1 %v3961_v8 }
  0xbf   :  { %2821 = vmatprep.subr.msk.bf16.mxu0 %vm90_vm2, %v1337_v6  ;;  %2823 = vmatprep.subr.msk.bf16.mxu1 %vm90_vm2, %v1339_v3  ;;  %v188_v60 = vpop.permute.xlu0 %187 }
  0xc4   :  { %2818 = vmatmul.mubr.msk.bf16.vlgmr.msra.gmra.mxu0 %vm86_vm3, %v2816_v35  ;;  %2820 = vmatmul.mubr.msk.bf16.vlgmr.msra.gmra.mxu1 %vm86_vm3, %v2816_v35 }
  0xc5   :  { %1387 = vmatprep.mubr.bf16.mxu0 %v3961_v8  ;;  %1428 = vmatprep.mubr.bf16.mxu1 %v3961_v8 }
  0xc6   :  { %1370 = vmatpush1.bf16.msra.mxu0 %v1344_v41  ;;  %1411 = vmatpush1.bf16.msra.mxu1 %v1350_v45 }
  0xcc   :  { %2822 = vmatmul.mubr.msk.bf16.vlgmr.msra.gmra.mxu0 %vm86_vm3, %v1335_v2  ;;  %2824 = vmatmul.mubr.msk.bf16.vlgmr.msra.gmra.mxu1 %vm86_vm3, %v1335_v2 }
  0xcd   :  { %1555 = vmatprep.mubr.bf16.mxu1 %v3961_v8  ;;  %1514 = vmatprep.mubr.bf16.mxu0 %v3961_v8 }
 0x144   :  { %v137_v0 = vpop.f32.mrf.mxu0  ;;  %v178_v1 = vpop.f32.mrf.mxu1 }
 0x145   :  { %v190_v16 = vadd.f32 %v188_v60, %v137_v0  ;;  %v192_v56 = vadd.f32 %v188_v60, %v178_v1 }
 0x146   :  { %v139_v5 = vpop.f32.mrf.mxu0  ;;  %v180_v51 = vpop.f32.mrf.mxu1 }
 0x147   :  { %v191_v9 = vadd.f32 %v188_v60, %v139_v5 }
 0x148   :  { %v141_v52 = vpop.f32.mrf.mxu0  ;;  %v182_v53 = vpop.f32.mrf.mxu1 }
 0x14a   :  { %v142_v61 = vpop.f32.mrf.mxu0  ;;  %v183_v62 = vpop.f32.mrf.mxu1 }
 0x14c   :  { %v289_v15 = vpop.f32.mrf.mxu0  ;;  %v330_v14 = vpop.f32.mrf.mxu1 }
 0x14d   :  { %v3497_v63 = vadd.f32 %v289_v15, %v190_v16 }
 0x14e   :  { %v291_v10 = vpop.f32.mrf.mxu0  ;;  %v332_v11 = vpop.f32.mrf.mxu1 }
 0x14f   :  { %v338_v37 = vadd.f32 %v291_v10, %v191_v9 }
 0x150   :  { %v293_v28 = vpop.f32.mrf.mxu0  ;;  %v334_v29 = vpop.f32.mrf.mxu1 }
 0x152   :  { %v294_v30 = vpop.f32.mrf.mxu0  ;;  %v335_v31 = vpop.f32.mrf.mxu1 }
 0x154   :  { %v3499_v32 = vpop.f32.mrf.mxu0  ;;  %v477_v33 = vpop.f32.mrf.mxu1 }
 0x156   :  { %v438_v34 = vpop.f32.mrf.mxu0  ;;  %v479_v35 = vpop.f32.mrf.mxu1 }
 0x158   :  { %v440_v6 = vpop.f32.mrf.mxu0  ;;  %v481_v3 = vpop.f32.mrf.mxu1 }
 0x15a   :  { %v441_v39 = vpop.f32.mrf.mxu0  ;;  %v482_v40 = vpop.f32.mrf.mxu1 }
 0x15c   :  { %v3501_v41 = vpop.f32.mrf.mxu0  ;;  %v624_v45 = vpop.f32.mrf.mxu1 }
 0x15e   :  { %v585_v2 = vpop.f32.mrf.mxu0  ;;  %v626_v0 = vpop.f32.mrf.mxu1 }
 0x160   :  { %v587_v52 = vpop.f32.mrf.mxu0  ;;  %v628_v53 = vpop.f32.mrf.mxu1 }
 0x162   :  { %v588_v61 = vpop.f32.mrf.mxu0  ;;  %v629_v62 = vpop.f32.mrf.mxu1 }
 0x164   :  { %v3503_v16 = vpop.f32.mrf.mxu0  ;;  %v731_v15 = vpop.f32.mrf.mxu1 }
 0x166   :  { %v692_v28 = vpop.f32.mrf.mxu0  ;;  %v733_v29 = vpop.f32.mrf.mxu1 }
 0x168   :  { %v694_v30 = vpop.f32.mrf.mxu0  ;;  %v735_v31 = vpop.f32.mrf.mxu1 }
 0x169   :  { %v193_v30 = vadd.f32 %v188_v60, %v180_v51  ;;  %v339_v31 = vadd.f32 %v330_v14, %v192_v56 }
 0x16a   :  { %v695_v6 = vpop.f32.mrf.mxu0  ;;  %v736_v3 = vpop.f32.mrf.mxu1 }
 0x16b   :  { %v340_v49 = vadd.f32 %v332_v11, %v193_v30  ;;  %v486_v47 = vadd.f32 %v477_v33, %v339_v31 }
 0x16c   :  { %v3505_v39 = vpop.f32.mrf.mxu0  ;;  %v878_v40 = vpop.f32.mrf.mxu1 }
 0x16e   :  { %v839_v8 = vpop.f32.mrf.mxu0  ;;  %v880_v4 = vpop.f32.mrf.mxu1 }
 0x170   :  { %v841_v13 = vpop.f32.mrf.mxu0  ;;  %v882_v42 = vpop.f32.mrf.mxu1 }
 0x171   :  { %v485_v13 = vadd.f32 %v438_v34, %v338_v37  ;;  %v487_v42 = vadd.f32 %v479_v35, %v340_v49 }
 0x172   :  { %v842_v52 = vpop.f32.mrf.mxu0  ;;  %v883_v53 = vpop.f32.mrf.mxu1 }
 0x173   :  { %v633_v52 = vadd.f32 %v624_v45, %v486_v47  ;;  %v632_v17 = vadd.f32 %v585_v2, %v485_v13  ;;  %v634_v27 = vadd.f32 %v626_v0, %v487_v42 }
 0x174   :  { %v3507_v61 = vpop.f32.mrf.mxu0  ;;  %v1025_v62 = vpop.f32.mrf.mxu1 }
 0x175   :  { %v740_v1 = vadd.f32 %v731_v15, %v633_v52  ;;  %v739_v5 = vadd.f32 %v692_v28, %v632_v17  ;;  %v741_v51 = vadd.f32 %v733_v29, %v634_v27 }
 0x176   :  { %v986_v59 = vpop.f32.mrf.mxu0  ;;  %v1027_v20 = vpop.f32.mrf.mxu1 }
 0x177   :  { %v887_v56 = vadd.f32 %v878_v40, %v740_v1  ;;  %v886_v9 = vadd.f32 %v839_v8, %v739_v5  ;;  %v888_v10 = vadd.f32 %v880_v4, %v741_v51 }
 0x178   :  { %v988_v6 = vpop.f32.mrf.mxu0  ;;  %v1029_v3 = vpop.f32.mrf.mxu1 }
 0x179   :  { %v1034_v11 = vadd.f32 %v1025_v62, %v887_v56  ;;  %v1033_v37 = vadd.f32 %v986_v59, %v886_v9  ;;  %v1035_v49 = vadd.f32 %v1027_v20, %v888_v10  ;;  %v1334_v6 = vld [vmem:[%s3957_s5] sm:$0xff] }
 0x17a   :  { %v989_v36 = vpop.f32.mrf.mxu0  ;;  %v1030_v46 = vpop.f32.mrf.mxu1 }
 0x17c   :  { %v1131_v53 = vpop.f32.mrf.mxu0  ;;  %v1172_v57 = vpop.f32.mrf.mxu1 }
 0x17d   :  { %v1181_v47 = vadd.f32 %v1172_v57, %v1034_v11 }
 0x17e   :  { %v1133_v43 = vpop.f32.mrf.mxu0  ;;  %v1174_v58 = vpop.f32.mrf.mxu1 }
 0x17f   :  { %v1180_v35 = vadd.f32 %v1133_v43, %v1033_v37  ;;  %v1182_v45 = vadd.f32 %v1174_v58, %v1035_v49  ;;  %v484_v43 = vadd.f32 %v3499_v32, %v3497_v63 }
 0x180   :  { %v1135_v60 = vpop.f32.mrf.mxu0  ;;  %v1176_v14 = vpop.f32.mrf.mxu1 }
 0x181   :  { %v631_v58 = vadd.f32 %v3501_v41, %v484_v43 }
 0x182   :  { %v1136_v36 = vpop.f32.mrf.mxu0  ;;  %v1177_v46 = vpop.f32.mrf.mxu1 }
 0x183   :  { %v738_v40 = vadd.f32 %v3503_v16, %v631_v58 }
 0x184   :  { %v1278_v33 = vpop.f32.mrf.mxu0  ;;  %v1319_v34 = vpop.f32.mrf.mxu1 }
 0x185   :  { %v1328_v2 = vadd.f32 %v1319_v34, %v1181_v47  ;;  %v885_v62 = vadd.f32 %v3505_v39, %v738_v40 }
 0x186   :  { %v1280_v0 = vpop.f32.mrf.mxu0  ;;  %v1321_v15 = vpop.f32.mrf.mxu1 }
 0x187   :  { %v3509_v17 = vmax.f32 %v1328_v2, 0.0  ;;  %v1327_v27 = vadd.f32 %v1280_v0, %v1180_v35  ;;  %v1329_v28 = vadd.f32 %v1321_v15, %v1182_v45  ;;  %v1032_v63 = vadd.f32 %v3507_v61, %v885_v62 }
 0x188   :  { %v1282_v29 = vpop.f32.mrf.mxu0  ;;  %v1323_v8 = vpop.f32.mrf.mxu1  ;;  %v3997_v45 = vmov 0  }
 0x189   :  { %v3511_v4 = vmax.f32 %v1329_v28, 0.0  ;;  %1450 = vrot.lane.b32.xlu1 %v3509_v17, %s2979_s13  ;;  %v3515_v20 = vmax.f32 %v1327_v27, 0.0  ;;  %v1179_v32 = vadd.f32 %v1131_v53, %v1032_v63 }
 0x18a   :  { %v1283_v59 = vpop.f32.mrf.mxu0  ;;  %v1324_v57 = vpop.f32.mrf.mxu1 }
 0x18b   :  { %1452 = vrot.lane.b32.xlu0 %v3511_v4, %s2979_s13  ;;  %v1326_v41 = vadd.f32 %v1278_v33, %v1179_v32  ;;  %v3649_v59 = vld [vmem:[%s3956_s4 + $0x4] sm:$0xf] }
 0x18c   :  { %v3581_v39 = vpop.f32.mrf.mxu0  ;;  %v3583_v61 = vpop.f32.mrf.mxu1 }
 0x18d   :  { %1448 = vrot.lane.b32.xlu1 %v3515_v20, %s2979_s13  ;;  %v3541_v16 = vmax.f32 %v1326_v41, 0.0 }
 0x18e   :  { %v3587_v30 = vpop.f32.mrf.mxu1  ;;  %v3589_v31 = vpop.f32.mrf.mxu0 }
 0x18f   :  { %1572 = vrot.lane.b32.xlu0 %v3509_v17, %s2981_s0 }
 0x190   :  { %v1434_v3 = vpop.f32.mrf.mxu1  ;;  %v1393_v13 = vpop.f32.mrf.mxu0 }
 0x191   :  { %1570 = vrot.lane.b32.xlu1 %v3515_v20, %s2981_s0  ;;  %v3673_v3 = vld [vmem:[%s3956_s4 + $0x8] sm:$0xf] }
 0x192   :  { %v1435_v42 = vpop.f32.mrf.mxu1  ;;  %v1394_v52 = vpop.f32.mrf.mxu0 }
 0x193   :  { %1693 = vrot.lane.b32.xlu0 %v3515_v20, %s2982_s14 }
 0x195   :  { %1574 = vrot.lane.b32.xlu1 %v3511_v4, %s2981_s0 }
 0x197   :  { %1697 = vrot.lane.b32.xlu0 %v3511_v4, %s2982_s14 }
 0x199   :  { %1695 = vrot.lane.b32.xlu1 %v3509_v17, %s2982_s14 }
 0x19b   :  { %1818 = vrot.lane.b32.xlu0 %v3509_v17, %s2983_s15 }
 0x19d   :  { %1816 = vrot.lane.b32.xlu1 %v3515_v20, %s2983_s15 }
 0x19f   :  { %2044 = vrot.lane.b32.xlu0 %v3541_v16, %s2984_s16 }
 0x1a1   :  { %1820 = vrot.lane.b32.xlu1 %v3511_v4, %s2983_s15 }
 0x1a3   :  { %2050 = vrot.lane.b32.xlu0 %v3511_v4, %s2984_s16 }
 0x1a5   :  { %2048 = vrot.lane.b32.xlu1 %v3509_v17, %s2984_s16 }
 0x1a7   :  { %2171 = vrot.lane.b32.xlu0 %v3509_v17, %s2985_s17 }
 0x1a9   :  { %2167 = vrot.lane.b32.xlu1 %v3541_v16, %s2985_s17 }
 0x1ab   :  { %2290 = vrot.lane.b32.xlu0 %v3541_v16, %s2986_s18 }
 0x1ad   :  { %2173 = vrot.lane.b32.xlu1 %v3511_v4, %s2985_s17 }
 0x1af   :  { %2296 = vrot.lane.b32.xlu0 %v3511_v4, %s2986_s18 }
 0x1b1   :  { %2294 = vrot.lane.b32.xlu1 %v3509_v17, %s2986_s18 }
 0x1b3   :  { %2413 = vrot.lane.b32.xlu0 %v3541_v16, %s2987_s19 }
 0x1b5   :  { %1446 = vrot.lane.b32.xlu1 %v3541_v16, %s2979_s13 }
 0x1b7   :  { %2419 = vrot.lane.b32.xlu0 %v3511_v4, %s2987_s19 }
 0x1b9   :  { %2417 = vrot.lane.b32.xlu1 %v3509_v17, %s2987_s19 }
 0x1bb   :  { %1691 = vrot.lane.b32.xlu0 %v3541_v16, %s2982_s14 }
 0x1bd   :  { %1568 = vrot.lane.b32.xlu1 %v3541_v16, %s2981_s0 }
 0x1bf   :  { %2046 = vrot.lane.b32.xlu0 %v3515_v20, %s2984_s16 }
 0x1c1   :  { %1814 = vrot.lane.b32.xlu1 %v3541_v16, %s2983_s15 }
 0x1c3   :  { %2292 = vrot.lane.b32.xlu0 %v3515_v20, %s2986_s18 }
 0x1c5   :  { %2169 = vrot.lane.b32.xlu1 %v3515_v20, %s2985_s17 }
 0x1c7   :  { %1439 = vperm.xlu0 %2940, %v1334_v6  }
 0x1c9   :  { %2415 = vrot.lane.b32.xlu1 %v3515_v20, %s2987_s19 }
 0x1fb   :  { %v1451_v53 = vpop.permute.xlu1 %1450 }
 0x1fd   :  { %v3598_v1 = vpop.permute.xlu0 %1452 }
 0x1fe   :  { %v1454_v5 = vsel %vm50_vm0, %v1451_v53, %v3598_v1 }
 0x1ff   :  { %v1461_v51 = vmul.f32 %v1454_v5, %v3164_v24  ;;  %v3604_v56 = vpop.permute.xlu1 %1448 }
 0x200   :  { %v1455_v60 = vsel %vm50_vm0, %v3604_v56, %v1451_v53 }
 0x201   :  { %v1466_v14 = vpack.c.bf16 %v1461_v51, %v1461_v51  ;;  %v1460_v9 = vmul.f32 %v1455_v60, %v3158_v22  ;;  %v1573_v10 = vpop.permute.xlu0 %1572  ;;  %v3623_v22 = vld [vmem:[%s3956_s4] sm:$0xf] }
 0x203   :  { %v1465_v11 = vpack.c.bf16 %v1460_v9, %v1460_v9  ;;  %2827 = vmatprep.subr.msk.bf16.mxu1 %vm90_vm2, %v1466_v14  ;;  %v3611_v36 = vpop.permute.xlu1 %1570  ;;  %v1941_v9 = vpack.c.bf16 %v3509_v17, %v3509_v17 }
 0x204   :  { %v1577_v46 = vsel %vm202_vm1, %v3611_v36, %v1573_v10 }
 0x205   :  { %v1582_v24 = vmul.f32 %v1577_v46, %v3188_v44  ;;  %v3617_v37 = vpop.permute.xlu0 %1693  ;;  %v1477_v49 = vsel %vm90_vm2, %v1465_v11, 0 }
 0x206   :  { %1538 = vmatpush1.bf16.msra.mxu1 %v1477_v49 }
 0x207   :  { %v3625_v47 = vpop.permute.xlu1 %1574  ;;  %v1588_v34 = vpack.c.bf16 %v1582_v24, %v1582_v24 }
 0x208   :  { %v1576_v33 = vsel %vm202_vm1, %v1573_v10, %v3625_v47  ;;  %v3703_v10 = vld [vmem:[%s3956_s4 + $0xc] sm:$0xf] }
 0x209   :  { %v1583_v35 = vmul.f32 %v1576_v33, %v3196_v48  ;;  %v3631_v44 = vpop.permute.xlu0 %1697  ;;  %2828 = vmatmul.mubr.msk.bf16.vlgmr.msra.gmra.mxu1 %vm86_vm3, %v3623_v22  ;;  %v1600_v8 = vsel %vm90_vm2, %v1588_v34, 0 }
 0x20a   :  { %1678 = vmatprep.mubr.bf16.mxu1 %v3997_v45 }
 0x20b   :  { %v1589_v2 = vpack.c.bf16 %v1583_v35, %v1583_v35  ;;  %v1696_v0 = vpop.permute.xlu1 %1695 }
 0x20c   :  { %v1699_v15 = vsel %vm349_vm4, %v1696_v0, %v3631_v44  ;;  %v1700_v27 = vsel %vm349_vm4, %v3617_v37, %v1696_v0 }
 0x20d   :  { %v1705_v28 = vmul.f32 %v1700_v27, %v3228_v18  ;;  %v1706_v48 = vmul.f32 %v1699_v15, %v3235_v26  ;;  %v1819_v29 = vpop.permute.xlu0 %1818  ;;  %2832 = vmatprep.subr.msk.bf16.mxu1 %vm90_vm2, %v1589_v2  ;;  %v3722_v2 = vld [vmem:[%s3956_s4 + $0x10] sm:$0xf] }
 0x20e   :  { %1661 = vmatpush1.bf16.msra.mxu1 %v1600_v8 }
 0x20f   :  { %v1711_v57 = vpack.c.bf16 %v1705_v28, %v1705_v28  ;;  %v1712_v43 = vpack.c.bf16 %v1706_v48, %v1706_v48  ;;  %v3651_v58 = vpop.permute.xlu1 %1816 }
 0x210   :  { %v1823_v18 = vsel %vm496_vm5, %v3651_v58, %v1819_v29 }
 0x211   :  { %v1828_v26 = vmul.f32 %v1823_v18, %v3267_v50  ;;  %v3657_v40 = vpop.permute.xlu0 %2044  ;;  %2833 = vmatmul.mubr.msk.bf16.vlgmr.msra.gmra.mxu1 %vm86_vm3, %v3649_v59  ;;  %2837 = vmatprep.subr.msk.bf16.mxu1 %vm90_vm2, %v1712_v43  ;;  %v1723_v62 = vsel %vm90_vm2, %v1711_v57, 0 }
 0x212   :  { %1784 = vmatpush1.bf16.msra.mxu1 %v1723_v62  ;;  %1801 = vmatprep.mubr.bf16.mxu1 %v3997_v45 }
 0x213   :  { %v3664_v63 = vpop.permute.xlu1 %1820  ;;  %v1834_v41 = vpack.c.bf16 %v1828_v26, %v1828_v26 }
 0x214   :  { %v1822_v32 = vsel %vm496_vm5, %v1819_v29, %v3664_v63 }
 0x215   :  { %v1829_v50 = vmul.f32 %v1822_v32, %v3274_v54  ;;  %v2051_v6 = vpop.permute.xlu0 %2050  ;;  %v1846_v53 = vsel %vm90_vm2, %v1834_v41, 0  ;;  %v1942_v54 = vpack.c.bf16 %v3511_v4, %v3511_v4 }
 0x216   :  { %v2055_v5 = vsel %vm750_vm6, %v2051_v6, %v3657_v40 }
 0x217   :  { %v1835_v13 = vpack.c.bf16 %v1829_v50, %v1829_v50  ;;  %v3675_v42 = vpop.permute.xlu1 %2048  ;;  %v2059_v60 = vmul.f32 %v2055_v5, %v3311_v7  ;;  %v1953_v7 = vsel %vm90_vm2, %v1941_v9, 0 }
 0x218   :  { %v2052_v4 = vsel %vm750_vm6, %v3675_v42, %v2051_v6  ;;  %v3761_v6 = vld [vmem:[%s3956_s4 + $0x14] sm:$0xf] }
 0x219   :  { %v3677_v52 = vpop.permute.xlu0 %2171  ;;  %2838 = vmatmul.mubr.msk.bf16.vlgmr.msra.gmra.mxu1 %vm86_vm3, %v3673_v3  ;;  %2842 = vmatprep.subr.msk.bf16.mxu1 %vm90_vm2, %v1835_v13  ;;  %v2065_v46 = vpack.c.bf16 %v2059_v60, %v2059_v60  ;;  %v2058_v24 = vmul.f32 %v2052_v4, %v3320_v38  ;;  %v3999_v60 = vld [vmem:[#allocation6_spill] sm:$0xff] }
 0x21a   :  { %1907 = vmatpush1.bf16.msra.mxu1 %v1846_v53  ;;  %1924 = vmatprep.mubr.bf16.mxu1 %v3997_v45 }
 0x21b   :  { %2847 = vmatprep.subr.msk.bf16.mxu1 %vm90_vm2, %v1942_v54  ;;  %v3690_v51 = vpop.permute.xlu1 %2167  ;;  %v2064_v34 = vpack.c.bf16 %v2058_v24, %v2058_v24  ;;  %v4002_v24 = vld [vmem:[#allocation7_spill] sm:$0xff] }
 0x21d   :  { %v3693_v14 = vpop.permute.xlu0 %2290  ;;  %v2076_v57 = vsel %vm90_vm2, %v2064_v34, 0 }
 0x21f   :  { %v2174_v11 = vpop.permute.xlu1 %2173 }
 0x220   :  { %v2178_v17 = vsel %vm897_vm7, %v2174_v11, %v3690_v51  ;;  %v2175_v0 = vsel %vm897_vm7, %v3677_v52, %v2174_v11 }
 0x221   :  { %v2297_v49 = vpop.permute.xlu0 %2296  ;;  %2843 = vmatmul.mubr.msk.bf16.vlgmr.msra.gmra.mxu1 %vm86_vm3, %v3703_v10  ;;  %v2182_v38 = vmul.f32 %v2178_v17, %v3355_v19  ;;  %v2181_v43 = vmul.f32 %v2175_v0, %v3361_v25  ;;  %v4003_v0 = vld [vmem:[#allocation19_spill] sm:$0xff] }
 0x222   :  { %2014 = vmatpush1.bf16.msra.mxu1 %v1953_v7  ;;  %2031 = vmatprep.mubr.bf16.mxu1 %v3997_v45 }
 0x223   :  { %2852 = vmatprep.subr.msk.bf16.mxu1 %vm90_vm2, %v2065_v46  ;;  %v3714_v33 = vpop.permute.xlu1 %2294  ;;  %v2188_v28 = vpack.c.bf16 %v2182_v38, %v2182_v38  ;;  %v2187_v62 = vpack.c.bf16 %v2181_v43, %v2181_v43  ;;  %v4001_v46 = vld [vmem:[#allocation8_spill] sm:$0xff]  ;;  %v3801_v43 = vld [vmem:[%s3956_s4 + $0x18] sm:$0xf] }
 0x224   :  { %v2298_v32 = vsel %vm1044_vm8, %v3714_v33, %v2297_v49 }
 0x225   :  { %v3717_v35 = vpop.permute.xlu0 %2413 }
 0x227   :  { %v1447_v15 = vpop.permute.xlu1 %1446 }
 0x228   :  { %v1456_v27 = vsel %vm50_vm0, %v1447_v15, %v3604_v56  ;;  %v1457_v19 = vsel %vm50_vm0, %v3598_v1, %v1447_v15  ;;  %v2301_v56 = vsel %vm1044_vm8, %v2297_v49, %v3693_v14 }
 0x229   :  { %v1458_v48 = vmul.f32 %v1457_v19, %v3155_v21  ;;  %v1459_v29 = vmul.f32 %v1456_v27, %v3161_v23  ;;  %v2420_v8 = vpop.permute.xlu0 %2419  ;;  %2848 = vmatmul.mubr.msk.bf16.vlgmr.msra.gmra.mxu1 %vm86_vm3, %v3722_v2  ;;  %v2305_v23 = vmul.f32 %v2301_v56, %v3394_v55 }
 0x22a   :  { %2137 = vmatpush1.bf16.msra.mxu1 %v2076_v57  ;;  %2154 = vmatprep.mubr.bf16.mxu1 %v3997_v45  ;;  %v2424_v11 = vsel %vm1191_vm9, %v2420_v8, %v3717_v35 }
 0x22b   :  { %v1463_v1 = vpack.c.bf16 %v1458_v48, %v1458_v48  ;;  %v1464_v18 = vpack.c.bf16 %v1459_v29, %v1459_v29  ;;  %2857 = vmatprep.subr.msk.bf16.mxu1 %vm90_vm2, %v2188_v28  ;;  %v3744_v21 = vpop.permute.xlu1 %2417  ;;  %v2311_v54 = vpack.c.bf16 %v2305_v23, %v2305_v23  ;;  %v2428_v15 = vmul.f32 %v2424_v11, %v4003_v0  ;;  %v4004_v28 = vld [vmem:[#allocation9_spill] sm:$0xff]  ;;  %v4009_v11 = vld [vmem:[#allocation14_spill] sm:$0xff] }
 0x22c   :  { %v2421_v57 = vsel %vm1191_vm9, %v3744_v21, %v2420_v8 }
 0x22d   :  { %v1692_v26 = vpop.permute.xlu0 %1691  ;;  %2825 = vmatprep.subr.msk.bf16.mxu0 %vm90_vm2, %v1464_v18  ;;  %v1471_v25 = vsel %vm90_vm2, %v1463_v1, 0  ;;  %v2434_v56 = vpack.c.bf16 %v2428_v15, %v2428_v15  ;;  %v4005_v18 = vld [vmem:[#allocation21_spill] sm:$0xff] }
 0x22e   :  { %1497 = vmatpush1.bf16.msra.mxu0 %v1471_v25  ;;  %v1701_v41 = vsel %vm349_vm4, %v1692_v26, %v3617_v37  ;;  %v1702_v50 = vsel %vm349_vm4, %v3631_v44, %v1692_v26  ;;  %v3998_v37 = vld [vmem:[#allocation17_spill] sm:$0xff]  ;;  %v2427_v23 = vmul.f32 %v2421_v57, %v4005_v18  ;;  %v4006_v26 = vld [vmem:[#allocation10_spill] sm:$0xff] }
 0x22f   :  { %v1569_v55 = vpop.permute.xlu1 %1568  ;;  %v2304_v5 = vmul.f32 %v2298_v32, %v3998_v37  ;;  %v4000_v44 = vld [vmem:[#allocation5_spill] sm:$0xff]  ;;  %v1704_v49 = vmul.f32 %v1701_v41, %v4002_v24  ;;  %v1939_v37 = vpack.c.bf16 %v3541_v16, %v3541_v16 }
 0x230   :  { %v1578_v13 = vsel %vm202_vm1, %v1569_v55, %v3611_v36  ;;  %v1579_v53 = vsel %vm202_vm1, %v3625_v47, %v1569_v55  ;;  %v1703_v36 = vmul.f32 %v1702_v50, %v4001_v46  ;;  %v2199_v47 = vsel %vm90_vm2, %v2187_v62, 0  ;;  %v4010_v24 = vld [vmem:[#allocation13_spill] sm:$0xff] }
 0x231   :  { %v1580_v9 = vmul.f32 %v1579_v53, %v3999_v60  ;;  %v1581_v4 = vmul.f32 %v1578_v13, %v4000_v44  ;;  %2826 = vmatmul.mubr.msk.bf16.vlgmr.msra.gmra.mxu0 %vm86_vm3, %v3623_v22  ;;  %2853 = vmatmul.mubr.msk.bf16.vlgmr.msra.gmra.mxu1 %vm86_vm3, %v3761_v6  ;;  %v2310_v38 = vpack.c.bf16 %v2304_v5, %v2304_v5  ;;  %v2047_v41 = vpop.permute.xlu0 %2046  ;;  %v4008_v60 = vld [vmem:[#allocation11_spill] sm:$0xff]  ;;  %v2946_v18 = vld [vmem:[%s3959_s7 + $0x28] sm:$0xff]  }
 0x232   :  { %1637 = vmatprep.mubr.bf16.mxu0 %v3997_v45  ;;  %2260 = vmatpush1.bf16.msra.mxu1 %v2199_v47  ;;  %v1709_v27 = vpack.c.bf16 %v1703_v36, %v1703_v36  ;;  %v1710_v19 = vpack.c.bf16 %v1704_v49, %v1704_v49  ;;  %v2433_v62 = vpack.c.bf16 %v2427_v23, %v2427_v23  ;;  %v2947_v23 = vld [vmem:[%s3959_s7 + $0x60] sm:$0xff]  }
 0x233   :  { %v1586_v7 = vpack.c.bf16 %v1580_v9, %v1580_v9  ;;  %v1587_v17 = vpack.c.bf16 %v1581_v4, %v1581_v4  ;;  %v1815_v34 = vpop.permute.xlu1 %1814  ;;  %2862 = vmatprep.subr.msk.bf16.mxu1 %vm90_vm2, %v2311_v54  ;;  %2277 = vmatprep.mubr.bf16.mxu1 %v3997_v45  ;;  %v2322_v1 = vsel %vm90_vm2, %v2310_v38, 0  ;;  %v1940_v13 = vpack.c.bf16 %v3515_v20, %v3515_v20 }
 0x234   :  { %v1824_v22 = vsel %vm496_vm5, %v1815_v34, %v3651_v58  ;;  %v1825_v58 = vsel %vm496_vm5, %v3664_v63, %v1815_v34  ;;  %v1717_v63 = vsel %vm90_vm2, %v1709_v27, 0  ;;  %v2445_v55 = vsel %vm90_vm2, %v2433_v62, 0  ;;  %v2952_v62 = vld [vmem:[%s3959_s7 + $0x10] sm:$0xff]  }
 0x235   :  { %2830 = vmatprep.subr.msk.bf16.mxu0 %vm90_vm2, %v1587_v17  ;;  %v1827_v48 = vmul.f32 %v1824_v22, %v4004_v28  ;;  %v1594_v29 = vsel %vm90_vm2, %v1586_v7, 0  ;;  %v1826_v25 = vmul.f32 %v1825_v58, %v4006_v26  ;;  %v2053_v53 = vsel %vm750_vm6, %v2047_v41, %v3675_v42  ;;  %v2864_v42 = vld [vmem:[%s3956_s4 + $0x20] sm:$0xf]  ;;  %v2293_v36 = vpop.permute.xlu0 %2292 }
 0x236   :  { %1620 = vmatpush1.bf16.msra.mxu0 %v1594_v29  ;;  %v2054_v20 = vsel %vm750_vm6, %v3657_v40, %v2047_v41  ;;  %v1947_v4 = vsel %vm90_vm2, %v1939_v37, 0  ;;  %v2299_v7 = vsel %vm1044_vm8, %v2293_v36, %v3714_v33  ;;  %v4011_v17 = vld [vmem:[#allocation16_spill] sm:$0xff]  ;;  %v2300_v22 = vsel %vm1044_vm8, %v3693_v14, %v2293_v36  ;;  %v4014_v29 = vld [vmem:[#allocation18_spill] sm:$0xff] }
 0x237   :  { %2835 = vmatprep.subr.msk.bf16.mxu0 %vm90_vm2, %v1710_v19  ;;  %v1833_v8 = vpack.c.bf16 %v1827_v48, %v1827_v48  ;;  %v1832_v32 = vpack.c.bf16 %v1826_v25, %v1826_v25  ;;  %v2170_v5 = vpop.permute.xlu1 %2169  ;;  %v2056_v9 = vmul.f32 %v2054_v20, %v4008_v60  ;;  %v4013_v14 = vld [vmem:[#allocation20_spill] sm:$0xff]  ;;  %v2949_v25 = vld [vmem:[%s3959_s7 + $0x58] sm:$0xff]  }
 0x238   :  { %v2176_v16 = vsel %vm897_vm7, %v2170_v5, %v3677_v52  ;;  %v2948_v26 = vld [vmem:[%s3959_s7 + $0x20] sm:$0xff]  }
 0x239   :  { %2831 = vmatmul.mubr.msk.bf16.vlgmr.msra.gmra.mxu0 %vm86_vm3, %v3649_v59  ;;  %2858 = vmatmul.mubr.msk.bf16.vlgmr.msra.gmra.mxu1 %vm86_vm3, %v3801_v43  ;;  %v2859_v59 = vld [vmem:[%s3956_s4 + $0x1c] sm:$0xf]  ;;  %v1840_v50 = vsel %vm90_vm2, %v1832_v32, 0  ;;  %v2062_v40 = vpack.c.bf16 %v2056_v9, %v2056_v9  ;;  %v2180_v46 = vmul.f32 %v2176_v16, %v4009_v11  ;;  %v2953_v32 = vld [vmem:[%s3959_s7 + $0x48] sm:$0xff]   ;;  %v2955_v41 = vld [vmem:[%s3959_s7 + $0x40] sm:$0xff]  }
 0x23a   :  { %2383 = vmatpush1.bf16.msra.mxu1 %v2322_v1  ;;  %1743 = vmatpush1.bf16.msra.mxu0 %v1717_v63  ;;  %v2945_v1 = vld [vmem:[%s3959_s7 + $0x68] sm:$0xff]   ;;  %v2951_v63 = vld [vmem:[%s3959_s7 + $0x50] sm:$0xff]  }
 0x23b   :  { %2867 = vmatprep.subr.msk.bf16.mxu1 %vm90_vm2, %v2434_v56  ;;  %2840 = vmatprep.subr.msk.bf16.mxu0 %vm90_vm2, %v1833_v8  ;;  %v2186_v47 = vpack.c.bf16 %v2180_v46, %v2180_v46  ;;  %v2070_v52 = vsel %vm90_vm2, %v2062_v40, 0  ;;  %v2416_v38 = vpop.permute.xlu1 %2415  ;;  %v2950_v8 = vld [vmem:[%s3959_s7 + $0x18] sm:$0xff]  }
 0x23c   :  { %1760 = vmatprep.mubr.bf16.mxu0 %v3997_v45  ;;  %2400 = vmatprep.mubr.bf16.mxu1 %v3997_v45  ;;  %v2422_v27 = vsel %vm1191_vm9, %v2416_v38, %v3744_v21  ;;  %v2423_v48 = vsel %vm1191_vm9, %v3717_v35, %v2416_v38  ;;  %v2942_v35 = vld [vmem:[%s3959_s7 + $0x38] sm:$0xff]  }
 0x23d   :  { %v2426_v28 = vmul.f32 %v2422_v27, %v4013_v14 }
 0x23f   :  { %v2432_v57 = vpack.c.bf16 %v2426_v28, %v2426_v28 }
 0x241   :  { %2836 = vmatmul.mubr.msk.bf16.vlgmr.msra.gmra.mxu0 %vm86_vm3, %v3673_v3  ;;  %2863 = vmatmul.mubr.msk.bf16.vlgmr.msra.gmra.mxu1 %vm86_vm3, %v2859_v59  ;;  %v4007_v3 = vld [vmem:[#allocation12_spill] sm:$0xff] }
 0x242   :  { %1866 = vmatpush1.bf16.msra.mxu0 %v1840_v50  ;;  %2506 = vmatpush1.bf16.msra.mxu1 %v2445_v55  ;;  %v2057_v54 = vmul.f32 %v2053_v53, %v4007_v3  ;;  %v2956_v50 = vld [vmem:[%s3959_s7] sm:$0xff]  }
 0x243   :  { %2845 = vmatprep.subr.msk.bf16.mxu0 %vm90_vm2, %v1940_v13  ;;  %1883 = vmatprep.mubr.bf16.mxu0 %v3997_v45 }
 0x244   :  { %2523 = vmatprep.mubr.bf16.mxu1 %v3997_v45  ;;  %v2063_v44 = vpack.c.bf16 %v2057_v54, %v2057_v54  ;;  %2907 = vmatprep.subr.bf16.mxu1 %v2941_v12 }
 0x249   :  { %2841 = vmatmul.mubr.msk.bf16.vlgmr.msra.gmra.mxu0 %vm86_vm3, %v3703_v10  ;;  %2868 = vmatmul.mubr.msk.bf16.vlgmr.msra.gmra.mxu1 %vm86_vm3, %v2864_v42  ;;  %v2177_v10 = vsel %vm897_vm7, %v3690_v51, %v2170_v5  ;;  %v2303_v51 = vmul.f32 %v2299_v7, %v4011_v17 }
 0x24a   :  { %1973 = vmatpush1.bf16.msra.mxu0 %v1947_v4  ;;  %1990 = vmatprep.mubr.bf16.mxu0 %v3997_v45  ;;  %v2179_v49 = vmul.f32 %v2177_v10, %v4010_v24 }
 0x24b   :  { %2850 = vmatprep.subr.msk.bf16.mxu0 %vm90_vm2, %v2063_v44  ;;  %v2309_v15 = vpack.c.bf16 %v2303_v51, %v2303_v51  ;;  %2908 = vmatpush3.bf16.msra.mxu1 %v2942_v35 }
 0x24c   :  { %v2185_v34 = vpack.c.bf16 %v2179_v49, %v2179_v49 }
 0x24e   :  { %v2193_v33 = vsel %vm90_vm2, %v2185_v34, 0  ;;  %v1440_v34 = vpop.permute.xlu0 %1439 }
 0x251   :  { %2846 = vmatmul.mubr.msk.bf16.vlgmr.msra.gmra.mxu0 %vm86_vm3, %v3722_v2  ;;  %v4012_v2 = vld [vmem:[#allocation15_spill] sm:$0xff] }
 0x252   :  { %2096 = vmatpush1.bf16.msra.mxu0 %v2070_v52  ;;  %2113 = vmatprep.mubr.bf16.mxu0 %v3997_v45  ;;  %v2302_v0 = vmul.f32 %v2300_v22, %v4012_v2  ;;  %v1444_v2 = vadd.f32 %v1440_v34, %v3583_v61 }
 0x253   :  { %2855 = vmatprep.subr.msk.bf16.mxu0 %vm90_vm2, %v2186_v47 }
 0x254   :  { %v2308_v19 = vpack.c.bf16 %v2302_v0, %v2302_v0 }
 0x256   :  { %v2316_v21 = vsel %vm90_vm2, %v2308_v19, 0 }
 0x259   :  { %2851 = vmatmul.mubr.msk.bf16.vlgmr.msra.gmra.mxu0 %vm86_vm3, %v3761_v6  ;;  %v2425_v6 = vmul.f32 %v2423_v48, %v4014_v29 }
 0x25a   :  { %2219 = vmatpush1.bf16.msra.mxu0 %v2193_v33  ;;  %2236 = vmatprep.mubr.bf16.mxu0 %v3997_v45  ;;  %v1445_v33 = vadd.f32 %v1440_v34, %v3587_v30 }
 0x25b   :  { %2860 = vmatprep.subr.msk.bf16.mxu0 %vm90_vm2, %v2309_v15  ;;  %v2431_v58 = vpack.c.bf16 %v2425_v6, %v2425_v6 }
 0x25d   :  { %v2439_v56 = vsel %vm90_vm2, %v2431_v58, 0 }
 0x261   :  { %2856 = vmatmul.mubr.msk.bf16.vlgmr.msra.gmra.mxu0 %vm86_vm3, %v3801_v43  ;;  %v2943_v43 = vld [vmem:[%s3959_s7 + $0x70] sm:$0xff]  }
 0x262   :  { %2342 = vmatpush1.bf16.msra.mxu0 %v2316_v21  ;;  %2359 = vmatprep.mubr.bf16.mxu0 %v3997_v45 }
 0x263   :  { %2865 = vmatprep.subr.msk.bf16.mxu0 %vm90_vm2, %v2432_v57  ;;  %2909 = vmatprep.subr.bf16.mxu1 %v2943_v43 }
 0x269   :  { %2861 = vmatmul.mubr.msk.bf16.vlgmr.msra.gmra.mxu0 %vm86_vm3, %v2859_v59  ;;  %v2954_v59 = vld [vmem:[%s3959_s7 + $0x8] sm:$0xff]  }
 0x26a   :  { %2465 = vmatpush1.bf16.msra.mxu0 %v2439_v56  ;;  %2482 = vmatprep.mubr.bf16.mxu0 %v3997_v45  ;;  %v2944_v45 = vld [vmem:[%s3959_s7 + $0x30] sm:$0xff]   ;;  %s2988_s7 = smov 64  }
 0x26b   :  { %2885 = vmatprep.subr.bf16.mxu0 %v2941_v12  ;;  %2910 = vmatpush3.bf16.msra.mxu1 %v2944_v45 }
 0x26c   :  { %2911 = vmatprep.subr.bf16.mxu1 %v2945_v1 }
 0x26f   :  { %2912 = vmatpush3.bf16.msra.mxu1 %v2946_v18 }
 0x270   :  { %2913 = vmatprep.subr.bf16.mxu1 %v2947_v23 }
 0x271   :  { %2866 = vmatmul.mubr.msk.bf16.vlgmr.msra.gmra.mxu0 %vm86_vm3, %v2864_v42 }
 0x272   :  { %2886 = vmatpush3.bf16.msra.mxu0 %v2942_v35 }
 0x273   :  { %2887 = vmatprep.subr.bf16.mxu0 %v2943_v43  ;;  %2914 = vmatpush3.bf16.msra.mxu1 %v2948_v26 }
 0x274   :  { %2915 = vmatprep.subr.bf16.mxu1 %v2949_v25 }
 0x276   :  { %2888 = vmatpush3.bf16.msra.mxu0 %v2944_v45 }
 0x277   :  { %2889 = vmatprep.subr.bf16.mxu0 %v2945_v1  ;;  %2916 = vmatpush3.bf16.msra.mxu1 %v2950_v8 }
 0x278   :  { %2917 = vmatprep.subr.bf16.mxu1 %v2951_v63 }
 0x27a   :  { %2890 = vmatpush3.bf16.msra.mxu0 %v2946_v18 }
 0x27b   :  { %2891 = vmatprep.subr.bf16.mxu0 %v2947_v23  ;;  %2918 = vmatpush3.bf16.msra.mxu1 %v2952_v62 }
 0x27c   :  { %2919 = vmatprep.subr.bf16.mxu1 %v2953_v32 }
 0x27e   :  { %2892 = vmatpush3.bf16.msra.mxu0 %v2948_v26 }
 0x27f   :  { %2893 = vmatprep.subr.bf16.mxu0 %v2949_v25  ;;  %2920 = vmatpush3.bf16.msra.mxu1 %v2954_v59 }
 0x280   :  { %2921 = vmatprep.subr.bf16.mxu1 %v2955_v41 }
 0x282   :  { %2894 = vmatpush3.bf16.msra.mxu0 %v2950_v8 }
 0x283   :  { %2895 = vmatprep.subr.bf16.mxu0 %v2951_v63  ;;  %2922 = vmatpush3.bf16.msra.mxu1 %v2956_v50 }
 0x286   :  { %2896 = vmatpush3.bf16.msra.mxu0 %v2952_v62 }
 0x287   :  { %2897 = vmatprep.subr.bf16.mxu0 %v2953_v32 }
 0x28a   :  { %2898 = vmatpush3.bf16.msra.mxu0 %v2954_v59 }
 0x28b   :  { %2899 = vmatprep.subr.bf16.mxu0 %v2955_v41 }
 0x28e   :  { %2900 = vmatpush3.bf16.msra.mxu0 %v2956_v50 }
 0x2c9   :  { %v1557_v55 = vpop.f32.mrf.mxu1 }
 0x2ca   :  { %v1566_v27 = vadd.f32 %v1557_v55, %v1444_v2 }
 0x2cb   :  { %v1559_v13 = vpop.f32.mrf.mxu1 }
 0x2cc   :  { %v1567_v28 = vadd.f32 %v1559_v13, %v1445_v33 }
 0x2cd   :  { %v1561_v53 = vpop.f32.mrf.mxu1 }
 0x2cf   :  { %v1562_v3 = vpop.f32.mrf.mxu1 }
 0x2d1   :  { %v1680_v54 = vpop.f32.mrf.mxu1 }
 0x2d2   :  { %v1689_v48 = vadd.f32 %v1680_v54, %v1566_v27 }
 0x2d3   :  { %v1682_v37 = vpop.f32.mrf.mxu1 }
 0x2d4   :  { %v1690_v57 = vadd.f32 %v1682_v37, %v1567_v28 }
 0x2d5   :  { %v1684_v20 = vpop.f32.mrf.mxu1 }
 0x2d7   :  { %v1685_v42 = vpop.f32.mrf.mxu1 }
 0x2d9   :  { %v1803_v5 = vpop.f32.mrf.mxu1 }
 0x2da   :  { %v1812_v21 = vadd.f32 %v1803_v5, %v1689_v48 }
 0x2db   :  { %v1805_v60 = vpop.f32.mrf.mxu1 }
 0x2dc   :  { %v1813_v12 = vadd.f32 %v1805_v60, %v1690_v57 }
 0x2dd   :  { %v1807_v9 = vpop.f32.mrf.mxu1 }
 0x2df   :  { %v1808_v44 = vpop.f32.mrf.mxu1 }
 0x2e1   :  { %v1926_v4 = vpop.f32.mrf.mxu1 }
 0x2e2   :  { %v1935_v35 = vadd.f32 %v1926_v4, %v1812_v21 }
 0x2e3   :  { %v1928_v16 = vpop.f32.mrf.mxu1 }
 0x2e4   :  { %v1936_v61 = vadd.f32 %v1928_v16, %v1813_v12 }
 0x2e5   :  { %v1930_v40 = vpop.f32.mrf.mxu1 }
 0x2e7   :  { %v1931_v11 = vpop.f32.mrf.mxu1 }
 0x2e9   :  { %v2033_v46 = vpop.f32.mrf.mxu1 }
 0x2ea   :  { %v2042_v1 = vadd.f32 %v2033_v46, %v1935_v35 }
 0x2eb   :  { %v2035_v10 = vpop.f32.mrf.mxu1 }
 0x2ec   :  { %v2043_v30 = vadd.f32 %v2035_v10, %v1936_v61 }
 0x2ed   :  { %v2037_v36 = vpop.f32.mrf.mxu1 }
 0x2ef   :  { %v2038_v24 = vpop.f32.mrf.mxu1 }
 0x2f1   :  { %v3939_v49 = vpop.f32.mrf.mxu0  ;;  %v2156_v47 = vpop.f32.mrf.mxu1 }
 0x2f2   :  { %v2165_v26 = vadd.f32 %v2156_v47, %v2042_v1 }
 0x2f3   :  { %v3941_v52 = vpop.f32.mrf.mxu0  ;;  %v2158_v7 = vpop.f32.mrf.mxu1 }
 0x2f4   :  { %v2166_v63 = vadd.f32 %v2158_v7, %v2043_v30  ;;  %v1442_v7 = vadd.f32 %v1440_v34, %v3581_v39 }
 0x2f5   :  { %v1520_v17 = vpop.f32.mrf.mxu0  ;;  %v2160_v51 = vpop.f32.mrf.mxu1 }
 0x2f6   :  { %v1443_v51 = vadd.f32 %v1440_v34, %v3589_v31 }
 0x2f7   :  { %v1521_v22 = vpop.f32.mrf.mxu0  ;;  %v2161_v38 = vpop.f32.mrf.mxu1 }
 0x2f8   :  { %v1564_v22 = vadd.f32 %v3939_v49, %v1442_v7  ;;  %v1565_v2 = vadd.f32 %v3941_v52, %v1443_v51 }
 0x2f9   :  { %v1639_v0 = vpop.f32.mrf.mxu0  ;;  %v2279_v15 = vpop.f32.mrf.mxu1 }
 0x2fa   :  { %v2288_v62 = vadd.f32 %v2279_v15, %v2165_v26  ;;  %v1687_v15 = vadd.f32 %v1639_v0, %v1564_v22 }
 0x2fb   :  { %v1641_v19 = vpop.f32.mrf.mxu0  ;;  %v2281_v14 = vpop.f32.mrf.mxu1 }
 0x2fc   :  { %v2289_v41 = vadd.f32 %v2281_v14, %v2166_v63  ;;  %v1688_v27 = vadd.f32 %v1641_v19, %v1565_v2 }
 0x2fd   :  { %v1643_v29 = vpop.f32.mrf.mxu0  ;;  %v2283_v6 = vpop.f32.mrf.mxu1 }
 0x2ff   :  { %v1644_v58 = vpop.f32.mrf.mxu0  ;;  %v2284_v56 = vpop.f32.mrf.mxu1 }
 0x301   :  { %v1762_v43 = vpop.f32.mrf.mxu0  ;;  %v2402_v45 = vpop.f32.mrf.mxu1 }
 0x302   :  { %v2411_v50 = vadd.f32 %v2402_v45, %v2288_v62  ;;  %v1810_v14 = vadd.f32 %v1762_v43, %v1687_v15 }
 0x303   :  { %v1764_v18 = vpop.f32.mrf.mxu0  ;;  %v2404_v23 = vpop.f32.mrf.mxu1 }
 0x304   :  { %v2412_v53 = vadd.f32 %v2404_v23, %v2289_v41  ;;  %v1811_v48 = vadd.f32 %v1764_v18, %v1688_v27 }
 0x305   :  { %v1766_v25 = vpop.f32.mrf.mxu0  ;;  %v2406_v8 = vpop.f32.mrf.mxu1 }
 0x307   :  { %v1767_v32 = vpop.f32.mrf.mxu0  ;;  %v2407_v59 = vpop.f32.mrf.mxu1 }
 0x309   :  { %v1885_v55 = vpop.f32.mrf.mxu0  ;;  %v2525_v13 = vpop.f32.mrf.mxu1 }
 0x30a   :  { %v2534_v3 = vadd.f32 %v2525_v13, %v2411_v50  ;;  %v1933_v29 = vadd.f32 %v1885_v55, %v1810_v14 }
 0x30b   :  { %v1887_v54 = vpop.f32.mrf.mxu0  ;;  %v2527_v37 = vpop.f32.mrf.mxu1 }
 0x30c   :  { %v2535_v20 = vadd.f32 %v2527_v37, %v2412_v53  ;;  %v2708_v9 = vpack.c.bf16 %v2534_v3, %v2534_v3  ;;  %v1934_v57 = vadd.f32 %v1887_v54, %v1811_v48 }
 0x30d   :  { %v1889_v42 = vpop.f32.mrf.mxu0  ;;  %v2529_v5 = vpop.f32.mrf.mxu1 }
 0x30e   :  { %v2709_v60 = vpack.c.bf16 %v2535_v20, %v2535_v20 }
 0x30f   :  { %v1890_v44 = vpop.f32.mrf.mxu0  ;;  %v2530_v4 = vpop.f32.mrf.mxu1 }
 0x310   :  { %2742 = vmatprep.mubr.bf16.mxu1 %v2709_v60 }
 0x311   :  { %v1992_v16 = vpop.f32.mrf.mxu0  ;;  %2743 = vmatmul.mubr.bf16.vlgmr.msra.gmra.mxu1 %v2708_v9 }
 0x312   :  { %v2040_v21 = vadd.f32 %v1992_v16, %v1933_v29 }
 0x313   :  { %v1994_v40 = vpop.f32.mrf.mxu0 }
 0x314   :  { %v2041_v39 = vadd.f32 %v1994_v40, %v1934_v57 }
 0x315   :  { %v1996_v11 = vpop.f32.mrf.mxu0 }
 0x317   :  { %v1997_v46 = vpop.f32.mrf.mxu0 }
 0x319   :  { %v2115_v10 = vpop.f32.mrf.mxu0 }
 0x31a   :  { %v2163_v56 = vadd.f32 %v2115_v10, %v2040_v21 }
 0x31b   :  { %v2117_v36 = vpop.f32.mrf.mxu0 }
 0x31c   :  { %v2164_v31 = vadd.f32 %v2117_v36, %v2041_v39 }
 0x31d   :  { %v2119_v24 = vpop.f32.mrf.mxu0 }
 0x31f   :  { %v2120_v47 = vpop.f32.mrf.mxu0 }
 0x321   :  { %v2238_v17 = vpop.f32.mrf.mxu0 }
 0x322   :  { %v2286_v34 = vadd.f32 %v2238_v17, %v2163_v56 }
 0x323   :  { %v2240_v38 = vpop.f32.mrf.mxu0 }
 0x324   :  { %v2287_v35 = vadd.f32 %v2240_v38, %v2164_v31 }
 0x325   :  { %v2242_v33 = vpop.f32.mrf.mxu0 }
 0x327   :  { %v2243_v28 = vpop.f32.mrf.mxu0 }
 0x329   :  { %v2361_v6 = vpop.f32.mrf.mxu0 }
 0x32a   :  { %v2409_v45 = vadd.f32 %v2361_v6, %v2286_v34 }
 0x32b   :  { %v2363_v58 = vpop.f32.mrf.mxu0 }
 0x32c   :  { %v2410_v0 = vadd.f32 %v2363_v58, %v2287_v35 }
 0x32d   :  { %v2365_v12 = vpop.f32.mrf.mxu0 }
 0x32f   :  { %v2366_v49 = vpop.f32.mrf.mxu0 }
 0x331   :  { %v2484_v52 = vpop.f32.mrf.mxu0 }
 0x332   :  { %v2532_v61 = vadd.f32 %v2484_v52, %v2409_v45 }
 0x333   :  { %v2486_v19 = vpop.f32.mrf.mxu0 }
 0x334   :  { %v2533_v43 = vadd.f32 %v2486_v19, %v2410_v0  ;;  %v2568_v23 = vpack.c.bf16 %v2532_v61, %v2532_v61 }
 0x335   :  { %v2488_v1 = vpop.f32.mrf.mxu0 }
 0x336   :  { %v2569_v18 = vpack.c.bf16 %v2533_v43, %v2533_v43 }
 0x337   :  { %v2489_v30 = vpop.f32.mrf.mxu0 }
 0x338   :  { %2698 = vmatprep.mubr.bf16.mxu0 %v2569_v18 }
 0x339   :  { %2699 = vmatmul.mubr.bf16.vlgmr.msra.gmra.mxu0 %v2568_v23 }
 0x3d1   :  { %v2923_v26 = vpop.f32.mrf.mxu1 }
 0x3d3   :  { %v2924_v25 = vpop.f32.mrf.mxu1 }
 0x3d4   :  { %v2925_v8 = vadd.f32 %v2924_v25, %v2923_v26 }
 0x3d5   :  { %v2926_v63 = vpop.f32.mrf.mxu1 }
 0x3d6   :  { %2751 = vrot.lane.b32.xlu1 %v2925_v8, %s2988_s7 }
 0x3d7   :  { %v2927_v62 = vpop.f32.mrf.mxu1 }
 0x3f9   :  { %v2901_v32 = vpop.f32.mrf.mxu0 }
 0x3fb   :  { %v2902_v59 = vpop.f32.mrf.mxu0 }
 0x3fc   :  { %v2903_v41 = vadd.f32 %v2902_v59, %v2901_v32 }
 0x3fd   :  { %v2904_v50 = vpop.f32.mrf.mxu0 }
 0x3fe   :  { %2707 = vst.msk [vmem:[#allocation2] sm:$0xff] %vm2706_vm10, %v2903_v41 }
 0x3ff   :  { %v2905_v55 = vpop.f32.mrf.mxu0 }
 0x448   :  { %v2752_v13 = vpop.permute.xlu1 %2751 }
 0x449   :  { %2755 = vst.msk [vmem:[#allocation2] sm:$0xff] %vm2754_vm11, %v2752_v13 }
 0x44a   :  { %2968 = shalt.err (!%p2965_p4)
}
 0x44b   :  { %2765 = dma.vmem_to_hbm [thread:$0]  %s2763_s20, 128, %s3960_s8, [#allocation3]  }
 0x44c   :  { %2977 = dma.done.wait [#allocation3], 128  }
 0x44d   :  { %2978 = vsyncadd [#allocation3], 4294967168 }
 0x44e   :  { %2769 = vsyncpa [#allocation3], 1 }

</bundles_post_ra>
